<compile_context>
chip_gen: v6e
topology: v6e:2x2x1
jax: 0.10.0
libtpu: 0.0.40
codegen_flags: <defaults>
</compile_context>

<pallas_src>
import functools
import math

import jax
import jax.numpy as jnp
from jax import lax
from jax.experimental import pallas as pl
from jax.experimental.pallas import tpu as pltpu

MXU_DTYPE = jnp.bfloat16     # MXU operand dtype (accumulation stays f32)
TILE_LIN = 512               # row-tile cap for linear kernels
TILE_LN = 512                # row-tile cap for LN/FFN kernels
VMEM_LIMIT = 64 * 1024 * 1024


def _round_up(x, m):
    return ((x + m - 1) // m) * m


def _row_tile(m, cap):
    return min(_round_up(m, 8), cap)


# ----------------------------- simple linear kernel -----------------------------

def _linear_kernel(x_ref, w_ref, b_ref, o_ref):
    acc = jnp.dot(x_ref[...].astype(MXU_DTYPE), w_ref[...],
                  preferred_element_type=jnp.float32) + b_ref[...]
    o_ref[...] = acc.astype(o_ref.dtype)


def pallas_linear(x, W, b):
    """y = x @ W + b.  W is pre-cast bf16, b is f32."""
    K = x.shape[-1]
    N = W.shape[1]
    lead = x.shape[:-1]
    x2 = x.reshape(-1, K)
    M = x2.shape[0]
    TM = _row_tile(M, TILE_LIN)
    Mp = pl.cdiv(M, TM) * TM
    if Mp != M:
        x2 = jnp.pad(x2, ((0, Mp - M), (0, 0)))
    out = pl.pallas_call(
        _linear_kernel,
        out_shape=jax.ShapeDtypeStruct((Mp, N), jnp.float32),
        grid=(Mp // TM,),
        in_specs=[pl.BlockSpec((TM, K), lambda i: (i, 0)),
                  pl.BlockSpec((K, N), lambda i: (0, 0)),
                  pl.BlockSpec((1, N), lambda i: (0, 0))],
        out_specs=pl.BlockSpec((TM, N), lambda i: (i, 0)),
        compiler_params=pltpu.CompilerParams(dimension_semantics=("parallel",)),
    )(x2, W, b.reshape(1, N))
    return out[:M].reshape(*lead, N)


# ----------------------------- fused LN -> FFN -> +res -> LN -> mask -----------------------------

def _ln_ffn_ln_kernel(x_ref, r_ref, m_ref, g1_ref, b1_ref, w1_ref, bb1_ref,
                      w2_ref, bb2_ref, g2_ref, b2_ref, o_ref, *, eps):
    z = x_ref[...] + r_ref[...]
    mu = jnp.mean(z, axis=-1, keepdims=True)
    c = z - mu
    var = jnp.mean(c * c, axis=-1, keepdims=True)
    x1 = c * lax.rsqrt(var + eps) * g1_ref[...] + b1_ref[...]
    h = jnp.dot(x1.astype(MXU_DTYPE), w1_ref[...],
                preferred_element_type=jnp.float32) + bb1_ref[...]
    h = jnp.maximum(h, 0.0)
    f = jnp.dot(h.astype(MXU_DTYPE), w2_ref[...],
                preferred_element_type=jnp.float32) + bb2_ref[...]
    z2 = x1 + f
    mu2 = jnp.mean(z2, axis=-1, keepdims=True)
    c2 = z2 - mu2
    var2 = jnp.mean(c2 * c2, axis=-1, keepdims=True)
    y = c2 * lax.rsqrt(var2 + eps) * g2_ref[...] + b2_ref[...]
    o_ref[...] = (y * m_ref[...]).astype(o_ref.dtype)


def pallas_ln_ffn_ln(x, res, mask, ln1, W1, bb1, W2, bb2, ln2, eps=1e-5):
    """mask * LN2( LN1(x+res) + lin2(relu(lin1(LN1(x+res)))) ) — fully fused per row tile."""
    D = x.shape[-1]
    F = W1.shape[1]
    lead = x.shape[:-1]
    x2 = x.reshape(-1, D)
    r2 = res.reshape(-1, D)
    m2 = mask.reshape(-1, 1)
    M = x2.shape[0]
    TM = _row_tile(M, TILE_LN)
    Mp = pl.cdiv(M, TM) * TM
    if Mp != M:
        pad = Mp - M
        x2 = jnp.pad(x2, ((0, pad), (0, 0)))
        r2 = jnp.pad(r2, ((0, pad), (0, 0)))
        m2 = jnp.pad(m2, ((0, pad), (0, 0)))
    out = pl.pallas_call(
        functools.partial(_ln_ffn_ln_kernel, eps=eps),
        out_shape=jax.ShapeDtypeStruct((Mp, D), jnp.float32),
        grid=(Mp // TM,),
        in_specs=[pl.BlockSpec((TM, D), lambda i: (i, 0)),
                  pl.BlockSpec((TM, D), lambda i: (i, 0)),
                  pl.BlockSpec((TM, 1), lambda i: (i, 0)),
                  pl.BlockSpec((1, D), lambda i: (0, 0)),
                  pl.BlockSpec((1, D), lambda i: (0, 0)),
                  pl.BlockSpec((D, F), lambda i: (0, 0)),
                  pl.BlockSpec((1, F), lambda i: (0, 0)),
                  pl.BlockSpec((F, D), lambda i: (0, 0)),
                  pl.BlockSpec((1, D), lambda i: (0, 0)),
                  pl.BlockSpec((1, D), lambda i: (0, 0)),
                  pl.BlockSpec((1, D), lambda i: (0, 0))],
        out_specs=pl.BlockSpec((TM, D), lambda i: (i, 0)),
        compiler_params=pltpu.CompilerParams(dimension_semantics=("parallel",)),
    )(x2, r2, m2, ln1["g"].reshape(1, D), ln1["b"].reshape(1, D),
      W1, bb1, W2, bb2, ln2["g"].reshape(1, D), ln2["b"].reshape(1, D))
    return out[:M].reshape(*lead, D)


# ----------------------------- fused edge-path kernel -----------------------------

def _edge_block_kernel(e_ref, pinf_ref, n1_ref, n2_ref, xm1_ref, xm2_ref,
                       mi_ref, mj_ref, yea_ref, yem_ref,
                       wd1_ref, bd1_ref, wie_ref, bie_ref, wd_ref, bd_ref,
                       we_ref, be_ref, wep1_ref, wep2_ref,
                       wex_ref, bex_ref, wpx_ref, bpx_ref,
                       y_ref, d1_ref, eout_ref, mod_ref, msg_ref, exm_ref, pxm_ref):
    ti, n, de = e_ref.shape[1], e_ref.shape[2], e_ref.shape[3]
    nh = mod_ref.shape[3]
    rows = ti * n

    mask_i = mi_ref[0]                                    # (ti, 1)
    mask_j = mj_ref[0]                                    # (n, 1)
    pm = mask_i[:, None, :] * mask_j[None, :, :]          # (ti, n, 1)  pair mask

    # dist1 = relu(lin_dist1(pos_info) + norm1_i + norm2_j) * pair_mask   (K=2 done as outer products on VPU)
    pinf = pinf_ref[0]                                    # (ti, n, 2)
    wd1 = wd1_ref[...]                                    # (2, de) f32
    d1 = (pinf[..., 0:1] * wd1[0:1, :] + pinf[..., 1:2] * wd1[1:2, :]
          + bd1_ref[...]
          + n1_ref[0][:, None, :] + n2_ref[0][None, :, :])
    d1 = jnp.maximum(d1, 0.0) * pm                        # (ti, n, de)
    d1_ref[0] = d1

    # Y = in_E(E) * x_e_mul1_j * x_e_mul2_i * pair_mask
    yb = jnp.dot(e_ref[0].reshape(rows, de).astype(MXU_DTYPE), wie_ref[...],
                 preferred_element_type=jnp.float32) + bie_ref[...]
    yb = yb.reshape(ti, n, de)
    yb = yb * xm1_ref[0][None, :, :] * xm2_ref[0][:, None, :] * pm

    # fused dist1 projections: dist_add_e | dist_mul_e | pos_att_mul
    dp = jnp.dot(d1.reshape(rows, de).astype(MXU_DTYPE), wd_ref[...],
                 preferred_element_type=jnp.float32) + bd_ref[...]
    dp = dp.reshape(ti, n, 2 * de + nh)
    dist_add = dp[..., :de]
    dist_mul = dp[..., de:2 * de]
    pos_att = dp[..., 2 * de:]

    yb = (yb + dist_add + yb * dist_mul) * pm
    y_ref[0] = yb

    # E_new = (Y + y_e_add + Y * y_e_mul) * pair_mask
    e_new = (yb + yea_ref[0][None, :, :] + yb * yem_ref[0][None, :, :]) * pm

    # fused E_new projections: e_out | e_att_mul ; attention modulation emitted in bf16
    ep = jnp.dot(e_new.reshape(rows, de).astype(MXU_DTYPE), we_ref[...],
                 preferred_element_type=jnp.float32) + be_ref[...]
    ep = ep.reshape(ti, n, de + nh)
    eout_ref[0] = ep[..., :de] * pm
    mod_ref[0] = ((1.0 + ep[..., de:]) * (1.0 + pos_att)).astype(mod_ref.dtype)

    # equivariant messages: relu(Y @ W_e_pos1) . w_e_pos2  (lane reduction instead of an N=1 matmul)
    h = jnp.maximum(jnp.dot(yb.reshape(rows, de).astype(MXU_DTYPE), wep1_ref[...],
                            preferred_element_type=jnp.float32), 0.0)
    msg_ref[0] = jnp.sum(h * wep2_ref[...], axis=-1, keepdims=True).reshape(ti, n, 1)

    # single-pass EtoX pooled statistics (mean/min/max/std over keys j) for E_new and dist1
    imask_j = 1.0 - mask_j[None, :, :]                    # (1, n, 1)
    denom = jnp.sum(mask_j, axis=0, keepdims=True)        # (1, 1)

    def pooled(t):
        m = jnp.sum(t, axis=1) / denom                    # (ti, de)
        mi_ = jnp.min(t + 1e5 * imask_j, axis=1)
        ma_ = jnp.max(t - 1e5 * imask_j, axis=1)
        st = jnp.sum(((t - m[:, None, :]) ** 2) * mask_j[None, :, :], axis=1) / denom
        return jnp.concatenate([m, mi_, ma_, st], axis=-1)   # (ti, 4*de)

    exm_ref[0] = (jnp.dot(pooled(e_new).astype(MXU_DTYPE), wex_ref[...],
                          preferred_element_type=jnp.float32) + bex_ref[...])
    pxm_ref[0] = (jnp.dot(pooled(d1).astype(MXU_DTYPE), wpx_ref[...],
                          preferred_element_type=jnp.float32) + bpx_ref[...])


def edge_block(E, pos_info, norm1, norm2, xem1, xem2, x_mask, y_e_add, y_e_mul, p, *, n_head):
    bs, n, _, de = E.shape
    dx = p["W_exmul"].shape[1]
    ti = n if (n <= 128 or n % 128 != 0) else 128
    grid = (bs, n // ti)
    yea = y_e_add.reshape(bs, 1, de)
    yem = y_e_mul.reshape(bs, 1, de)

    out_shape = (
        jax.ShapeDtypeStruct((bs, n, n, de), jnp.float32),       # Y
        jax.ShapeDtypeStruct((bs, n, n, de), jnp.float32),       # dist1
        jax.ShapeDtypeStruct((bs, n, n, de), jnp.float32),       # Eout
        jax.ShapeDtypeStruct((bs, n, n, n_head), jnp.bfloat16),  # mod (attention modulation)
        jax.ShapeDtypeStruct((bs, n, n, 1), jnp.float32),        # messages
        jax.ShapeDtypeStruct((bs, n, dx), jnp.float32),          # EtoX(E_new)
        jax.ShapeDtypeStruct((bs, n, dx), jnp.float32),          # EtoX(dist1)
    )
    in_specs = [
        pl.BlockSpec((1, ti, n, de), lambda b, it: (b, it, 0, 0)),   # E
        pl.BlockSpec((1, ti, n, 2), lambda b, it: (b, it, 0, 0)),    # pos_info
        pl.BlockSpec((1, ti, de), lambda b, it: (b, it, 0)),         # norm1 (i-indexed)
        pl.BlockSpec((1, n, de), lambda b, it: (b, 0, 0)),           # norm2 (j-indexed)
        pl.BlockSpec((1, n, de), lambda b, it: (b, 0, 0)),           # x_e_mul1 (j-indexed)
        pl.BlockSpec((1, ti, de), lambda b, it: (b, it, 0)),         # x_e_mul2 (i-indexed)
        pl.BlockSpec((1, ti, 1), lambda b, it: (b, it, 0)),          # mask_i
        pl.BlockSpec((1, n, 1), lambda b, it: (b, 0, 0)),            # mask_j
        pl.BlockSpec((1, 1, de), lambda b, it: (b, 0, 0)),           # y_e_add
        pl.BlockSpec((1, 1, de), lambda b, it: (b, 0, 0)),           # y_e_mul
        pl.BlockSpec((2, de), lambda b, it: (0, 0)),                 # W_dist1 (f32, VPU)
        pl.BlockSpec((1, de), lambda b, it: (0, 0)),                 # b_dist1
        pl.BlockSpec((de, de), lambda b, it: (0, 0)),                # W_inE
        pl.BlockSpec((1, de), lambda b, it: (0, 0)),                 # b_inE
        pl.BlockSpec((de, 2 * de + n_head), lambda b, it: (0, 0)),   # Wd (dist_add|dist_mul|pos_att)
        pl.BlockSpec((1, 2 * de + n_head), lambda b, it: (0, 0)),    # bd
        pl.BlockSpec((de, de + n_head), lambda b, it: (0, 0)),       # We (e_out|e_att)
        pl.BlockSpec((1, de + n_head), lambda b, it: (0, 0)),        # be
        pl.BlockSpec((de, de), lambda b, it: (0, 0)),                # W_e_pos1
        pl.BlockSpec((1, de), lambda b, it: (0, 0)),                 # w_e_pos2 (row, f32)
        pl.BlockSpec((4 * de, dx), lambda b, it: (0, 0)),            # W_e_x_mul
        pl.BlockSpec((1, dx), lambda b, it: (0, 0)),                 # b_e_x_mul
        pl.BlockSpec((4 * de, dx), lambda b, it: (0, 0)),            # W_pos_x_mul
        pl.BlockSpec((1, dx), lambda b, it: (0, 0)),                 # b_pos_x_mul
    ]
    out_specs = (
        pl.BlockSpec((1, ti, n, de), lambda b, it: (b, it, 0, 0)),
        pl.BlockSpec((1, ti, n, de), lambda b, it: (b, it, 0, 0)),
        pl.BlockSpec((1, ti, n, de), lambda b, it: (b, it, 0, 0)),
        pl.BlockSpec((1, ti, n, n_head), lambda b, it: (b, it, 0, 0)),
        pl.BlockSpec((1, ti, n, 1), lambda b, it: (b, it, 0, 0)),
        pl.BlockSpec((1, ti, dx), lambda b, it: (b, it, 0)),
        pl.BlockSpec((1, ti, dx), lambda b, it: (b, it, 0)),
    )
    return pl.pallas_call(
        _edge_block_kernel,
        out_shape=out_shape,
        grid=grid,
        in_specs=in_specs,
        out_specs=out_specs,
        compiler_params=pltpu.CompilerParams(
            dimension_semantics=("parallel", "parallel"),
            vmem_limit_bytes=VMEM_LIMIT),
    )(E, pos_info, norm1, norm2, xem1, xem2, x_mask, x_mask, yea, yem,
      p["W_dist1"], p["b_dist1"], p["W_inE"], p["b_inE"], p["Wd"], p["bd"],
      p["We"], p["be"], p["W_ep1"], p["w_ep2"],
      p["W_exmul"], p["b_exmul"], p["W_posxmul"], p["b_posxmul"])


# ----------------------------- fused attention kernel (stacked heads) -----------------------------

def _attn_kernel(q_ref, k_ref, v_ref, mod_ref, kb_ref, wa_ref, wo_ref, bo_ref, o_ref, *, n_head):
    tq, dx = q_ref.shape[1], q_ref.shape[2]
    n = k_ref.shape[1]
    q = q_ref[0]                                           # (tq, dx) f32
    wa = wa_ref[...]                                       # (h, dx) f32, scale pre-folded
    qh = (q[None, :, :] * wa[:, None, :]).reshape(n_head * tq, dx).astype(MXU_DTYPE)
    k = k_ref[0].astype(MXU_DTYPE)                         # (n, dx)
    logits = lax.dot_general(qh, k, (((1,), (1,)), ((), ())),
                             preferred_element_type=jnp.float32)          # (h*tq, n)
    mod = mod_ref[0].astype(jnp.float32).reshape(n_head * tq, n)
    logits = logits * mod + kb_ref[0]                      # additive key-mask bias (0 / -1e30)
    m = jnp.max(logits, axis=-1, keepdims=True)
    p_un = jnp.exp(logits - m)
    s = jnp.sum(p_un, axis=-1, keepdims=True)
    alpha = (p_un * pl.reciprocal(s, approx=True)).astype(MXU_DTYPE)
    v = v_ref[0].astype(MXU_DTYPE)
    wv = lax.dot_general(alpha, v, (((1,), (0,)), ((), ())),
                         preferred_element_type=jnp.float32)               # (h*tq, dx)
    heads = wv.reshape(n_head, tq, dx).astype(MXU_DTYPE)
    outh = lax.dot_general(heads, wo_ref[...], (((2,), (1,)), ((0,), (0,))),
                           preferred_element_type=jnp.float32)              # (h, tq, dx)
    o_ref[0] = (jnp.sum(outh, axis=0) + bo_ref[...]).astype(o_ref.dtype)


def pallas_attention(Q, K, V, mod_t, kbias, Wa_s, Wo3, b_out, *, n_head):
    """Fused node self-attention.  Returns the post-'out'-projection weighted_V (before x_mask)."""
    bs, n, dx = Q.shape
    # TODO(synk): pad n to a multiple of 128 (with masked keys) for large n not divisible by 128.
    tq = n if (n <= 128 or n % 128 != 0) else 128
    nq = n // tq
    return pl.pallas_call(
        functools.partial(_attn_kernel, n_head=n_head),
        out_shape=jax.ShapeDtypeStruct((bs, n, dx), jnp.float32),
        grid=(bs, nq),
        in_specs=[
            pl.BlockSpec((1, tq, dx), lambda b, qi: (b, qi, 0)),             # Q
            pl.BlockSpec((1, n, dx), lambda b, qi: (b, 0, 0)),               # K
            pl.BlockSpec((1, n, dx), lambda b, qi: (b, 0, 0)),               # V
            pl.BlockSpec((1, n_head, tq, n), lambda b, qi: (b, 0, qi, 0)),   # mod (bf16)
            pl.BlockSpec((1, 1, n), lambda b, qi: (b, 0, 0)),                # additive key bias
            pl.BlockSpec((n_head, dx), lambda b, qi: (0, 0)),                # W_a^T * scale
            pl.BlockSpec((n_head, dx, dx), lambda b, qi: (0, 0, 0)),         # W_out (per-head)
            pl.BlockSpec((1, dx), lambda b, qi: (0, 0)),                     # b_out
        ],
        out_specs=pl.BlockSpec((1, tq, dx), lambda b, qi: (b, qi, 0)),
        compiler_params=pltpu.CompilerParams(
            dimension_semantics=("parallel", "parallel"),
            vmem_limit_bytes=VMEM_LIMIT),
    )(Q, K, V, mod_t, kbias, Wa_s, Wo3, b_out)


# ----------------------------- plain-JAX glue helpers -----------------------------

def relu(x):
    return jnp.maximum(x, 0.0)


def dense_jax(x, q):
    return x @ q["W"] + q["b"]


def layer_norm_jax(x, q, eps=1e-5):
    mean = jnp.mean(x, axis=-1, keepdims=True)
    var = jnp.mean((x - mean) ** 2, axis=-1, keepdims=True)
    return (x - mean) * lax.rsqrt(var + eps) * q["g"] + q["b"]


# TODO(synk): Xtoy/Etoy pooled statistics reduce over whole graphs (cross-tile), left to XLA fusion
# instead of a Pallas accumulator-grid reduction kernel.
def x_to_y(X, x_mask, lin):                       # Xtoy
    m_mask = jnp.broadcast_to(x_mask, X.shape)
    imask = 1.0 - m_mask
    denom = jnp.sum(m_mask, axis=1)
    m = jnp.sum(X, axis=1) / denom
    mi = jnp.min(X + 1e5 * imask, axis=1)
    ma = jnp.max(X - 1e5 * imask, axis=1)
    std = jnp.sum(((X - m[:, None, :]) ** 2) * m_mask, axis=1) / denom
    z = jnp.concatenate([m, mi, ma, std], axis=1)
    return dense_jax(z, lin)


def e_to_y(E, e_mask1, e_mask2, lin):             # Etoy
    mask = jnp.broadcast_to(e_mask1 * e_mask2, E.shape)
    imask = 1.0 - mask
    denom = jnp.sum(mask, axis=(1, 2))
    m = jnp.sum(E, axis=(1, 2)) / denom
    mi = jnp.min(jnp.min(E + 1e5 * imask, axis=2), axis=1)
    ma = jnp.max(jnp.max(E - 1e5 * imask, axis=2), axis=1)
    std = jnp.sum(((E - m[:, None, None, :]) ** 2) * mask, axis=(1, 2)) / denom
    z = jnp.concatenate([m, mi, ma, std], axis=1)
    return dense_jax(z, lin)


def se3_norm(vel, x_mask, weight, eps):
    norm = jnp.linalg.norm(vel, axis=-1, keepdims=True)
    mean_norm = jnp.sum(norm, axis=1, keepdims=True) / jnp.sum(x_mask, axis=1, keepdims=True)
    return weight * vel / (mean_norm + eps)


def remove_mean_with_mask(x, node_mask):
    nm = node_mask[..., None]
    N = jnp.sum(nm, axis=1, keepdims=True)
    mean = jnp.sum(x, axis=1, keepdims=True) / N
    return x - mean * nm


# ----------------------------- XEyTransformerLayer forward -----------------------------

def xey_transformer_layer(p, X, E, y, pos, node_mask, *, n_head, eps=1e-5):
    bs, n, dx = X.shape
    de = E.shape[-1]

    x_mask = node_mask[..., None]            # (bs, n, 1)
    e_mask1 = x_mask[:, :, None, :]
    e_mask2 = x_mask[:, None, :, :]

    # ---------- NodeEdgeBlock ----------
    posm = pos * x_mask
    norm_pos = jnp.linalg.norm(posm, axis=-1, keepdims=True)                # (bs, n, 1)
    normalized_pos = posm / (norm_pos + 1e-7)
    diff = posm[:, :, None, :] - posm[:, None, :, :]
    pairwise_dist = jnp.sqrt(jnp.sum(diff ** 2, axis=-1, keepdims=True))    # cdist
    cosines = jnp.sum(normalized_pos[:, None, :, :] * normalized_pos[:, :, None, :],
                      axis=-1, keepdims=True)
    pos_info = jnp.concatenate([pairwise_dist, cosines], axis=-1)           # (bs, n, n, 2)

    norm1 = norm_pos * p["np1_w"] + p["np1_b"]                              # (bs, n, de)
    norm2 = norm_pos * p["np2_w"] + p["np2_b"]

    # fused X projections: q | k | v | x_e_mul1 | x_e_mul2 (one matmul)
    Xp = pallas_linear(X, p["Wx"], p["bx"]) * x_mask
    Q = Xp[..., :dx]
    Kx = Xp[..., dx:2 * dx]
    V = Xp[..., 2 * dx:3 * dx]
    xem1 = Xp[..., 3 * dx:3 * dx + de]
    xem2 = Xp[..., 3 * dx + de:]

    # fused y projections (tiny rows -> one plain XLA matmul)
    yp = y @ p["Wy"] + p["by"]
    y_e_add = yp[:, :de]
    y_e_mul = yp[:, de:2 * de]
    y_x_add = yp[:, 2 * de:2 * de + dx]
    y_x_mul = yp[:, 2 * de + dx:2 * de + 2 * dx]
    y_y = yp[:, 2 * de + 2 * dx:]

    # big fused edge-path kernel (single pass over the (bs,n,n,·) tensors)
    Yt, dist1, Eout, mod, msg, exm, pxm = edge_block(
        E, pos_info, norm1, norm2, xem1, xem2, x_mask, y_e_add, y_e_mul, p, n_head=n_head)

    # attention (mod consumed as bf16, key mask as additive bias)
    # TODO(synk): masked_softmax's all-masked early-return branch is not replicated; non-empty
    # graphs are assumed (the -1e30 additive bias keeps the softmax finite regardless).
    mod_t = jnp.transpose(mod, (0, 3, 1, 2))                                # (bs, h, n, n) bf16
    kbias = jnp.where(node_mask[:, None, :] > 0.0, 0.0, -1e30).astype(jnp.float32)
    wV = pallas_attention(Q, Kx, V, mod_t, kbias, p["Wa_s"], p["Wo3"], p["bo"], n_head=n_head)
    weighted_V = wV * x_mask
    weighted_V = weighted_V + exm * weighted_V
    weighted_V = weighted_V + pxm * weighted_V

    newX = weighted_V * (y_x_mul[:, None, :] + 1.0) + y_x_add[:, None, :]
    Xout = pallas_linear(newX, p["W_xout"], p["b_xout"]) * x_mask

    # global features
    e_y = e_to_y(Yt, e_mask1, e_mask2, p["e_y"])
    x_y = x_to_y(newX, x_mask, p["x_y"])
    dist_y = e_to_y(dist1, e_mask1, e_mask2, p["dist_y"])
    new_y = y_y + x_y + e_y + dist_y
    y_out = dense_jax(relu(dense_jax(new_y, p["y_out1"])), p["y_out2"])

    # equivariant position update (messages already computed in the edge kernel)
    delta_pos = posm[:, :, None, :] - posm[:, None, :, :]
    vel = jnp.sum(msg * delta_pos, axis=2) * x_mask
    vel = remove_mean_with_mask(vel, node_mask)

    # ---------- transformer-layer residual / FFN paths ----------
    new_pos = se3_norm(vel, x_mask, p["se3_w"], eps) + pos

    diag_mask = 1.0 - jnp.eye(n, dtype=jnp.float32)[None, :, :, None]
    e_row_mask = e_mask1 * e_mask2 * diag_mask

    # LN1 -> FFN -> +res -> LN2 -> output mask, fused into one kernel per path
    Xf = pallas_ln_ffn_ln(X, Xout, x_mask, p["normX1"],
                          p["linX1_W"], p["linX1_b"], p["linX2_W"], p["linX2_b"],
                          p["normX2"], eps)
    Ef = pallas_ln_ffn_ln(E, Eout, e_row_mask, p["normE1"],
                          p["linE1_W"], p["linE1_b"], p["linE2_W"], p["linE2_b"],
                          p["normE2"], eps)
    Ef = 0.5 * (Ef + jnp.swapaxes(Ef, 1, 2))     # mask is symmetric, so masking commutes

    ynew = layer_norm_jax(y + y_out, p["norm_y1"], eps)
    ffy = dense_jax(relu(dense_jax(ynew, p["lin_y1"])), p["lin_y2"])
    ynew = layer_norm_jax(ynew + ffy, p["norm_y2"], eps)

    new_pos = new_pos * x_mask
    return Xf, Ef, ynew, new_pos


# ----------------------------- parameter init & host-side preparation -----------------------------

def make_params(key, dx, de, dy, n_head, dim_ffX, dim_ffE, dim_ffy):
    keys = iter(jax.random.split(key, 64))

    def lin(din, dout, bias=True):
        k1, k2 = jax.random.split(next(keys))
        bound = 1.0 / math.sqrt(din)
        W = jax.random.uniform(k1, (din, dout), jnp.float32, -bound, bound)
        b = (jax.random.uniform(k2, (dout,), jnp.float32, -bound, bound)
             if bias else jnp.zeros((dout,), jnp.float32))
        return {"W": W, "b": b}

    def ln(d):
        return {"g": jnp.ones((d,), jnp.float32), "b": jnp.zeros((d,), jnp.float32)}

    p = {}
    p["in_E"] = lin(de, de)
    p["x_e_mul1"] = lin(dx, de)
    p["x_e_mul2"] = lin(dx, de)
    p["lin_dist1"] = lin(2, de)
    p["lin_norm_pos1"] = lin(1, de)
    p["lin_norm_pos2"] = lin(1, de)
    p["dist_add_e"] = lin(de, de)
    p["dist_mul_e"] = lin(de, de)
    p["k"] = lin(dx, dx)
    p["q"] = lin(dx, dx)
    p["v"] = lin(dx, dx)
    p["a"] = lin(dx, n_head, bias=False)
    p["out"] = lin(dx * n_head, dx)
    p["e_att_mul"] = lin(de, n_head)
    p["pos_att_mul"] = lin(de, n_head)
    p["e_x_mul"] = lin(4 * de, dx)
    p["pos_x_mul"] = lin(4 * de, dx)
    p["y_e_mul"] = lin(dy, de)
    p["y_e_add"] = lin(dy, de)
    p["pre_softmax"] = lin(de, dx)          # present in __init__, unused in forward
    p["y_x_mul"] = lin(dy, dx)
    p["y_x_add"] = lin(dy, dx)
    p["y_y"] = lin(dy, dy)
    p["x_y"] = lin(4 * dx, dy)
    p["e_y"] = lin(4 * de, dy)
    p["dist_y"] = lin(4 * de, dy)
    p["e_pos1"] = lin(de, de, bias=False)
    p["e_pos2"] = lin(de, 1, bias=False)
    p["x_out"] = lin(dx, dx)
    p["e_out"] = lin(de, de)
    p["y_out1"] = lin(dy, dy)
    p["y_out2"] = lin(dy, dy)
    p["linX1"] = lin(dx, dim_ffX)
    p["linX2"] = lin(dim_ffX, dx)
    p["linE1"] = lin(de, dim_ffE)
    p["linE2"] = lin(dim_ffE, de)
    p["lin_y1"] = lin(dy, dim_ffy)
    p["lin_y2"] = lin(dim_ffy, dy)
    p["normX1"] = ln(dx)
    p["normX2"] = ln(dx)
    p["normE1"] = ln(de)
    p["normE2"] = ln(de)
    p["norm_y1"] = ln(dy)
    p["norm_y2"] = ln(dy)
    p["se3_w"] = jnp.ones((1,), jnp.float32)
    return p


def prepare_params(p, dx, de, dy, n_head):
    """Fuse/concatenate projection weights and pre-cast MXU weights to bf16 once on the host."""
    bf = lambda w: w.astype(jnp.bfloat16)
    o = {}
    o["Wx"] = bf(jnp.concatenate([p["q"]["W"], p["k"]["W"], p["v"]["W"],
                                  p["x_e_mul1"]["W"], p["x_e_mul2"]["W"]], axis=1))
    o["bx"] = jnp.concatenate([p["q"]["b"], p["k"]["b"], p["v"]["b"],
                               p["x_e_mul1"]["b"], p["x_e_mul2"]["b"]], axis=0)
    o["Wy"] = jnp.concatenate([p["y_e_add"]["W"], p["y_e_mul"]["W"],
                               p["y_x_add"]["W"], p["y_x_mul"]["W"], p["y_y"]["W"]], axis=1)
    o["by"] = jnp.concatenate([p["y_e_add"]["b"], p["y_e_mul"]["b"],
                               p["y_x_add"]["b"], p["y_x_mul"]["b"], p["y_y"]["b"]], axis=0)
    o["np1_w"] = p["lin_norm_pos1"]["W"][0]
    o["np1_b"] = p["lin_norm_pos1"]["b"]
    o["np2_w"] = p["lin_norm_pos2"]["W"][0]
    o["np2_b"] = p["lin_norm_pos2"]["b"]
    o["W_dist1"] = p["lin_dist1"]["W"]                       # f32 (K=2, done on VPU)
    o["b_dist1"] = p["lin_dist1"]["b"].reshape(1, de)
    o["W_inE"] = bf(p["in_E"]["W"])
    o["b_inE"] = p["in_E"]["b"].reshape(1, de)
    o["Wd"] = bf(jnp.concatenate([p["dist_add_e"]["W"], p["dist_mul_e"]["W"],
                                  p["pos_att_mul"]["W"]], axis=1))
    o["bd"] = jnp.concatenate([p["dist_add_e"]["b"], p["dist_mul_e"]["b"],
                               p["pos_att_mul"]["b"]], axis=0).reshape(1, -1)
    o["We"] = bf(jnp.concatenate([p["e_out"]["W"], p["e_att_mul"]["W"]], axis=1))
    o["be"] = jnp.concatenate([p["e_out"]["b"], p["e_att_mul"]["b"]], axis=0).reshape(1, -1)
    o["W_ep1"] = bf(p["e_pos1"]["W"])
    o["w_ep2"] = p["e_pos2"]["W"].reshape(1, de)             # f32 row (lane reduction)
    o["W_exmul"] = bf(p["e_x_mul"]["W"])
    o["b_exmul"] = p["e_x_mul"]["b"].reshape(1, dx)
    o["W_posxmul"] = bf(p["pos_x_mul"]["W"])
    o["b_posxmul"] = p["pos_x_mul"]["b"].reshape(1, dx)
    o["Wa_s"] = (p["a"]["W"].T * (1.0 / math.sqrt(de))).astype(jnp.float32)   # scale folded in
    o["Wo3"] = bf(p["out"]["W"].reshape(n_head, dx, dx))
    o["bo"] = p["out"]["b"].reshape(1, dx)
    o["W_xout"] = bf(p["x_out"]["W"])
    o["b_xout"] = p["x_out"]["b"]
    o["linX1_W"] = bf(p["linX1"]["W"]); o["linX1_b"] = p["linX1"]["b"].reshape(1, -1)
    o["linX2_W"] = bf(p["linX2"]["W"]); o["linX2_b"] = p["linX2"]["b"].reshape(1, -1)
    o["linE1_W"] = bf(p["linE1"]["W"]); o["linE1_b"] = p["linE1"]["b"].reshape(1, -1)
    o["linE2_W"] = bf(p["linE2"]["W"]); o["linE2_b"] = p["linE2"]["b"].reshape(1, -1)
    for k in ["x_y", "e_y", "dist_y", "y_out1", "y_out2", "lin_y1", "lin_y2",
              "norm_y1", "norm_y2", "normX1", "normX2", "normE1", "normE2"]:
        o[k] = p[k]
    o["se3_w"] = p["se3_w"]
    return o


# ----------------------------- main -----------------------------

if __name__ == "__main__":
    bs, n = 2, 8
    dx, de, dy, n_head = 16, 8, 16, 4
    dim_ffX, dim_ffE, dim_ffy = 32, 16, 32

    key = jax.random.PRNGKey(0)
    kp, kX, kE, ky, kpos = jax.random.split(key, 5)

    raw_params = make_params(kp, dx, de, dy, n_head, dim_ffX, dim_ffE, dim_ffy)
    params = prepare_params(raw_params, dx, de, dy, n_head)

    X = jax.random.normal(kX, (bs, n, dx), jnp.float32)
    E = jax.random.normal(kE, (bs, n, n, de), jnp.float32)
    E = 0.5 * (E + jnp.swapaxes(E, 1, 2))            # symmetric edge features
    y = jax.random.normal(ky, (bs, dy), jnp.float32)
    pos = jax.random.normal(kpos, (bs, n, 3), jnp.float32)
    node_mask = jnp.array([[1, 1, 1, 1, 1, 1, 1, 1],
                           [1, 1, 1, 1, 1, 0, 0, 0]], jnp.float32)

    fwd = jax.jit(lambda prm, X_, E_, y_, pos_, nm:
                  xey_transformer_layer(prm, X_, E_, y_, pos_, nm, n_head=n_head))

    Xo, Eo, yo, poso = fwd(params, X, E, y, pos, node_mask)
    jax.block_until_ready((Xo, Eo, yo, poso))

    assert Xo.shape == (bs, n, dx)
    assert Eo.shape == (bs, n, n, de)
    assert yo.shape == (bs, dy)
    assert poso.shape == (bs, n, 3)
    assert not bool(jnp.any(jnp.isnan(Xo)))
    assert not bool(jnp.any(jnp.isnan(Eo)))
    assert not bool(jnp.any(jnp.isnan(yo)))
    assert not bool(jnp.any(jnp.isnan(poso)))
    print("KERNEL_OK")
</pallas_src>

<mosaic_0001>
module attributes {stable_mosaic.version = 11 : i64} {
  func.func @_linear_kernel(%arg0: i32, %arg1: memref<16x16xf32, #tpu.memory_space<vmem>>, %arg2: memref<16x64xbf16, #tpu.memory_space<vmem>>, %arg3: memref<1x64xf32, #tpu.memory_space<vmem>>, %arg4: memref<16x64xf32, #tpu.memory_space<vmem>>) attributes {dimension_semantics = [#tpu.dimension_semantics<parallel>], iteration_bounds = array<i64: 1>, scalar_prefetch = 0 : i64, scratch_operands = 0 : i64, tpu.core_type = #tpu.core_type<tc>, window_params = [{transform_indices = @transform_0, window_bounds = array<i64: 16, 16>}, {pipeline_mode = #tpu.pipeline_mode<synchronous>, transform_indices = @transform_1, window_bounds = array<i64: 16, 64>}, {pipeline_mode = #tpu.pipeline_mode<synchronous>, transform_indices = @transform_2, window_bounds = array<i64: 1, 64>}, {transform_indices = @transform_3, window_bounds = array<i64: 16, 64>}]} {
    %c0 = arith.constant 0 : index
    %c0_0 = arith.constant 0 : index
    %0 = vector.load %arg1[%c0, %c0_0] : memref<16x16xf32, #tpu.memory_space<vmem>>, vector<16x16xf32>
    %1 = arith.truncf %0 : vector<16x16xf32> to vector<16x16xbf16>
    %c0_1 = arith.constant 0 : index
    %c0_2 = arith.constant 0 : index
    %2 = vector.load %arg2[%c0_1, %c0_2] : memref<16x64xbf16, #tpu.memory_space<vmem>>, vector<16x64xbf16>
    %cst = arith.constant dense<0.000000e+00> : vector<16x64xf32>
    %3 = tpu.matmul %1, %2, %cst {dimension_numbers = #tpu.dot_dimension_numbers<[1], [0], [0], [1], [0, 0, 1, 1], [], []>} : vector<16x16xbf16>, vector<16x64xbf16>, vector<16x64xf32> -> vector<16x64xf32>
    %c0_3 = arith.constant 0 : index
    %c0_4 = arith.constant 0 : index
    %4 = vector.load %arg3[%c0_3, %c0_4] : memref<1x64xf32, #tpu.memory_space<vmem>>, vector<1x64xf32>
    %5 = vector.broadcast %4 : vector<1x64xf32> to vector<16x64xf32>
    %6 = arith.addf %3, %5 : vector<16x64xf32>
    %c0_5 = arith.constant 0 : index
    %c0_6 = arith.constant 0 : index
    %7 = vector.load %arg4[%c0_5, %c0_6] : memref<16x64xf32, #tpu.memory_space<vmem>>, vector<16x64xf32>
    tpu.vector_store %arg4[%c0_5, %c0_6], %6 {strides = array<i32>} : memref<16x64xf32, #tpu.memory_space<vmem>>, vector<16x64xf32>,
    return
  }
  func.func @transform_0(%arg0: i32) -> (i32, i32) {
    %c0_i32 = arith.constant 0 : i32
    %c0_i32_0 = arith.constant 0 : i32
    return %arg0, %c0_i32 : i32, i32
  }
  func.func @transform_1(%arg0: i32) -> (i32, i32) {
    %c0_i32 = arith.constant 0 : i32
    %c0_i32_0 = arith.constant 0 : i32
    %c0_i32_1 = arith.constant 0 : i32
    return %c0_i32, %c0_i32_0 : i32, i32
  }
  func.func @transform_2(%arg0: i32) -> (i32, i32) {
    %c0_i32 = arith.constant 0 : i32
    %c0_i32_0 = arith.constant 0 : i32
    %c0_i32_1 = arith.constant 0 : i32
    return %c0_i32, %c0_i32_0 : i32, i32
  }
  func.func @transform_3(%arg0: i32) -> (i32, i32) {
    %c0_i32 = arith.constant 0 : i32
    %c0_i32_0 = arith.constant 0 : i32
    return %arg0, %c0_i32 : i32, i32
  }
}

module attributes {stable_mosaic.version = 11 : i64} {
  func.func @_attn_kernel(%arg0: i32, %arg1: i32, %arg2: memref<1x8x16xf32, #tpu.memory_space<vmem>>, %arg3: memref<1x8x16xf32, #tpu.memory_space<vmem>>, %arg4: memref<1x8x16xf32, #tpu.memory_space<vmem>>, %arg5: memref<1x4x8x8xbf16, #tpu.memory_space<vmem>>, %arg6: memref<1x1x8xf32, #tpu.memory_space<vmem>>, %arg7: memref<4x16xf32, #tpu.memory_space<vmem>>, %arg8: memref<4x16x16xbf16, #tpu.memory_space<vmem>>, %arg9: memref<1x16xf32, #tpu.memory_space<vmem>>, %arg10: memref<1x8x16xf32, #tpu.memory_space<vmem>>) attributes {dimension_semantics = [#tpu.dimension_semantics<parallel>, #tpu.dimension_semantics<parallel>], iteration_bounds = array<i64: 2, 1>, scalar_prefetch = 0 : i64, scratch_operands = 0 : i64, tpu.core_type = #tpu.core_type<tc>, window_params = [{transform_indices = @transform_0, window_bounds = array<i64: 1, 8, 16>}, {transform_indices = @transform_1, window_bounds = array<i64: 1, 8, 16>}, {transform_indices = @transform_2, window_bounds = array<i64: 1, 8, 16>}, {transform_indices = @transform_3, window_bounds = array<i64: 1, 4, 8, 8>}, {transform_indices = @transform_4, window_bounds = array<i64: 1, 1, 8>}, {pipeline_mode = #tpu.pipeline_mode<synchronous>, transform_indices = @transform_5, window_bounds = array<i64: 4, 16>}, {pipeline_mode = #tpu.pipeline_mode<synchronous>, transform_indices = @transform_6, window_bounds = array<i64: 4, 16, 16>}, {pipeline_mode = #tpu.pipeline_mode<synchronous>, transform_indices = @transform_7, window_bounds = array<i64: 1, 16>}, {transform_indices = @transform_8, window_bounds = array<i64: 1, 8, 16>}]} {
    %c0 = arith.constant 0 : index
    %c0_0 = arith.constant 0 : index
    %c0_1 = arith.constant 0 : index
    %0 = vector.load %arg2[%c0, %c0_0, %c0_1] : memref<1x8x16xf32, #tpu.memory_space<vmem>>, vector<1x8x16xf32>
    %1 = vector.shape_cast %0 : vector<1x8x16xf32> to vector<8x16xf32>
    %c0_2 = arith.constant 0 : index
    %c0_3 = arith.constant 0 : index
    %2 = vector.load %arg7[%c0_2, %c0_3] : memref<4x16xf32, #tpu.memory_space<vmem>>, vector<4x16xf32>
    %3 = vector.shape_cast %1 : vector<8x16xf32> to vector<1x8x16xf32>
    %4 = vector.shape_cast %2 : vector<4x16xf32> to vector<4x1x16xf32>
    %5 = vector.broadcast %3 : vector<1x8x16xf32> to vector<4x8x16xf32>
    %6 = vector.broadcast %4 : vector<4x1x16xf32> to vector<4x8x16xf32>
    %7 = arith.mulf %5, %6 : vector<4x8x16xf32>
    %8 = vector.shape_cast %7 : vector<4x8x16xf32> to vector<32x16xf32>
    %9 = arith.truncf %8 : vector<32x16xf32> to vector<32x16xbf16>
    %c0_4 = arith.constant 0 : index
    %c0_5 = arith.constant 0 : index
    %c0_6 = arith.constant 0 : index
    %10 = vector.load %arg3[%c0_4, %c0_5, %c0_6] : memref<1x8x16xf32, #tpu.memory_space<vmem>>, vector<1x8x16xf32>
    %11 = vector.shape_cast %10 : vector<1x8x16xf32> to vector<8x16xf32>
    %12 = arith.truncf %11 : vector<8x16xf32> to vector<8x16xbf16>
    %cst = arith.constant dense<0.000000e+00> : vector<32x8xf32>
    %13 = tpu.matmul %9, %12, %cst {dimension_numbers = #tpu.dot_dimension_numbers<[1], [1], [0], [0], [0, 0, 1, 0], [], []>} : vector<32x16xbf16>, vector<8x16xbf16>, vector<32x8xf32> -> vector<32x8xf32>
    %c0_7 = arith.constant 0 : index
    %c0_8 = arith.constant 0 : index
    %c0_9 = arith.constant 0 : index
    %c0_10 = arith.constant 0 : index
    %14 = vector.load %arg5[%c0_7, %c0_8, %c0_9, %c0_10] : memref<1x4x8x8xbf16, #tpu.memory_space<vmem>>, vector<1x4x8x8xbf16>
    %15 = vector.shape_cast %14 : vector<1x4x8x8xbf16> to vector<4x8x8xbf16>
    %16 = arith.extf %15 : vector<4x8x8xbf16> to vector<4x8x8xf32>
    %17 = vector.shape_cast %16 : vector<4x8x8xf32> to vector<32x8xf32>
    %18 = arith.mulf %13, %17 : vector<32x8xf32>
    %c0_11 = arith.constant 0 : index
    %c0_12 = arith.constant 0 : index
    %c0_13 = arith.constant 0 : index
    %19 = vector.load %arg6[%c0_11, %c0_12, %c0_13] : memref<1x1x8xf32, #tpu.memory_space<vmem>>, vector<1x1x8xf32>
    %20 = vector.shape_cast %19 : vector<1x1x8xf32> to vector<1x8xf32>
    %21 = vector.broadcast %20 : vector<1x8xf32> to vector<32x8xf32>
    %22 = arith.addf %18, %21 : vector<32x8xf32>
    %cst_14 = arith.constant dense<0xFF800000> : vector<32xf32>
    %23 = vector.multi_reduction <maximumf>, %22, %cst_14 [1] : vector<32x8xf32> to vector<32xf32>
    %24 = vector.shape_cast %23 : vector<32xf32> to vector<32x1xf32>
    %25 = vector.broadcast %24 : vector<32x1xf32> to vector<32x8xf32>
    %26 = arith.subf %22, %25 : vector<32x8xf32>
    %27 = math.exp %26 : vector<32x8xf32>
    %cst_15 = arith.constant dense<0.000000e+00> : vector<32xf32>
    %28 = vector.multi_reduction <add>, %27, %cst_15 [1] : vector<32x8xf32> to vector<32xf32>
    %29 = vector.shape_cast %28 : vector<32xf32> to vector<32x1xf32>
    %30 = tpu.reciprocal %29 {approx = true} : vector<32x1xf32> -> vector<32x1xf32>
    %31 = vector.broadcast %30 : vector<32x1xf32> to vector<32x8xf32>
    %32 = arith.mulf %27, %31 : vector<32x8xf32>
    %33 = arith.truncf %32 : vector<32x8xf32> to vector<32x8xbf16>
    %c0_16 = arith.constant 0 : index
    %c0_17 = arith.constant 0 : index
    %c0_18 = arith.constant 0 : index
    %34 = vector.load %arg4[%c0_16, %c0_17, %c0_18] : memref<1x8x16xf32, #tpu.memory_space<vmem>>, vector<1x8x16xf32>
    %35 = vector.shape_cast %34 : vector<1x8x16xf32> to vector<8x16xf32>
    %36 = arith.truncf %35 : vector<8x16xf32> to vector<8x16xbf16>
    %cst_19 = arith.constant dense<0.000000e+00> : vector<32x16xf32>
    %37 = tpu.matmul %33, %36, %cst_19 {dimension_numbers = #tpu.dot_dimension_numbers<[1], [0], [0], [1], [0, 0, 1, 1], [], []>} : vector<32x8xbf16>, vector<8x16xbf16>, vector<32x16xf32> -> vector<32x16xf32>
    %38 = vector.shape_cast %37 : vector<32x16xf32> to vector<4x8x16xf32>
    %39 = arith.truncf %38 : vector<4x8x16xf32> to vector<4x8x16xbf16>
    %c0_20 = arith.constant 0 : index
    %c0_21 = arith.constant 0 : index
    %c0_22 = arith.constant 0 : index
    %40 = vector.load %arg8[%c0_20, %c0_21, %c0_22] : memref<4x16x16xbf16, #tpu.memory_space<vmem>>, vector<4x16x16xbf16>
    %cst_23 = arith.constant dense<0.000000e+00> : vector<4x8x16xf32>
    %41 = tpu.matmul %39, %40, %cst_23 {dimension_numbers = #tpu.dot_dimension_numbers<[2], [1], [1], [2], [0, 0, 0, 1, 1, 2], [0], [0]>} : vector<4x8x16xbf16>, vector<4x16x16xbf16>, vector<4x8x16xf32> -> vector<4x8x16xf32>
    %cst_24 = arith.constant dense<0.000000e+00> : vector<8x16xf32>
    %42 = vector.multi_reduction <add>, %41, %cst_24 [0] : vector<4x8x16xf32> to vector<8x16xf32>
    %c0_25 = arith.constant 0 : index
    %c0_26 = arith.constant 0 : index
    %43 = vector.load %arg9[%c0_25, %c0_26] : memref<1x16xf32, #tpu.memory_space<vmem>>, vector<1x16xf32>
    %44 = vector.broadcast %43 : vector<1x16xf32> to vector<8x16xf32>
    %45 = arith.addf %42, %44 : vector<8x16xf32>
    %c0_27 = arith.constant 0 : index
    %c0_28 = arith.constant 0 : index
    %c0_29 = arith.constant 0 : index
    %46 = vector.load %arg10[%c0_27, %c0_28, %c0_29] : memref<1x8x16xf32, #tpu.memory_space<vmem>>, vector<1x8x16xf32>
    %47 = vector.shape_cast %46 : vector<1x8x16xf32> to vector<8x16xf32>
    %48 = vector.shape_cast %45 : vector<8x16xf32> to vector<1x8x16xf32>
    tpu.vector_store %arg10[%c0_27, %c0_28, %c0_29], %48 {strides = array<i32>} : memref<1x8x16xf32, #tpu.memory_space<vmem>>, vector<1x8x16xf32>,
    return
  }
  func.func @transform_0(%arg0: i32, %arg1: i32) -> (i32, i32, i32) {
    %c0_i32 = arith.constant 0 : i32
    %c0_i32_0 = arith.constant 0 : i32
    return %arg0, %arg1, %c0_i32 : i32, i32, i32
  }
  func.func @transform_1(%arg0: i32, %arg1: i32) -> (i32, i32, i32) {
    %c0_i32 = arith.constant 0 : i32
    %c0_i32_0 = arith.constant 0 : i32
    %c0_i32_1 = arith.constant 0 : i32
    return %arg0, %c0_i32, %c0_i32_0 : i32, i32, i32
  }
  func.func @transform_2(%arg0: i32, %arg1: i32) -> (i32, i32, i32) {
    %c0_i32 = arith.constant 0 : i32
    %c0_i32_0 = arith.constant 0 : i32
    %c0_i32_1 = arith.constant 0 : i32
    return %arg0, %c0_i32, %c0_i32_0 : i32, i32, i32
  }
  func.func @transform_3(%arg0: i32, %arg1: i32) -> (i32, i32, i32, i32) {
    %c0_i32 = arith.constant 0 : i32
    %c0_i32_0 = arith.constant 0 : i32
    %c0_i32_1 = arith.constant 0 : i32
    return %arg0, %c0_i32, %arg1, %c0_i32_0 : i32, i32, i32, i32
  }
  func.func @transform_4(%arg0: i32, %arg1: i32) -> (i32, i32, i32) {
    %c0_i32 = arith.constant 0 : i32
    %c0_i32_0 = arith.constant 0 : i32
    %c0_i32_1 = arith.constant 0 : i32
    return %arg0, %c0_i32, %c0_i32_0 : i32, i32, i32
  }
  func.func @transform_5(%arg0: i32, %arg1: i32) -> (i32, i32) {
    %c0_i32 = arith.constant 0 : i32
    %c0_i32_0 = arith.constant 0 : i32
    %c0_i32_1 = arith.constant 0 : i32
    return %c0_i32, %c0_i32_0 : i32, i32
  }
  func.func @transform_6(%arg0: i32, %arg1: i32) -> (i32, i32, i32) {
    %c0_i32 = arith.constant 0 : i32
    %c0_i32_0 = arith.constant 0 : i32
    %c0_i32_1 = arith.constant 0 : i32
    %c0_i32_2 = arith.constant 0 : i32
    return %c0_i32, %c0_i32_0, %c0_i32_1 : i32, i32, i32
  }
  func.func @transform_7(%arg0: i32, %arg1: i32) -> (i32, i32) {
    %c0_i32 = arith.constant 0 : i32
    %c0_i32_0 = arith.constant 0 : i32
    %c0_i32_1 = arith.constant 0 : i32
    return %c0_i32, %c0_i32_0 : i32, i32
  }
  func.func @transform_8(%arg0: i32, %arg1: i32) -> (i32, i32, i32) {
    %c0_i32 = arith.constant 0 : i32
    %c0_i32_0 = arith.constant 0 : i32
    return %arg0, %arg1, %c0_i32 : i32, i32, i32
  }
}

module attributes {stable_mosaic.version = 11 : i64} {
  func.func @_edge_block_kernel(%arg0: i32, %arg1: i32, %arg2: memref<1x8x8x8xf32, #tpu.memory_space<vmem>>, %arg3: memref<1x8x8x2xf32, #tpu.memory_space<vmem>>, %arg4: memref<1x8x8xf32, #tpu.memory_space<vmem>>, %arg5: memref<1x8x8xf32, #tpu.memory_space<vmem>>, %arg6: memref<1x8x8xf32, #tpu.memory_space<vmem>>, %arg7: memref<1x8x8xf32, #tpu.memory_space<vmem>>, %arg8: memref<1x8x1xf32, #tpu.memory_space<vmem>>, %arg9: memref<1x8x1xf32, #tpu.memory_space<vmem>>, %arg10: memref<1x1x8xf32, #tpu.memory_space<vmem>>, %arg11: memref<1x1x8xf32, #tpu.memory_space<vmem>>, %arg12: memref<2x8xf32, #tpu.memory_space<vmem>>, %arg13: memref<1x8xf32, #tpu.memory_space<vmem>>, %arg14: memref<8x8xbf16, #tpu.memory_space<vmem>>, %arg15: memref<1x8xf32, #tpu.memory_space<vmem>>, %arg16: memref<8x20xbf16, #tpu.memory_space<vmem>>, %arg17: memref<1x20xf32, #tpu.memory_space<vmem>>, %arg18: memref<8x12xbf16, #tpu.memory_space<vmem>>, %arg19: memref<1x12xf32, #tpu.memory_space<vmem>>, %arg20: memref<8x8xbf16, #tpu.memory_space<vmem>>, %arg21: memref<1x8xf32, #tpu.memory_space<vmem>>, %arg22: memref<32x16xbf16, #tpu.memory_space<vmem>>, %arg23: memref<1x16xf32, #tpu.memory_space<vmem>>, %arg24: memref<32x16xbf16, #tpu.memory_space<vmem>>, %arg25: memref<1x16xf32, #tpu.memory_space<vmem>>, %arg26: memref<1x8x8x8xf32, #tpu.memory_space<vmem>>, %arg27: memref<1x8x8x8xf32, #tpu.memory_space<vmem>>, %arg28: memref<1x8x8x8xf32, #tpu.memory_space<vmem>>, %arg29: memref<1x8x8x4xbf16, #tpu.memory_space<vmem>>, %arg30: memref<1x8x8x1xf32, #tpu.memory_space<vmem>>, %arg31: memref<1x8x16xf32, #tpu.memory_space<vmem>>, %arg32: memref<1x8x16xf32, #tpu.memory_space<vmem>>) attributes {dimension_semantics = [#tpu.dimension_semantics<parallel>, #tpu.dimension_semantics<parallel>], iteration_bounds = array<i64: 2, 1>, scalar_prefetch = 0 : i64, scratch_operands = 0 : i64, tpu.core_type = #tpu.core_type<tc>, window_params = [{transform_indices = @transform_0, window_bounds = array<i64: 1, 8, 8, 8>}, {transform_indices = @transform_1, window_bounds = array<i64: 1, 8, 8, 2>}, {transform_indices = @transform_2, window_bounds = array<i64: 1, 8, 8>}, {transform_indices = @transform_3, window_bounds = array<i64: 1, 8, 8>}, {transform_indices = @transform_4, window_bounds = array<i64: 1, 8, 8>}, {transform_indices = @transform_5, window_bounds = array<i64: 1, 8, 8>}, {transform_indices = @transform_6, window_bounds = array<i64: 1, 8, 1>}, {transform_indices = @transform_7, window_bounds = array<i64: 1, 8, 1>}, {transform_indices = @transform_8, window_bounds = array<i64: 1, 1, 8>}, {transform_indices = @transform_9, window_bounds = array<i64: 1, 1, 8>}, {pipeline_mode = #tpu.pipeline_mode<synchronous>, transform_indices = @transform_10, window_bounds = array<i64: 2, 8>}, {pipeline_mode = #tpu.pipeline_mode<synchronous>, transform_indices = @transform_11, window_bounds = array<i64: 1, 8>}, {pipeline_mode = #tpu.pipeline_mode<synchronous>, transform_indices = @transform_12, window_bounds = array<i64: 8, 8>}, {pipeline_mode = #tpu.pipeline_mode<synchronous>, transform_indices = @transform_13, window_bounds = array<i64: 1, 8>}, {pipeline_mode = #tpu.pipeline_mode<synchronous>, transform_indices = @transform_14, window_bounds = array<i64: 8, 20>}, {pipeline_mode = #tpu.pipeline_mode<synchronous>, transform_indices = @transform_15, window_bounds = array<i64: 1, 20>}, {pipeline_mode = #tpu.pipeline_mode<synchronous>, transform_indices = @transform_16, window_bounds = array<i64: 8, 12>}, {pipeline_mode = #tpu.pipeline_mode<synchronous>, transform_indices = @transform_17, window_bounds = array<i64: 1, 12>}, {pipeline_mode = #tpu.pipeline_mode<synchronous>, transform_indices = @transform_18, window_bounds = array<i64: 8, 8>}, {pipeline_mode = #tpu.pipeline_mode<synchronous>, transform_indices = @transform_19, window_bounds = array<i64: 1, 8>}, {pipeline_mode = #tpu.pipeline_mode<synchronous>, transform_indices = @transform_20, window_bounds = array<i64: 32, 16>}, {pipeline_mode = #tpu.pipeline_mode<synchronous>, transform_indices = @transform_21, window_bounds = array<i64: 1, 16>}, {pipeline_mode = #tpu.pipeline_mode<synchronous>, transform_indices = @transform_22, window_bounds = array<i64: 32, 16>}, {pipeline_mode = #tpu.pipeline_mode<synchronous>, transform_indices = @transform_23, window_bounds = array<i64: 1, 16>}, {transform_indices = @transform_24, window_bounds = array<i64: 1, 8, 8, 8>}, {transform_indices = @transform_25, window_bounds = array<i64: 1, 8, 8, 8>}, {transform_indices = @transform_26, window_bounds = array<i64: 1, 8, 8, 8>}, {transform_indices = @transform_27, window_bounds = array<i64: 1, 8, 8, 4>}, {transform_indices = @transform_28, window_bounds = array<i64: 1, 8, 8, 1>}, {transform_indices = @transform_29, window_bounds = array<i64: 1, 8, 16>}, {transform_indices = @transform_30, window_bounds = array<i64: 1, 8, 16>}]} {
    %c0 = arith.constant 0 : index
    %c0_0 = arith.constant 0 : index
    %c0_1 = arith.constant 0 : index
    %0 = vector.load %arg8[%c0, %c0_0, %c0_1] : memref<1x8x1xf32, #tpu.memory_space<vmem>>, vector<1x8x1xf32>
    %1 = vector.shape_cast %0 : vector<1x8x1xf32> to vector<8x1xf32>
    %c0_2 = arith.constant 0 : index
    %c0_3 = arith.constant 0 : index
    %c0_4 = arith.constant 0 : index
    %2 = vector.load %arg9[%c0_2, %c0_3, %c0_4] : memref<1x8x1xf32, #tpu.memory_space<vmem>>, vector<1x8x1xf32>
    %3 = vector.shape_cast %2 : vector<1x8x1xf32> to vector<8x1xf32>
    %4 = vector.shape_cast %1 : vector<8x1xf32> to vector<8x1x1xf32>
    %5 = vector.shape_cast %3 : vector<8x1xf32> to vector<1x8x1xf32>
    %6 = vector.broadcast %4 : vector<8x1x1xf32> to vector<8x8x1xf32>
    %7 = vector.broadcast %5 : vector<1x8x1xf32> to vector<8x8x1xf32>
    %8 = arith.mulf %6, %7 : vector<8x8x1xf32>
    %c0_5 = arith.constant 0 : index
    %c0_6 = arith.constant 0 : index
    %c0_7 = arith.constant 0 : index
    %c0_8 = arith.constant 0 : index
    %9 = vector.load %arg3[%c0_5, %c0_6, %c0_7, %c0_8] : memref<1x8x8x2xf32, #tpu.memory_space<vmem>>, vector<1x8x8x2xf32>
    %10 = vector.shape_cast %9 : vector<1x8x8x2xf32> to vector<8x8x2xf32>
    %c0_9 = arith.constant 0 : index
    %c0_10 = arith.constant 0 : index
    %11 = vector.load %arg12[%c0_9, %c0_10] : memref<2x8xf32, #tpu.memory_space<vmem>>, vector<2x8xf32>
    %12 = vector.extract_strided_slice %10 {offsets = [0, 0, 0], sizes = [8, 8, 1], strides = [1, 1, 1]} : vector<8x8x2xf32> to vector<8x8x1xf32>
    %13 = vector.extract_strided_slice %11 {offsets = [0, 0], sizes = [1, 8], strides = [1, 1]} : vector<2x8xf32> to vector<1x8xf32>
    %14 = vector.shape_cast %13 : vector<1x8xf32> to vector<1x1x8xf32>
    %15 = vector.broadcast %12 : vector<8x8x1xf32> to vector<8x8x8xf32>
    %16 = vector.broadcast %14 : vector<1x1x8xf32> to vector<8x8x8xf32>
    %17 = arith.mulf %15, %16 : vector<8x8x8xf32>
    %18 = vector.extract_strided_slice %10 {offsets = [0, 0, 1], sizes = [8, 8, 1], strides = [1, 1, 1]} : vector<8x8x2xf32> to vector<8x8x1xf32>
    %19 = vector.extract_strided_slice %11 {offsets = [1, 0], sizes = [1, 8], strides = [1, 1]} : vector<2x8xf32> to vector<1x8xf32>
    %20 = vector.shape_cast %19 : vector<1x8xf32> to vector<1x1x8xf32>
    %21 = vector.broadcast %18 : vector<8x8x1xf32> to vector<8x8x8xf32>
    %22 = vector.broadcast %20 : vector<1x1x8xf32> to vector<8x8x8xf32>
    %23 = arith.mulf %21, %22 : vector<8x8x8xf32>
    %24 = arith.addf %17, %23 : vector<8x8x8xf32>
    %c0_11 = arith.constant 0 : index
    %c0_12 = arith.constant 0 : index
    %25 = vector.load %arg13[%c0_11, %c0_12] : memref<1x8xf32, #tpu.memory_space<vmem>>, vector<1x8xf32>
    %26 = vector.shape_cast %25 : vector<1x8xf32> to vector<1x1x8xf32>
    %27 = vector.broadcast %26 : vector<1x1x8xf32> to vector<8x8x8xf32>
    %28 = arith.addf %24, %27 : vector<8x8x8xf32>
    %c0_13 = arith.constant 0 : index
    %c0_14 = arith.constant 0 : index
    %c0_15 = arith.constant 0 : index
    %29 = vector.load %arg4[%c0_13, %c0_14, %c0_15] : memref<1x8x8xf32, #tpu.memory_space<vmem>>, vector<1x8x8xf32>
    %30 = vector.shape_cast %29 : vector<1x8x8xf32> to vector<8x8xf32>
    %31 = vector.shape_cast %30 : vector<8x8xf32> to vector<8x1x8xf32>
    %32 = vector.broadcast %31 : vector<8x1x8xf32> to vector<8x8x8xf32>
    %33 = arith.addf %28, %32 : vector<8x8x8xf32>
    %c0_16 = arith.constant 0 : index
    %c0_17 = arith.constant 0 : index
    %c0_18 = arith.constant 0 : index
    %34 = vector.load %arg5[%c0_16, %c0_17, %c0_18] : memref<1x8x8xf32, #tpu.memory_space<vmem>>, vector<1x8x8xf32>
    %35 = vector.shape_cast %34 : vector<1x8x8xf32> to vector<8x8xf32>
    %36 = vector.shape_cast %35 : vector<8x8xf32> to vector<1x8x8xf32>
    %37 = vector.broadcast %36 : vector<1x8x8xf32> to vector<8x8x8xf32>
    %38 = arith.addf %33, %37 : vector<8x8x8xf32>
    %cst = arith.constant 0.000000e+00 : f32
    %39 = vector.broadcast %cst : f32 to vector<8x8x8xf32>
    %40 = arith.maximumf %38, %39 : vector<8x8x8xf32>
    %41 = vector.broadcast %8 : vector<8x8x1xf32> to vector<8x8x8xf32>
    %42 = arith.mulf %40, %41 : vector<8x8x8xf32>
    %c0_19 = arith.constant 0 : index
    %c0_20 = arith.constant 0 : index
    %c0_21 = arith.constant 0 : index
    %c0_22 = arith.constant 0 : index
    %43 = vector.load %arg27[%c0_19, %c0_20, %c0_21, %c0_22] : memref<1x8x8x8xf32, #tpu.memory_space<vmem>>, vector<1x8x8x8xf32>
    %44 = vector.shape_cast %43 : vector<1x8x8x8xf32> to vector<8x8x8xf32>
    %45 = vector.shape_cast %42 : vector<8x8x8xf32> to vector<1x8x8x8xf32>
    tpu.vector_store %arg27[%c0_19, %c0_20, %c0_21, %c0_22], %45 {strides = array<i32>} : memref<1x8x8x8xf32, #tpu.memory_space<vmem>>, vector<1x8x8x8xf32>,
    %c0_23 = arith.constant 0 : index
    %c0_24 = arith.constant 0 : index
    %c0_25 = arith.constant 0 : index
    %c0_26 = arith.constant 0 : index
    %46 = vector.load %arg2[%c0_23, %c0_24, %c0_25, %c0_26] : memref<1x8x8x8xf32, #tpu.memory_space<vmem>>, vector<1x8x8x8xf32>
    %47 = vector.shape_cast %46 : vector<1x8x8x8xf32> to vector<8x8x8xf32>
    %48 = vector.shape_cast %47 : vector<8x8x8xf32> to vector<64x8xf32>
    %49 = arith.truncf %48 : vector<64x8xf32> to vector<64x8xbf16>
    %c0_27 = arith.constant 0 : index
    %c0_28 = arith.constant 0 : index
    %50 = vector.load %arg14[%c0_27, %c0_28] : memref<8x8xbf16, #tpu.memory_space<vmem>>, vector<8x8xbf16>
    %cst_29 = arith.constant dense<0.000000e+00> : vector<64x8xf32>
    %51 = tpu.matmul %49, %50, %cst_29 {dimension_numbers = #tpu.dot_dimension_numbers<[1], [0], [0], [1], [0, 0, 1, 1], [], []>} : vector<64x8xbf16>, vector<8x8xbf16>, vector<64x8xf32> -> vector<64x8xf32>
    %c0_30 = arith.constant 0 : index
    %c0_31 = arith.constant 0 : index
    %52 = vector.load %arg15[%c0_30, %c0_31] : memref<1x8xf32, #tpu.memory_space<vmem>>, vector<1x8xf32>
    %53 = vector.broadcast %52 : vector<1x8xf32> to vector<64x8xf32>
    %54 = arith.addf %51, %53 : vector<64x8xf32>
    %55 = vector.shape_cast %54 : vector<64x8xf32> to vector<8x8x8xf32>
    %c0_32 = arith.constant 0 : index
    %c0_33 = arith.constant 0 : index
    %c0_34 = arith.constant 0 : index
    %56 = vector.load %arg6[%c0_32, %c0_33, %c0_34] : memref<1x8x8xf32, #tpu.memory_space<vmem>>, vector<1x8x8xf32>
    %57 = vector.shape_cast %56 : vector<1x8x8xf32> to vector<8x8xf32>
    %58 = vector.shape_cast %57 : vector<8x8xf32> to vector<1x8x8xf32>
    %59 = vector.broadcast %58 : vector<1x8x8xf32> to vector<8x8x8xf32>
    %60 = arith.mulf %55, %59 : vector<8x8x8xf32>
    %c0_35 = arith.constant 0 : index
    %c0_36 = arith.constant 0 : index
    %c0_37 = arith.constant 0 : index
    %61 = vector.load %arg7[%c0_35, %c0_36, %c0_37] : memref<1x8x8xf32, #tpu.memory_space<vmem>>, vector<1x8x8xf32>
    %62 = vector.shape_cast %61 : vector<1x8x8xf32> to vector<8x8xf32>
    %63 = vector.shape_cast %62 : vector<8x8xf32> to vector<8x1x8xf32>
    %64 = vector.broadcast %63 : vector<8x1x8xf32> to vector<8x8x8xf32>
    %65 = arith.mulf %60, %64 : vector<8x8x8xf32>
    %66 = vector.broadcast %8 : vector<8x8x1xf32> to vector<8x8x8xf32>
    %67 = arith.mulf %65, %66 : vector<8x8x8xf32>
    %68 = vector.shape_cast %42 : vector<8x8x8xf32> to vector<64x8xf32>
    %69 = arith.truncf %68 : vector<64x8xf32> to vector<64x8xbf16>
    %c0_38 = arith.constant 0 : index
    %c0_39 = arith.constant 0 : index
    %70 = vector.load %arg16[%c0_38, %c0_39] : memref<8x20xbf16, #tpu.memory_space<vmem>>, vector<8x20xbf16>
    %cst_40 = arith.constant dense<0.000000e+00> : vector<64x20xf32>
    %71 = tpu.matmul %69, %70, %cst_40 {dimension_numbers = #tpu.dot_dimension_numbers<[1], [0], [0], [1], [0, 0, 1, 1], [], []>} : vector<64x8xbf16>, vector<8x20xbf16>, vector<64x20xf32> -> vector<64x20xf32>
    %c0_41 = arith.constant 0 : index
    %c0_42 = arith.constant 0 : index
    %72 = vector.load %arg17[%c0_41, %c0_42] : memref<1x20xf32, #tpu.memory_space<vmem>>, vector<1x20xf32>
    %73 = vector.broadcast %72 : vector<1x20xf32> to vector<64x20xf32>
    %74 = arith.addf %71, %73 : vector<64x20xf32>
    %75 = vector.shape_cast %74 : vector<64x20xf32> to vector<8x8x20xf32>
    %76 = vector.extract_strided_slice %75 {offsets = [0, 0, 0], sizes = [8, 8, 8], strides = [1, 1, 1]} : vector<8x8x20xf32> to vector<8x8x8xf32>
    %77 = vector.extract_strided_slice %75 {offsets = [0, 0, 8], sizes = [8, 8, 8], strides = [1, 1, 1]} : vector<8x8x20xf32> to vector<8x8x8xf32>
    %78 = vector.extract_strided_slice %75 {offsets = [0, 0, 16], sizes = [8, 8, 4], strides = [1, 1, 1]} : vector<8x8x20xf32> to vector<8x8x4xf32>
    %79 = arith.addf %67, %76 : vector<8x8x8xf32>
    %80 = arith.mulf %67, %77 : vector<8x8x8xf32>
    %81 = arith.addf %79, %80 : vector<8x8x8xf32>
    %82 = vector.broadcast %8 : vector<8x8x1xf32> to vector<8x8x8xf32>
    %83 = arith.mulf %81, %82 : vector<8x8x8xf32>
    %c0_43 = arith.constant 0 : index
    %c0_44 = arith.constant 0 : index
    %c0_45 = arith.constant 0 : index
    %c0_46 = arith.constant 0 : index
    %84 = vector.load %arg26[%c0_43, %c0_44, %c0_45, %c0_46] : memref<1x8x8x8xf32, #tpu.memory_space<vmem>>, vector<1x8x8x8xf32>
    %85 = vector.shape_cast %84 : vector<1x8x8x8xf32> to vector<8x8x8xf32>
    %86 = vector.shape_cast %83 : vector<8x8x8xf32> to vector<1x8x8x8xf32>
    tpu.vector_store %arg26[%c0_43, %c0_44, %c0_45, %c0_46], %86 {strides = array<i32>} : memref<1x8x8x8xf32, #tpu.memory_space<vmem>>, vector<1x8x8x8xf32>,
    %c0_47 = arith.constant 0 : index
    %c0_48 = arith.constant 0 : index
    %c0_49 = arith.constant 0 : index
    %87 = vector.load %arg10[%c0_47, %c0_48, %c0_49] : memref<1x1x8xf32, #tpu.memory_space<vmem>>, vector<1x1x8xf32>
    %88 = vector.shape_cast %87 : vector<1x1x8xf32> to vector<1x8xf32>
    %89 = vector.shape_cast %88 : vector<1x8xf32> to vector<1x1x8xf32>
    %90 = vector.broadcast %89 : vector<1x1x8xf32> to vector<8x8x8xf32>
    %91 = arith.addf %83, %90 : vector<8x8x8xf32>
    %c0_50 = arith.constant 0 : index
    %c0_51 = arith.constant 0 : index
    %c0_52 = arith.constant 0 : index
    %92 = vector.load %arg11[%c0_50, %c0_51, %c0_52] : memref<1x1x8xf32, #tpu.memory_space<vmem>>, vector<1x1x8xf32>
    %93 = vector.shape_cast %92 : vector<1x1x8xf32> to vector<1x8xf32>
    %94 = vector.shape_cast %93 : vector<1x8xf32> to vector<1x1x8xf32>
    %95 = vector.broadcast %94 : vector<1x1x8xf32> to vector<8x8x8xf32>
    %96 = arith.mulf %83, %95 : vector<8x8x8xf32>
    %97 = arith.addf %91, %96 : vector<8x8x8xf32>
    %98 = vector.broadcast %8 : vector<8x8x1xf32> to vector<8x8x8xf32>
    %99 = arith.mulf %97, %98 : vector<8x8x8xf32>
    %100 = vector.shape_cast %99 : vector<8x8x8xf32> to vector<64x8xf32>
    %101 = arith.truncf %100 : vector<64x8xf32> to vector<64x8xbf16>
    %c0_53 = arith.constant 0 : index
    %c0_54 = arith.constant 0 : index
    %102 = vector.load %arg18[%c0_53, %c0_54] : memref<8x12xbf16, #tpu.memory_space<vmem>>, vector<8x12xbf16>
    %cst_55 = arith.constant dense<0.000000e+00> : vector<64x12xf32>
    %103 = tpu.matmul %101, %102, %cst_55 {dimension_numbers = #tpu.dot_dimension_numbers<[1], [0], [0], [1], [0, 0, 1, 1], [], []>} : vector<64x8xbf16>, vector<8x12xbf16>, vector<64x12xf32> -> vector<64x12xf32>
    %c0_56 = arith.constant 0 : index
    %c0_57 = arith.constant 0 : index
    %104 = vector.load %arg19[%c0_56, %c0_57] : memref<1x12xf32, #tpu.memory_space<vmem>>, vector<1x12xf32>
    %105 = vector.broadcast %104 : vector<1x12xf32> to vector<64x12xf32>
    %106 = arith.addf %103, %105 : vector<64x12xf32>
    %107 = vector.shape_cast %106 : vector<64x12xf32> to vector<8x8x12xf32>
    %108 = vector.extract_strided_slice %107 {offsets = [0, 0, 0], sizes = [8, 8, 8], strides = [1, 1, 1]} : vector<8x8x12xf32> to vector<8x8x8xf32>
    %109 = vector.broadcast %8 : vector<8x8x1xf32> to vector<8x8x8xf32>
    %110 = arith.mulf %108, %109 : vector<8x8x8xf32>
    %c0_58 = arith.constant 0 : index
    %c0_59 = arith.constant 0 : index
    %c0_60 = arith.constant 0 : index
    %c0_61 = arith.constant 0 : index
    %111 = vector.load %arg28[%c0_58, %c0_59, %c0_60, %c0_61] : memref<1x8x8x8xf32, #tpu.memory_space<vmem>>, vector<1x8x8x8xf32>
    %112 = vector.shape_cast %111 : vector<1x8x8x8xf32> to vector<8x8x8xf32>
    %113 = vector.shape_cast %110 : vector<8x8x8xf32> to vector<1x8x8x8xf32>
    tpu.vector_store %arg28[%c0_58, %c0_59, %c0_60, %c0_61], %113 {strides = array<i32>} : memref<1x8x8x8xf32, #tpu.memory_space<vmem>>, vector<1x8x8x8xf32>,
    %114 = vector.extract_strided_slice %107 {offsets = [0, 0, 8], sizes = [8, 8, 4], strides = [1, 1, 1]} : vector<8x8x12xf32> to vector<8x8x4xf32>
    %cst_62 = arith.constant 1.000000e+00 : f32
    %115 = vector.broadcast %cst_62 : f32 to vector<8x8x4xf32>
    %116 = arith.addf %115, %114 : vector<8x8x4xf32>
    %cst_63 = arith.constant 1.000000e+00 : f32
    %117 = vector.broadcast %cst_63 : f32 to vector<8x8x4xf32>
    %118 = arith.addf %117, %78 : vector<8x8x4xf32>
    %119 = arith.mulf %116, %118 : vector<8x8x4xf32>
    %120 = arith.truncf %119 : vector<8x8x4xf32> to vector<8x8x4xbf16>
    %c0_64 = arith.constant 0 : index
    %c0_65 = arith.constant 0 : index
    %c0_66 = arith.constant 0 : index
    %c0_67 = arith.constant 0 : index
    %121 = vector.load %arg29[%c0_64, %c0_65, %c0_66, %c0_67] : memref<1x8x8x4xbf16, #tpu.memory_space<vmem>>, vector<1x8x8x4xbf16>
    %122 = vector.shape_cast %121 : vector<1x8x8x4xbf16> to vector<8x8x4xbf16>
    %123 = vector.shape_cast %120 : vector<8x8x4xbf16> to vector<1x8x8x4xbf16>
    tpu.vector_store %arg29[%c0_64, %c0_65, %c0_66, %c0_67], %123 {strides = array<i32>} : memref<1x8x8x4xbf16, #tpu.memory_space<vmem>>, vector<1x8x8x4xbf16>,
    %124 = vector.shape_cast %83 : vector<8x8x8xf32> to vector<64x8xf32>
    %125 = arith.truncf %124 : vector<64x8xf32> to vector<64x8xbf16>
    %c0_68 = arith.constant 0 : index
    %c0_69 = arith.constant 0 : index
    %126 = vector.load %arg20[%c0_68, %c0_69] : memref<8x8xbf16, #tpu.memory_space<vmem>>, vector<8x8xbf16>
    %cst_70 = arith.constant dense<0.000000e+00> : vector<64x8xf32>
    %127 = tpu.matmul %125, %126, %cst_70 {dimension_numbers = #tpu.dot_dimension_numbers<[1], [0], [0], [1], [0, 0, 1, 1], [], []>} : vector<64x8xbf16>, vector<8x8xbf16>, vector<64x8xf32> -> vector<64x8xf32>
    %cst_71 = arith.constant 0.000000e+00 : f32
    %128 = vector.broadcast %cst_71 : f32 to vector<64x8xf32>
    %129 = arith.maximumf %127, %128 : vector<64x8xf32>
    %c0_72 = arith.constant 0 : index
    %c0_73 = arith.constant 0 : index
    %130 = vector.load %arg21[%c0_72, %c0_73] : memref<1x8xf32, #tpu.memory_space<vmem>>, vector<1x8xf32>
    %131 = vector.broadcast %130 : vector<1x8xf32> to vector<64x8xf32>
    %132 = arith.mulf %129, %131 : vector<64x8xf32>
    %cst_74 = arith.constant dense<0.000000e+00> : vector<64xf32>
    %133 = vector.multi_reduction <add>, %132, %cst_74 [1] : vector<64x8xf32> to vector<64xf32>
    %134 = vector.shape_cast %133 : vector<64xf32> to vector<64x1xf32>
    %135 = vector.shape_cast %134 : vector<64x1xf32> to vector<8x8x1xf32>
    %c0_75 = arith.constant 0 : index
    %c0_76 = arith.constant 0 : index
    %c0_77 = arith.constant 0 : index
    %c0_78 = arith.constant 0 : index
    %136 = vector.load %arg30[%c0_75, %c0_76, %c0_77, %c0_78] : memref<1x8x8x1xf32, #tpu.memory_space<vmem>>, vector<1x8x8x1xf32>
    %137 = vector.shape_cast %136 : vector<1x8x8x1xf32> to vector<8x8x1xf32>
    %138 = vector.shape_cast %135 : vector<8x8x1xf32> to vector<1x8x8x1xf32>
    tpu.vector_store %arg30[%c0_75, %c0_76, %c0_77, %c0_78], %138 {strides = array<i32>} : memref<1x8x8x1xf32, #tpu.memory_space<vmem>>, vector<1x8x8x1xf32>,
    %139 = vector.shape_cast %3 : vector<8x1xf32> to vector<1x8x1xf32>
    %cst_79 = arith.constant 1.000000e+00 : f32
    %140 = vector.broadcast %cst_79 : f32 to vector<1x8x1xf32>
    %141 = arith.subf %140, %139 : vector<1x8x1xf32>
    %cst_80 = arith.constant dense<0.000000e+00> : vector<1xf32>
    %142 = vector.multi_reduction <add>, %3, %cst_80 [0] : vector<8x1xf32> to vector<1xf32>
    %143 = vector.shape_cast %142 : vector<1xf32> to vector<1x1xf32>
    %cst_81 = arith.constant dense<0.000000e+00> : vector<8x8xf32>
    %144 = vector.multi_reduction <add>, %99, %cst_81 [1] : vector<8x8x8xf32> to vector<8x8xf32>
    %145 = vector.broadcast %143 : vector<1x1xf32> to vector<8x8xf32>
    %146 = arith.divf %144, %145 : vector<8x8xf32>
    %cst_82 = arith.constant 1.000000e+05 : f32
    %147 = vector.broadcast %cst_82 : f32 to vector<1x8x1xf32>
    %148 = arith.mulf %147, %141 : vector<1x8x1xf32>
    %149 = vector.broadcast %148 : vector<1x8x1xf32> to vector<8x8x8xf32>
    %150 = arith.addf %99, %149 : vector<8x8x8xf32>
    %cst_83 = arith.constant dense<0x7F800000> : vector<8x8xf32>
    %151 = vector.multi_reduction <minimumf>, %150, %cst_83 [1] : vector<8x8x8xf32> to vector<8x8xf32>
    %cst_84 = arith.constant 1.000000e+05 : f32
    %152 = vector.broadcast %cst_84 : f32 to vector<1x8x1xf32>
    %153 = arith.mulf %152, %141 : vector<1x8x1xf32>
    %154 = vector.broadcast %153 : vector<1x8x1xf32> to vector<8x8x8xf32>
    %155 = arith.subf %99, %154 : vector<8x8x8xf32>
    %cst_85 = arith.constant dense<0xFF800000> : vector<8x8xf32>
    %156 = vector.multi_reduction <maximumf>, %155, %cst_85 [1] : vector<8x8x8xf32> to vector<8x8xf32>
    %157 = vector.shape_cast %146 : vector<8x8xf32> to vector<8x1x8xf32>
    %158 = vector.broadcast %157 : vector<8x1x8xf32> to vector<8x8x8xf32>
    %159 = arith.subf %99, %158 : vector<8x8x8xf32>
    %160 = arith.mulf %159, %159 : vector<8x8x8xf32>
    %161 = vector.shape_cast %3 : vector<8x1xf32> to vector<1x8x1xf32>
    %162 = vector.broadcast %161 : vector<1x8x1xf32> to vector<8x8x8xf32>
    %163 = arith.mulf %160, %162 : vector<8x8x8xf32>
    %cst_86 = arith.constant dense<0.000000e+00> : vector<8x8xf32>
    %164 = vector.multi_reduction <add>, %163, %cst_86 [1] : vector<8x8x8xf32> to vector<8x8xf32>
    %165 = vector.broadcast %143 : vector<1x1xf32> to vector<8x8xf32>
    %166 = arith.divf %164, %165 : vector<8x8xf32>
    %167 = tpu.concatenate %146, %151, %156, %166 in 1 : vector<8x8xf32>, vector<8x8xf32>, vector<8x8xf32>, vector<8x8xf32> -> vector<8x32xf32>
    %168 = arith.truncf %167 : vector<8x32xf32> to vector<8x32xbf16>
    %c0_87 = arith.constant 0 : index
    %c0_88 = arith.constant 0 : index
    %169 = vector.load %arg22[%c0_87, %c0_88] : memref<32x16xbf16, #tpu.memory_space<vmem>>, vector<32x16xbf16>
    %cst_89 = arith.constant dense<0.000000e+00> : vector<8x16xf32>
    %170 = tpu.matmul %168, %169, %cst_89 {dimension_numbers = #tpu.dot_dimension_numbers<[1], [0], [0], [1], [0, 0, 1, 1], [], []>} : vector<8x32xbf16>, vector<32x16xbf16>, vector<8x16xf32> -> vector<8x16xf32>
    %c0_90 = arith.constant 0 : index
    %c0_91 = arith.constant 0 : index
    %171 = vector.load %arg23[%c0_90, %c0_91] : memref<1x16xf32, #tpu.memory_space<vmem>>, vector<1x16xf32>
    %172 = vector.broadcast %171 : vector<1x16xf32> to vector<8x16xf32>
    %173 = arith.addf %170, %172 : vector<8x16xf32>
    %c0_92 = arith.constant 0 : index
    %c0_93 = arith.constant 0 : index
    %c0_94 = arith.constant 0 : index
    %174 = vector.load %arg31[%c0_92, %c0_93, %c0_94] : memref<1x8x16xf32, #tpu.memory_space<vmem>>, vector<1x8x16xf32>
    %175 = vector.shape_cast %174 : vector<1x8x16xf32> to vector<8x16xf32>
    %176 = vector.shape_cast %173 : vector<8x16xf32> to vector<1x8x16xf32>
    tpu.vector_store %arg31[%c0_92, %c0_93, %c0_94], %176 {strides = array<i32>} : memref<1x8x16xf32, #tpu.memory_space<vmem>>, vector<1x8x16xf32>,
    %cst_95 = arith.constant dense<0.000000e+00> : vector<8x8xf32>
    %177 = vector.multi_reduction <add>, %42, %cst_95 [1] : vector<8x8x8xf32> to vector<8x8xf32>
    %178 = vector.broadcast %143 : vector<1x1xf32> to vector<8x8xf32>
    %179 = arith.divf %177, %178 : vector<8x8xf32>
    %cst_96 = arith.constant 1.000000e+05 : f32
    %180 = vector.broadcast %cst_96 : f32 to vector<1x8x1xf32>
    %181 = arith.mulf %180, %141 : vector<1x8x1xf32>
    %182 = vector.broadcast %181 : vector<1x8x1xf32> to vector<8x8x8xf32>
    %183 = arith.addf %42, %182 : vector<8x8x8xf32>
    %cst_97 = arith.constant dense<0x7F800000> : vector<8x8xf32>
    %184 = vector.multi_reduction <minimumf>, %183, %cst_97 [1] : vector<8x8x8xf32> to vector<8x8xf32>
    %cst_98 = arith.constant 1.000000e+05 : f32
    %185 = vector.broadcast %cst_98 : f32 to vector<1x8x1xf32>
    %186 = arith.mulf %185, %141 : vector<1x8x1xf32>
    %187 = vector.broadcast %186 : vector<1x8x1xf32> to vector<8x8x8xf32>
    %188 = arith.subf %42, %187 : vector<8x8x8xf32>
    %cst_99 = arith.constant dense<0xFF800000> : vector<8x8xf32>
    %189 = vector.multi_reduction <maximumf>, %188, %cst_99 [1] : vector<8x8x8xf32> to vector<8x8xf32>
    %190 = vector.shape_cast %179 : vector<8x8xf32> to vector<8x1x8xf32>
    %191 = vector.broadcast %190 : vector<8x1x8xf32> to vector<8x8x8xf32>
    %192 = arith.subf %42, %191 : vector<8x8x8xf32>
    %193 = arith.mulf %192, %192 : vector<8x8x8xf32>
    %194 = vector.shape_cast %3 : vector<8x1xf32> to vector<1x8x1xf32>
    %195 = vector.broadcast %194 : vector<1x8x1xf32> to vector<8x8x8xf32>
    %196 = arith.mulf %193, %195 : vector<8x8x8xf32>
    %cst_100 = arith.constant dense<0.000000e+00> : vector<8x8xf32>
    %197 = vector.multi_reduction <add>, %196, %cst_100 [1] : vector<8x8x8xf32> to vector<8x8xf32>
    %198 = vector.broadcast %143 : vector<1x1xf32> to vector<8x8xf32>
    %199 = arith.divf %197, %198 : vector<8x8xf32>
    %200 = tpu.concatenate %179, %184, %189, %199 in 1 : vector<8x8xf32>, vector<8x8xf32>, vector<8x8xf32>, vector<8x8xf32> -> vector<8x32xf32>
    %201 = arith.truncf %200 : vector<8x32xf32> to vector<8x32xbf16>
    %c0_101 = arith.constant 0 : index
    %c0_102 = arith.constant 0 : index
    %202 = vector.load %arg24[%c0_101, %c0_102] : memref<32x16xbf16, #tpu.memory_space<vmem>>, vector<32x16xbf16>
    %cst_103 = arith.constant dense<0.000000e+00> : vector<8x16xf32>
    %203 = tpu.matmul %201, %202, %cst_103 {dimension_numbers = #tpu.dot_dimension_numbers<[1], [0], [0], [1], [0, 0, 1, 1], [], []>} : vector<8x32xbf16>, vector<32x16xbf16>, vector<8x16xf32> -> vector<8x16xf32>
    %c0_104 = arith.constant 0 : index
    %c0_105 = arith.constant 0 : index
    %204 = vector.load %arg25[%c0_104, %c0_105] : memref<1x16xf32, #tpu.memory_space<vmem>>, vector<1x16xf32>
    %205 = vector.broadcast %204 : vector<1x16xf32> to vector<8x16xf32>
    %206 = arith.addf %203, %205 : vector<8x16xf32>
    %c0_106 = arith.constant 0 : index
    %c0_107 = arith.constant 0 : index
    %c0_108 = arith.constant 0 : index
    %207 = vector.load %arg32[%c0_106, %c0_107, %c0_108] : memref<1x8x16xf32, #tpu.memory_space<vmem>>, vector<1x8x16xf32>
    %208 = vector.shape_cast %207 : vector<1x8x16xf32> to vector<8x16xf32>
    %209 = vector.shape_cast %206 : vector<8x16xf32> to vector<1x8x16xf32>
    tpu.vector_store %arg32[%c0_106, %c0_107, %c0_108], %209 {strides = array<i32>} : memref<1x8x16xf32, #tpu.memory_space<vmem>>, vector<1x8x16xf32>,
    return
  }
  func.func @transform_0(%arg0: i32, %arg1: i32) -> (i32, i32, i32, i32) {
    %c0_i32 = arith.constant 0 : i32
    %c0_i32_0 = arith.constant 0 : i32
    %c0_i32_1 = arith.constant 0 : i32
    return %arg0, %arg1, %c0_i32, %c0_i32_0 : i32, i32, i32, i32
  }
  func.func @transform_1(%arg0: i32, %arg1: i32) -> (i32, i32, i32, i32) {
    %c0_i32 = arith.constant 0 : i32
    %c0_i32_0 = arith.constant 0 : i32
    %c0_i32_1 = arith.constant 0 : i32
    return %arg0, %arg1, %c0_i32, %c0_i32_0 : i32, i32, i32, i32
  }
  func.func @transform_2(%arg0: i32, %arg1: i32) -> (i32, i32, i32) {
    %c0_i32 = arith.constant 0 : i32
    %c0_i32_0 = arith.constant 0 : i32
    return %arg0, %arg1, %c0_i32 : i32, i32, i32
  }
  func.func @transform_3(%arg0: i32, %arg1: i32) -> (i32, i32, i32) {
    %c0_i32 = arith.constant 0 : i32
    %c0_i32_0 = arith.constant 0 : i32
    %c0_i32_1 = arith.constant 0 : i32
    return %arg0, %c0_i32, %c0_i32_0 : i32, i32, i32
  }
  func.func @transform_4(%arg0: i32, %arg1: i32) -> (i32, i32, i32) {
    %c0_i32 = arith.constant 0 : i32
    %c0_i32_0 = arith.constant 0 : i32
    %c0_i32_1 = arith.constant 0 : i32
    return %arg0, %c0_i32, %c0_i32_0 : i32, i32, i32
  }
  func.func @transform_5(%arg0: i32, %arg1: i32) -> (i32, i32, i32) {
    %c0_i32 = arith.constant 0 : i32
    %c0_i32_0 = arith.constant 0 : i32
    return %arg0, %arg1, %c0_i32 : i32, i32, i32
  }
  func.func @transform_6(%arg0: i32, %arg1: i32) -> (i32, i32, i32) {
    %c0_i32 = arith.constant 0 : i32
    %c0_i32_0 = arith.constant 0 : i32
    return %arg0, %arg1, %c0_i32 : i32, i32, i32
  }
  func.func @transform_7(%arg0: i32, %arg1: i32) -> (i32, i32, i32) {
    %c0_i32 = arith.constant 0 : i32
    %c0_i32_0 = arith.constant 0 : i32
    %c0_i32_1 = arith.constant 0 : i32
    return %arg0, %c0_i32, %c0_i32_0 : i32, i32, i32
  }
  func.func @transform_8(%arg0: i32, %arg1: i32) -> (i32, i32, i32) {
    %c0_i32 = arith.constant 0 : i32
    %c0_i32_0 = arith.constant 0 : i32
    %c0_i32_1 = arith.constant 0 : i32
    return %arg0, %c0_i32, %c0_i32_0 : i32, i32, i32
  }
  func.func @transform_9(%arg0: i32, %arg1: i32) -> (i32, i32, i32) {
    %c0_i32 = arith.constant 0 : i32
    %c0_i32_0 = arith.constant 0 : i32
    %c0_i32_1 = arith.constant 0 : i32
    return %arg0, %c0_i32, %c0_i32_0 : i32, i32, i32
  }
  func.func @transform_10(%arg0: i32, %arg1: i32) -> (i32, i32) {
    %c0_i32 = arith.constant 0 : i32
    %c0_i32_0 = arith.constant 0 : i32
    %c0_i32_1 = arith.constant 0 : i32
    return %c0_i32, %c0_i32_0 : i32, i32
  }
  func.func @transform_11(%arg0: i32, %arg1: i32) -> (i32, i32) {
    %c0_i32 = arith.constant 0 : i32
    %c0_i32_0 = arith.constant 0 : i32
    %c0_i32_1 = arith.constant 0 : i32
    return %c0_i32, %c0_i32_0 : i32, i32
  }
  func.func @transform_12(%arg0: i32, %arg1: i32) -> (i32, i32) {
    %c0_i32 = arith.constant 0 : i32
    %c0_i32_0 = arith.constant 0 : i32
    %c0_i32_1 = arith.constant 0 : i32
    return %c0_i32, %c0_i32_0 : i32, i32
  }
  func.func @transform_13(%arg0: i32, %arg1: i32) -> (i32, i32) {
    %c0_i32 = arith.constant 0 : i32
    %c0_i32_0 = arith.constant 0 : i32
    %c0_i32_1 = arith.constant 0 : i32
    return %c0_i32, %c0_i32_0 : i32, i32
  }
  func.func @transform_14(%arg0: i32, %arg1: i32) -> (i32, i32) {
    %c0_i32 = arith.constant 0 : i32
    %c0_i32_0 = arith.constant 0 : i32
    %c0_i32_1 = arith.constant 0 : i32
    return %c0_i32, %c0_i32_0 : i32, i32
  }
  func.func @transform_15(%arg0: i32, %arg1: i32) -> (i32, i32) {
    %c0_i32 = arith.constant 0 : i32
    %c0_i32_0 = arith.constant 0 : i32
    %c0_i32_1 = arith.constant 0 : i32
    return %c0_i32, %c0_i32_0 : i32, i32
  }
  func.func @transform_16(%arg0: i32, %arg1: i32) -> (i32, i32) {
    %c0_i32 = arith.constant 0 : i32
    %c0_i32_0 = arith.constant 0 : i32
    %c0_i32_1 = arith.constant 0 : i32
    return %c0_i32, %c0_i32_0 : i32, i32
  }
  func.func @transform_17(%arg0: i32, %arg1: i32) -> (i32, i32) {
    %c0_i32 = arith.constant 0 : i32
    %c0_i32_0 = arith.constant 0 : i32
    %c0_i32_1 = arith.constant 0 : i32
    return %c0_i32, %c0_i32_0 : i32, i32
  }
  func.func @transform_18(%arg0: i32, %arg1: i32) -> (i32, i32) {
    %c0_i32 = arith.constant 0 : i32
    %c0_i32_0 = arith.constant 0 : i32
    %c0_i32_1 = arith.constant 0 : i32
    return %c0_i32, %c0_i32_0 : i32, i32
  }
  func.func @transform_19(%arg0: i32, %arg1: i32) -> (i32, i32) {
    %c0_i32 = arith.constant 0 : i32
    %c0_i32_0 = arith.constant 0 : i32
    %c0_i32_1 = arith.constant 0 : i32
    return %c0_i32, %c0_i32_0 : i32, i32
  }
  func.func @transform_20(%arg0: i32, %arg1: i32) -> (i32, i32) {
    %c0_i32 = arith.constant 0 : i32
    %c0_i32_0 = arith.constant 0 : i32
    %c0_i32_1 = arith.constant 0 : i32
    return %c0_i32, %c0_i32_0 : i32, i32
  }
  func.func @transform_21(%arg0: i32, %arg1: i32) -> (i32, i32) {
    %c0_i32 = arith.constant 0 : i32
    %c0_i32_0 = arith.constant 0 : i32
    %c0_i32_1 = arith.constant 0 : i32
    return %c0_i32, %c0_i32_0 : i32, i32
  }
  func.func @transform_22(%arg0: i32, %arg1: i32) -> (i32, i32) {
    %c0_i32 = arith.constant 0 : i32
    %c0_i32_0 = arith.constant 0 : i32
    %c0_i32_1 = arith.constant 0 : i32
    return %c0_i32, %c0_i32_0 : i32, i32
  }
  func.func @transform_23(%arg0: i32, %arg1: i32) -> (i32, i32) {
    %c0_i32 = arith.constant 0 : i32
    %c0_i32_0 = arith.constant 0 : i32
    %c0_i32_1 = arith.constant 0 : i32
    return %c0_i32, %c0_i32_0 : i32, i32
  }
  func.func @transform_24(%arg0: i32, %arg1: i32) -> (i32, i32, i32, i32) {
    %c0_i32 = arith.constant 0 : i32
    %c0_i32_0 = arith.constant 0 : i32
    %c0_i32_1 = arith.constant 0 : i32
    return %arg0, %arg1, %c0_i32, %c0_i32_0 : i32, i32, i32, i32
  }
  func.func @transform_25(%arg0: i32, %arg1: i32) -> (i32, i32, i32, i32) {
    %c0_i32 = arith.constant 0 : i32
    %c0_i32_0 = arith.constant 0 : i32
    %c0_i32_1 = arith.constant 0 : i32
    return %arg0, %arg1, %c0_i32, %c0_i32_0 : i32, i32, i32, i32
  }
  func.func @transform_26(%arg0: i32, %arg1: i32) -> (i32, i32, i32, i32) {
    %c0_i32 = arith.constant 0 : i32
    %c0_i32_0 = arith.constant 0 : i32
    %c0_i32_1 = arith.constant 0 : i32
    return %arg0, %arg1, %c0_i32, %c0_i32_0 : i32, i32, i32, i32
  }
  func.func @transform_27(%arg0: i32, %arg1: i32) -> (i32, i32, i32, i32) {
    %c0_i32 = arith.constant 0 : i32
    %c0_i32_0 = arith.constant 0 : i32
    %c0_i32_1 = arith.constant 0 : i32
    return %arg0, %arg1, %c0_i32, %c0_i32_0 : i32, i32, i32, i32
  }
  func.func @transform_28(%arg0: i32, %arg1: i32) -> (i32, i32, i32, i32) {
    %c0_i32 = arith.constant 0 : i32
    %c0_i32_0 = arith.constant 0 : i32
    %c0_i32_1 = arith.constant 0 : i32
    return %arg0, %arg1, %c0_i32, %c0_i32_0 : i32, i32, i32, i32
  }
  func.func @transform_29(%arg0: i32, %arg1: i32) -> (i32, i32, i32) {
    %c0_i32 = arith.constant 0 : i32
    %c0_i32_0 = arith.constant 0 : i32
    return %arg0, %arg1, %c0_i32 : i32, i32, i32
  }
  func.func @transform_30(%arg0: i32, %arg1: i32) -> (i32, i32, i32) {
    %c0_i32 = arith.constant 0 : i32
    %c0_i32_0 = arith.constant 0 : i32
    return %arg0, %arg1, %c0_i32 : i32, i32, i32
  }
}

module attributes {stable_mosaic.version = 11 : i64} {
  func.func @_linear_kernel(%arg0: i32, %arg1: memref<16x16xf32, #tpu.memory_space<vmem>>, %arg2: memref<16x16xbf16, #tpu.memory_space<vmem>>, %arg3: memref<1x16xf32, #tpu.memory_space<vmem>>, %arg4: memref<16x16xf32, #tpu.memory_space<vmem>>) attributes {dimension_semantics = [#tpu.dimension_semantics<parallel>], iteration_bounds = array<i64: 1>, scalar_prefetch = 0 : i64, scratch_operands = 0 : i64, tpu.core_type = #tpu.core_type<tc>, window_params = [{transform_indices = @transform_0, window_bounds = array<i64: 16, 16>}, {pipeline_mode = #tpu.pipeline_mode<synchronous>, transform_indices = @transform_1, window_bounds = array<i64: 16, 16>}, {pipeline_mode = #tpu.pipeline_mode<synchronous>, transform_indices = @transform_2, window_bounds = array<i64: 1, 16>}, {transform_indices = @transform_3, window_bounds = array<i64: 16, 16>}]} {
    %c0 = arith.constant 0 : index
    %c0_0 = arith.constant 0 : index
    %0 = vector.load %arg1[%c0, %c0_0] : memref<16x16xf32, #tpu.memory_space<vmem>>, vector<16x16xf32>
    %1 = arith.truncf %0 : vector<16x16xf32> to vector<16x16xbf16>
    %c0_1 = arith.constant 0 : index
    %c0_2 = arith.constant 0 : index
    %2 = vector.load %arg2[%c0_1, %c0_2] : memref<16x16xbf16, #tpu.memory_space<vmem>>, vector<16x16xbf16>
    %cst = arith.constant dense<0.000000e+00> : vector<16x16xf32>
    %3 = tpu.matmul %1, %2, %cst {dimension_numbers = #tpu.dot_dimension_numbers<[1], [0], [0], [1], [0, 0, 1, 1], [], []>} : vector<16x16xbf16>, vector<16x16xbf16>, vector<16x16xf32> -> vector<16x16xf32>
    %c0_3 = arith.constant 0 : index
    %c0_4 = arith.constant 0 : index
    %4 = vector.load %arg3[%c0_3, %c0_4] : memref<1x16xf32, #tpu.memory_space<vmem>>, vector<1x16xf32>
    %5 = vector.broadcast %4 : vector<1x16xf32> to vector<16x16xf32>
    %6 = arith.addf %3, %5 : vector<16x16xf32>
    %c0_5 = arith.constant 0 : index
    %c0_6 = arith.constant 0 : index
    %7 = vector.load %arg4[%c0_5, %c0_6] : memref<16x16xf32, #tpu.memory_space<vmem>>, vector<16x16xf32>
    tpu.vector_store %arg4[%c0_5, %c0_6], %6 {strides = array<i32>} : memref<16x16xf32, #tpu.memory_space<vmem>>, vector<16x16xf32>,
    return
  }
  func.func @transform_0(%arg0: i32) -> (i32, i32) {
    %c0_i32 = arith.constant 0 : i32
    %c0_i32_0 = arith.constant 0 : i32
    return %arg0, %c0_i32 : i32, i32
  }
  func.func @transform_1(%arg0: i32) -> (i32, i32) {
    %c0_i32 = arith.constant 0 : i32
    %c0_i32_0 = arith.constant 0 : i32
    %c0_i32_1 = arith.constant 0 : i32
    return %c0_i32, %c0_i32_0 : i32, i32
  }
  func.func @transform_2(%arg0: i32) -> (i32, i32) {
    %c0_i32 = arith.constant 0 : i32
    %c0_i32_0 = arith.constant 0 : i32
    %c0_i32_1 = arith.constant 0 : i32
    return %c0_i32, %c0_i32_0 : i32, i32
  }
  func.func @transform_3(%arg0: i32) -> (i32, i32) {
    %c0_i32 = arith.constant 0 : i32
    %c0_i32_0 = arith.constant 0 : i32
    return %arg0, %c0_i32 : i32, i32
  }
}

module attributes {stable_mosaic.version = 11 : i64} {
  func.func @_ln_ffn_ln_kernel(%arg0: i32, %arg1: memref<16x16xf32, #tpu.memory_space<vmem>>, %arg2: memref<16x16xf32, #tpu.memory_space<vmem>>, %arg3: memref<16x1xf32, #tpu.memory_space<vmem>>, %arg4: memref<1x16xf32, #tpu.memory_space<vmem>>, %arg5: memref<1x16xf32, #tpu.memory_space<vmem>>, %arg6: memref<16x32xbf16, #tpu.memory_space<vmem>>, %arg7: memref<1x32xf32, #tpu.memory_space<vmem>>, %arg8: memref<32x16xbf16, #tpu.memory_space<vmem>>, %arg9: memref<1x16xf32, #tpu.memory_space<vmem>>, %arg10: memref<1x16xf32, #tpu.memory_space<vmem>>, %arg11: memref<1x16xf32, #tpu.memory_space<vmem>>, %arg12: memref<16x16xf32, #tpu.memory_space<vmem>>) attributes {dimension_semantics = [#tpu.dimension_semantics<parallel>], iteration_bounds = array<i64: 1>, scalar_prefetch = 0 : i64, scratch_operands = 0 : i64, tpu.core_type = #tpu.core_type<tc>, window_params = [{transform_indices = @transform_0, window_bounds = array<i64: 16, 16>}, {transform_indices = @transform_1, window_bounds = array<i64: 16, 16>}, {transform_indices = @transform_2, window_bounds = array<i64: 16, 1>}, {pipeline_mode = #tpu.pipeline_mode<synchronous>, transform_indices = @transform_3, window_bounds = array<i64: 1, 16>}, {pipeline_mode = #tpu.pipeline_mode<synchronous>, transform_indices = @transform_4, window_bounds = array<i64: 1, 16>}, {pipeline_mode = #tpu.pipeline_mode<synchronous>, transform_indices = @transform_5, window_bounds = array<i64: 16, 32>}, {pipeline_mode = #tpu.pipeline_mode<synchronous>, transform_indices = @transform_6, window_bounds = array<i64: 1, 32>}, {pipeline_mode = #tpu.pipeline_mode<synchronous>, transform_indices = @transform_7, window_bounds = array<i64: 32, 16>}, {pipeline_mode = #tpu.pipeline_mode<synchronous>, transform_indices = @transform_8, window_bounds = array<i64: 1, 16>}, {pipeline_mode = #tpu.pipeline_mode<synchronous>, transform_indices = @transform_9, window_bounds = array<i64: 1, 16>}, {pipeline_mode = #tpu.pipeline_mode<synchronous>, transform_indices = @transform_10, window_bounds = array<i64: 1, 16>}, {transform_indices = @transform_11, window_bounds = array<i64: 16, 16>}]} {
    %c0 = arith.constant 0 : index
    %c0_0 = arith.constant 0 : index
    %0 = vector.load %arg1[%c0, %c0_0] : memref<16x16xf32, #tpu.memory_space<vmem>>, vector<16x16xf32>
    %c0_1 = arith.constant 0 : index
    %c0_2 = arith.constant 0 : index
    %1 = vector.load %arg2[%c0_1, %c0_2] : memref<16x16xf32, #tpu.memory_space<vmem>>, vector<16x16xf32>
    %2 = arith.addf %0, %1 : vector<16x16xf32>
    %cst = arith.constant dense<0.000000e+00> : vector<16xf32>
    %3 = vector.multi_reduction <add>, %2, %cst [1] : vector<16x16xf32> to vector<16xf32>
    %4 = vector.shape_cast %3 : vector<16xf32> to vector<16x1xf32>
    %cst_3 = arith.constant 1.600000e+01 : f32
    %5 = vector.broadcast %cst_3 : f32 to vector<16x1xf32>
    %6 = arith.divf %4, %5 : vector<16x1xf32>
    %7 = vector.broadcast %6 : vector<16x1xf32> to vector<16x16xf32>
    %8 = arith.subf %2, %7 : vector<16x16xf32>
    %9 = arith.mulf %8, %8 : vector<16x16xf32>
    %cst_4 = arith.constant dense<0.000000e+00> : vector<16xf32>
    %10 = vector.multi_reduction <add>, %9, %cst_4 [1] : vector<16x16xf32> to vector<16xf32>
    %11 = vector.shape_cast %10 : vector<16xf32> to vector<16x1xf32>
    %cst_5 = arith.constant 1.600000e+01 : f32
    %12 = vector.broadcast %cst_5 : f32 to vector<16x1xf32>
    %13 = arith.divf %11, %12 : vector<16x1xf32>
    %cst_6 = arith.constant 9.99999974E-6 : f32
    %14 = vector.broadcast %cst_6 : f32 to vector<16x1xf32>
    %15 = arith.addf %13, %14 : vector<16x1xf32>
    %16 = math.rsqrt %15 : vector<16x1xf32>
    %17 = vector.broadcast %16 : vector<16x1xf32> to vector<16x16xf32>
    %18 = arith.mulf %8, %17 : vector<16x16xf32>
    %c0_7 = arith.constant 0 : index
    %c0_8 = arith.constant 0 : index
    %19 = vector.load %arg4[%c0_7, %c0_8] : memref<1x16xf32, #tpu.memory_space<vmem>>, vector<1x16xf32>
    %20 = vector.broadcast %19 : vector<1x16xf32> to vector<16x16xf32>
    %21 = arith.mulf %18, %20 : vector<16x16xf32>
    %c0_9 = arith.constant 0 : index
    %c0_10 = arith.constant 0 : index
    %22 = vector.load %arg5[%c0_9, %c0_10] : memref<1x16xf32, #tpu.memory_space<vmem>>, vector<1x16xf32>
    %23 = vector.broadcast %22 : vector<1x16xf32> to vector<16x16xf32>
    %24 = arith.addf %21, %23 : vector<16x16xf32>
    %25 = arith.truncf %24 : vector<16x16xf32> to vector<16x16xbf16>
    %c0_11 = arith.constant 0 : index
    %c0_12 = arith.constant 0 : index
    %26 = vector.load %arg6[%c0_11, %c0_12] : memref<16x32xbf16, #tpu.memory_space<vmem>>, vector<16x32xbf16>
    %cst_13 = arith.constant dense<0.000000e+00> : vector<16x32xf32>
    %27 = tpu.matmul %25, %26, %cst_13 {dimension_numbers = #tpu.dot_dimension_numbers<[1], [0], [0], [1], [0, 0, 1, 1], [], []>} : vector<16x16xbf16>, vector<16x32xbf16>, vector<16x32xf32> -> vector<16x32xf32>
    %c0_14 = arith.constant 0 : index
    %c0_15 = arith.constant 0 : index
    %28 = vector.load %arg7[%c0_14, %c0_15] : memref<1x32xf32, #tpu.memory_space<vmem>>, vector<1x32xf32>
    %29 = vector.broadcast %28 : vector<1x32xf32> to vector<16x32xf32>
    %30 = arith.addf %27, %29 : vector<16x32xf32>
    %cst_16 = arith.constant 0.000000e+00 : f32
    %31 = vector.broadcast %cst_16 : f32 to vector<16x32xf32>
    %32 = arith.maximumf %30, %31 : vector<16x32xf32>
    %33 = arith.truncf %32 : vector<16x32xf32> to vector<16x32xbf16>
    %c0_17 = arith.constant 0 : index
    %c0_18 = arith.constant 0 : index
    %34 = vector.load %arg8[%c0_17, %c0_18] : memref<32x16xbf16, #tpu.memory_space<vmem>>, vector<32x16xbf16>
    %cst_19 = arith.constant dense<0.000000e+00> : vector<16x16xf32>
    %35 = tpu.matmul %33, %34, %cst_19 {dimension_numbers = #tpu.dot_dimension_numbers<[1], [0], [0], [1], [0, 0, 1, 1], [], []>} : vector<16x32xbf16>, vector<32x16xbf16>, vector<16x16xf32> -> vector<16x16xf32>
    %c0_20 = arith.constant 0 : index
    %c0_21 = arith.constant 0 : index
    %36 = vector.load %arg9[%c0_20, %c0_21] : memref<1x16xf32, #tpu.memory_space<vmem>>, vector<1x16xf32>
    %37 = vector.broadcast %36 : vector<1x16xf32> to vector<16x16xf32>
    %38 = arith.addf %35, %37 : vector<16x16xf32>
    %39 = arith.addf %24, %38 : vector<16x16xf32>
    %cst_22 = arith.constant dense<0.000000e+00> : vector<16xf32>
    %40 = vector.multi_reduction <add>, %39, %cst_22 [1] : vector<16x16xf32> to vector<16xf32>
    %41 = vector.shape_cast %40 : vector<16xf32> to vector<16x1xf32>
    %cst_23 = arith.constant 1.600000e+01 : f32
    %42 = vector.broadcast %cst_23 : f32 to vector<16x1xf32>
    %43 = arith.divf %41, %42 : vector<16x1xf32>
    %44 = vector.broadcast %43 : vector<16x1xf32> to vector<16x16xf32>
    %45 = arith.subf %39, %44 : vector<16x16xf32>
    %46 = arith.mulf %45, %45 : vector<16x16xf32>
    %cst_24 = arith.constant dense<0.000000e+00> : vector<16xf32>
    %47 = vector.multi_reduction <add>, %46, %cst_24 [1] : vector<16x16xf32> to vector<16xf32>
    %48 = vector.shape_cast %47 : vector<16xf32> to vector<16x1xf32>
    %cst_25 = arith.constant 1.600000e+01 : f32
    %49 = vector.broadcast %cst_25 : f32 to vector<16x1xf32>
    %50 = arith.divf %48, %49 : vector<16x1xf32>
    %cst_26 = arith.constant 9.99999974E-6 : f32
    %51 = vector.broadcast %cst_26 : f32 to vector<16x1xf32>
    %52 = arith.addf %50, %51 : vector<16x1xf32>
    %53 = math.rsqrt %52 : vector<16x1xf32>
    %54 = vector.broadcast %53 : vector<16x1xf32> to vector<16x16xf32>
    %55 = arith.mulf %45, %54 : vector<16x16xf32>
    %c0_27 = arith.constant 0 : index
    %c0_28 = arith.constant 0 : index
    %56 = vector.load %arg10[%c0_27, %c0_28] : memref<1x16xf32, #tpu.memory_space<vmem>>, vector<1x16xf32>
    %57 = vector.broadcast %56 : vector<1x16xf32> to vector<16x16xf32>
    %58 = arith.mulf %55, %57 : vector<16x16xf32>
    %c0_29 = arith.constant 0 : index
    %c0_30 = arith.constant 0 : index
    %59 = vector.load %arg11[%c0_29, %c0_30] : memref<1x16xf32, #tpu.memory_space<vmem>>, vector<1x16xf32>
    %60 = vector.broadcast %59 : vector<1x16xf32> to vector<16x16xf32>
    %61 = arith.addf %58, %60 : vector<16x16xf32>
    %c0_31 = arith.constant 0 : index
    %c0_32 = arith.constant 0 : index
    %62 = vector.load %arg3[%c0_31, %c0_32] : memref<16x1xf32, #tpu.memory_space<vmem>>, vector<16x1xf32>
    %63 = vector.broadcast %62 : vector<16x1xf32> to vector<16x16xf32>
    %64 = arith.mulf %61, %63 : vector<16x16xf32>
    %c0_33 = arith.constant 0 : index
    %c0_34 = arith.constant 0 : index
    %65 = vector.load %arg12[%c0_33, %c0_34] : memref<16x16xf32, #tpu.memory_space<vmem>>, vector<16x16xf32>
    tpu.vector_store %arg12[%c0_33, %c0_34], %64 {strides = array<i32>} : memref<16x16xf32, #tpu.memory_space<vmem>>, vector<16x16xf32>,
    return
  }
  func.func @transform_0(%arg0: i32) -> (i32, i32) {
    %c0_i32 = arith.constant 0 : i32
    %c0_i32_0 = arith.constant 0 : i32
    return %arg0, %c0_i32 : i32, i32
  }
  func.func @transform_1(%arg0: i32) -> (i32, i32) {
    %c0_i32 = arith.constant 0 : i32
    %c0_i32_0 = arith.constant 0 : i32
    return %arg0, %c0_i32 : i32, i32
  }
  func.func @transform_2(%arg0: i32) -> (i32, i32) {
    %c0_i32 = arith.constant 0 : i32
    %c0_i32_0 = arith.constant 0 : i32
    return %arg0, %c0_i32 : i32, i32
  }
  func.func @transform_3(%arg0: i32) -> (i32, i32) {
    %c0_i32 = arith.constant 0 : i32
    %c0_i32_0 = arith.constant 0 : i32
    %c0_i32_1 = arith.constant 0 : i32
    return %c0_i32, %c0_i32_0 : i32, i32
  }
  func.func @transform_4(%arg0: i32) -> (i32, i32) {
    %c0_i32 = arith.constant 0 : i32
    %c0_i32_0 = arith.constant 0 : i32
    %c0_i32_1 = arith.constant 0 : i32
    return %c0_i32, %c0_i32_0 : i32, i32
  }
  func.func @transform_5(%arg0: i32) -> (i32, i32) {
    %c0_i32 = arith.constant 0 : i32
    %c0_i32_0 = arith.constant 0 : i32
    %c0_i32_1 = arith.constant 0 : i32
    return %c0_i32, %c0_i32_0 : i32, i32
  }
  func.func @transform_6(%arg0: i32) -> (i32, i32) {
    %c0_i32 = arith.constant 0 : i32
    %c0_i32_0 = arith.constant 0 : i32
    %c0_i32_1 = arith.constant 0 : i32
    return %c0_i32, %c0_i32_0 : i32, i32
  }
  func.func @transform_7(%arg0: i32) -> (i32, i32) {
    %c0_i32 = arith.constant 0 : i32
    %c0_i32_0 = arith.constant 0 : i32
    %c0_i32_1 = arith.constant 0 : i32
    return %c0_i32, %c0_i32_0 : i32, i32
  }
  func.func @transform_8(%arg0: i32) -> (i32, i32) {
    %c0_i32 = arith.constant 0 : i32
    %c0_i32_0 = arith.constant 0 : i32
    %c0_i32_1 = arith.constant 0 : i32
    return %c0_i32, %c0_i32_0 : i32, i32
  }
  func.func @transform_9(%arg0: i32) -> (i32, i32) {
    %c0_i32 = arith.constant 0 : i32
    %c0_i32_0 = arith.constant 0 : i32
    %c0_i32_1 = arith.constant 0 : i32
    return %c0_i32, %c0_i32_0 : i32, i32
  }
  func.func @transform_10(%arg0: i32) -> (i32, i32) {
    %c0_i32 = arith.constant 0 : i32
    %c0_i32_0 = arith.constant 0 : i32
    %c0_i32_1 = arith.constant 0 : i32
    return %c0_i32, %c0_i32_0 : i32, i32
  }
  func.func @transform_11(%arg0: i32) -> (i32, i32) {
    %c0_i32 = arith.constant 0 : i32
    %c0_i32_0 = arith.constant 0 : i32
    return %arg0, %c0_i32 : i32, i32
  }
}

module attributes {stable_mosaic.version = 11 : i64} {
  func.func @_ln_ffn_ln_kernel(%arg0: i32, %arg1: memref<128x8xf32, #tpu.memory_space<vmem>>, %arg2: memref<128x8xf32, #tpu.memory_space<vmem>>, %arg3: memref<128x1xf32, #tpu.memory_space<vmem>>, %arg4: memref<1x8xf32, #tpu.memory_space<vmem>>, %arg5: memref<1x8xf32, #tpu.memory_space<vmem>>, %arg6: memref<8x16xbf16, #tpu.memory_space<vmem>>, %arg7: memref<1x16xf32, #tpu.memory_space<vmem>>, %arg8: memref<16x8xbf16, #tpu.memory_space<vmem>>, %arg9: memref<1x8xf32, #tpu.memory_space<vmem>>, %arg10: memref<1x8xf32, #tpu.memory_space<vmem>>, %arg11: memref<1x8xf32, #tpu.memory_space<vmem>>, %arg12: memref<128x8xf32, #tpu.memory_space<vmem>>) attributes {dimension_semantics = [#tpu.dimension_semantics<parallel>], iteration_bounds = array<i64: 1>, scalar_prefetch = 0 : i64, scratch_operands = 0 : i64, tpu.core_type = #tpu.core_type<tc>, window_params = [{transform_indices = @transform_0, window_bounds = array<i64: 128, 8>}, {transform_indices = @transform_1, window_bounds = array<i64: 128, 8>}, {transform_indices = @transform_2, window_bounds = array<i64: 128, 1>}, {pipeline_mode = #tpu.pipeline_mode<synchronous>, transform_indices = @transform_3, window_bounds = array<i64: 1, 8>}, {pipeline_mode = #tpu.pipeline_mode<synchronous>, transform_indices = @transform_4, window_bounds = array<i64: 1, 8>}, {pipeline_mode = #tpu.pipeline_mode<synchronous>, transform_indices = @transform_5, window_bounds = array<i64: 8, 16>}, {pipeline_mode = #tpu.pipeline_mode<synchronous>, transform_indices = @transform_6, window_bounds = array<i64: 1, 16>}, {pipeline_mode = #tpu.pipeline_mode<synchronous>, transform_indices = @transform_7, window_bounds = array<i64: 16, 8>}, {pipeline_mode = #tpu.pipeline_mode<synchronous>, transform_indices = @transform_8, window_bounds = array<i64: 1, 8>}, {pipeline_mode = #tpu.pipeline_mode<synchronous>, transform_indices = @transform_9, window_bounds = array<i64: 1, 8>}, {pipeline_mode = #tpu.pipeline_mode<synchronous>, transform_indices = @transform_10, window_bounds = array<i64: 1, 8>}, {transform_indices = @transform_11, window_bounds = array<i64: 128, 8>}]} {
    %c0 = arith.constant 0 : index
    %c0_0 = arith.constant 0 : index
    %0 = vector.load %arg1[%c0, %c0_0] : memref<128x8xf32, #tpu.memory_space<vmem>>, vector<128x8xf32>
    %c0_1 = arith.constant 0 : index
    %c0_2 = arith.constant 0 : index
    %1 = vector.load %arg2[%c0_1, %c0_2] : memref<128x8xf32, #tpu.memory_space<vmem>>, vector<128x8xf32>
    %2 = arith.addf %0, %1 : vector<128x8xf32>
    %cst = arith.constant dense<0.000000e+00> : vector<128xf32>
    %3 = vector.multi_reduction <add>, %2, %cst [1] : vector<128x8xf32> to vector<128xf32>
    %4 = vector.shape_cast %3 : vector<128xf32> to vector<128x1xf32>
    %cst_3 = arith.constant 8.000000e+00 : f32
    %5 = vector.broadcast %cst_3 : f32 to vector<128x1xf32>
    %6 = arith.divf %4, %5 : vector<128x1xf32>
    %7 = vector.broadcast %6 : vector<128x1xf32> to vector<128x8xf32>
    %8 = arith.subf %2, %7 : vector<128x8xf32>
    %9 = arith.mulf %8, %8 : vector<128x8xf32>
    %cst_4 = arith.constant dense<0.000000e+00> : vector<128xf32>
    %10 = vector.multi_reduction <add>, %9, %cst_4 [1] : vector<128x8xf32> to vector<128xf32>
    %11 = vector.shape_cast %10 : vector<128xf32> to vector<128x1xf32>
    %cst_5 = arith.constant 8.000000e+00 : f32
    %12 = vector.broadcast %cst_5 : f32 to vector<128x1xf32>
    %13 = arith.divf %11, %12 : vector<128x1xf32>
    %cst_6 = arith.constant 9.99999974E-6 : f32
    %14 = vector.broadcast %cst_6 : f32 to vector<128x1xf32>
    %15 = arith.addf %13, %14 : vector<128x1xf32>
    %16 = math.rsqrt %15 : vector<128x1xf32>
    %17 = vector.broadcast %16 : vector<128x1xf32> to vector<128x8xf32>
    %18 = arith.mulf %8, %17 : vector<128x8xf32>
    %c0_7 = arith.constant 0 : index
    %c0_8 = arith.constant 0 : index
    %19 = vector.load %arg4[%c0_7, %c0_8] : memref<1x8xf32, #tpu.memory_space<vmem>>, vector<1x8xf32>
    %20 = vector.broadcast %19 : vector<1x8xf32> to vector<128x8xf32>
    %21 = arith.mulf %18, %20 : vector<128x8xf32>
    %c0_9 = arith.constant 0 : index
    %c0_10 = arith.constant 0 : index
    %22 = vector.load %arg5[%c0_9, %c0_10] : memref<1x8xf32, #tpu.memory_space<vmem>>, vector<1x8xf32>
    %23 = vector.broadcast %22 : vector<1x8xf32> to vector<128x8xf32>
    %24 = arith.addf %21, %23 : vector<128x8xf32>
    %25 = arith.truncf %24 : vector<128x8xf32> to vector<128x8xbf16>
    %c0_11 = arith.constant 0 : index
    %c0_12 = arith.constant 0 : index
    %26 = vector.load %arg6[%c0_11, %c0_12] : memref<8x16xbf16, #tpu.memory_space<vmem>>, vector<8x16xbf16>
    %cst_13 = arith.constant dense<0.000000e+00> : vector<128x16xf32>
    %27 = tpu.matmul %25, %26, %cst_13 {dimension_numbers = #tpu.dot_dimension_numbers<[1], [0], [0], [1], [0, 0, 1, 1], [], []>} : vector<128x8xbf16>, vector<8x16xbf16>, vector<128x16xf32> -> vector<128x16xf32>
    %c0_14 = arith.constant 0 : index
    %c0_15 = arith.constant 0 : index
    %28 = vector.load %arg7[%c0_14, %c0_15] : memref<1x16xf32, #tpu.memory_space<vmem>>, vector<1x16xf32>
    %29 = vector.broadcast %28 : vector<1x16xf32> to vector<128x16xf32>
    %30 = arith.addf %27, %29 : vector<128x16xf32>
    %cst_16 = arith.constant 0.000000e+00 : f32
    %31 = vector.broadcast %cst_16 : f32 to vector<128x16xf32>
    %32 = arith.maximumf %30, %31 : vector<128x16xf32>
    %33 = arith.truncf %32 : vector<128x16xf32> to vector<128x16xbf16>
    %c0_17 = arith.constant 0 : index
    %c0_18 = arith.constant 0 : index
    %34 = vector.load %arg8[%c0_17, %c0_18] : memref<16x8xbf16, #tpu.memory_space<vmem>>, vector<16x8xbf16>
    %cst_19 = arith.constant dense<0.000000e+00> : vector<128x8xf32>
    %35 = tpu.matmul %33, %34, %cst_19 {dimension_numbers = #tpu.dot_dimension_numbers<[1], [0], [0], [1], [0, 0, 1, 1], [], []>} : vector<128x16xbf16>, vector<16x8xbf16>, vector<128x8xf32> -> vector<128x8xf32>
    %c0_20 = arith.constant 0 : index
    %c0_21 = arith.constant 0 : index
    %36 = vector.load %arg9[%c0_20, %c0_21] : memref<1x8xf32, #tpu.memory_space<vmem>>, vector<1x8xf32>
    %37 = vector.broadcast %36 : vector<1x8xf32> to vector<128x8xf32>
    %38 = arith.addf %35, %37 : vector<128x8xf32>
    %39 = arith.addf %24, %38 : vector<128x8xf32>
    %cst_22 = arith.constant dense<0.000000e+00> : vector<128xf32>
    %40 = vector.multi_reduction <add>, %39, %cst_22 [1] : vector<128x8xf32> to vector<128xf32>
    %41 = vector.shape_cast %40 : vector<128xf32> to vector<128x1xf32>
    %cst_23 = arith.constant 8.000000e+00 : f32
    %42 = vector.broadcast %cst_23 : f32 to vector<128x1xf32>
    %43 = arith.divf %41, %42 : vector<128x1xf32>
    %44 = vector.broadcast %43 : vector<128x1xf32> to vector<128x8xf32>
    %45 = arith.subf %39, %44 : vector<128x8xf32>
    %46 = arith.mulf %45, %45 : vector<128x8xf32>
    %cst_24 = arith.constant dense<0.000000e+00> : vector<128xf32>
    %47 = vector.multi_reduction <add>, %46, %cst_24 [1] : vector<128x8xf32> to vector<128xf32>
    %48 = vector.shape_cast %47 : vector<128xf32> to vector<128x1xf32>
    %cst_25 = arith.constant 8.000000e+00 : f32
    %49 = vector.broadcast %cst_25 : f32 to vector<128x1xf32>
    %50 = arith.divf %48, %49 : vector<128x1xf32>
    %cst_26 = arith.constant 9.99999974E-6 : f32
    %51 = vector.broadcast %cst_26 : f32 to vector<128x1xf32>
    %52 = arith.addf %50, %51 : vector<128x1xf32>
    %53 = math.rsqrt %52 : vector<128x1xf32>
    %54 = vector.broadcast %53 : vector<128x1xf32> to vector<128x8xf32>
    %55 = arith.mulf %45, %54 : vector<128x8xf32>
    %c0_27 = arith.constant 0 : index
    %c0_28 = arith.constant 0 : index
    %56 = vector.load %arg10[%c0_27, %c0_28] : memref<1x8xf32, #tpu.memory_space<vmem>>, vector<1x8xf32>
    %57 = vector.broadcast %56 : vector<1x8xf32> to vector<128x8xf32>
    %58 = arith.mulf %55, %57 : vector<128x8xf32>
    %c0_29 = arith.constant 0 : index
    %c0_30 = arith.constant 0 : index
    %59 = vector.load %arg11[%c0_29, %c0_30] : memref<1x8xf32, #tpu.memory_space<vmem>>, vector<1x8xf32>
    %60 = vector.broadcast %59 : vector<1x8xf32> to vector<128x8xf32>
    %61 = arith.addf %58, %60 : vector<128x8xf32>
    %c0_31 = arith.constant 0 : index
    %c0_32 = arith.constant 0 : index
    %62 = vector.load %arg3[%c0_31, %c0_32] : memref<128x1xf32, #tpu.memory_space<vmem>>, vector<128x1xf32>
    %63 = vector.broadcast %62 : vector<128x1xf32> to vector<128x8xf32>
    %64 = arith.mulf %61, %63 : vector<128x8xf32>
    %c0_33 = arith.constant 0 : index
    %c0_34 = arith.constant 0 : index
    %65 = vector.load %arg12[%c0_33, %c0_34] : memref<128x8xf32, #tpu.memory_space<vmem>>, vector<128x8xf32>
    tpu.vector_store %arg12[%c0_33, %c0_34], %64 {strides = array<i32>} : memref<128x8xf32, #tpu.memory_space<vmem>>, vector<128x8xf32>,
    return
  }
  func.func @transform_0(%arg0: i32) -> (i32, i32) {
    %c0_i32 = arith.constant 0 : i32
    %c0_i32_0 = arith.constant 0 : i32
    return %arg0, %c0_i32 : i32, i32
  }
  func.func @transform_1(%arg0: i32) -> (i32, i32) {
    %c0_i32 = arith.constant 0 : i32
    %c0_i32_0 = arith.constant 0 : i32
    return %arg0, %c0_i32 : i32, i32
  }
  func.func @transform_2(%arg0: i32) -> (i32, i32) {
    %c0_i32 = arith.constant 0 : i32
    %c0_i32_0 = arith.constant 0 : i32
    return %arg0, %c0_i32 : i32, i32
  }
  func.func @transform_3(%arg0: i32) -> (i32, i32) {
    %c0_i32 = arith.constant 0 : i32
    %c0_i32_0 = arith.constant 0 : i32
    %c0_i32_1 = arith.constant 0 : i32
    return %c0_i32, %c0_i32_0 : i32, i32
  }
  func.func @transform_4(%arg0: i32) -> (i32, i32) {
    %c0_i32 = arith.constant 0 : i32
    %c0_i32_0 = arith.constant 0 : i32
    %c0_i32_1 = arith.constant 0 : i32
    return %c0_i32, %c0_i32_0 : i32, i32
  }
  func.func @transform_5(%arg0: i32) -> (i32, i32) {
    %c0_i32 = arith.constant 0 : i32
    %c0_i32_0 = arith.constant 0 : i32
    %c0_i32_1 = arith.constant 0 : i32
    return %c0_i32, %c0_i32_0 : i32, i32
  }
  func.func @transform_6(%arg0: i32) -> (i32, i32) {
    %c0_i32 = arith.constant 0 : i32
    %c0_i32_0 = arith.constant 0 : i32
    %c0_i32_1 = arith.constant 0 : i32
    return %c0_i32, %c0_i32_0 : i32, i32
  }
  func.func @transform_7(%arg0: i32) -> (i32, i32) {
    %c0_i32 = arith.constant 0 : i32
    %c0_i32_0 = arith.constant 0 : i32
    %c0_i32_1 = arith.constant 0 : i32
    return %c0_i32, %c0_i32_0 : i32, i32
  }
  func.func @transform_8(%arg0: i32) -> (i32, i32) {
    %c0_i32 = arith.constant 0 : i32
    %c0_i32_0 = arith.constant 0 : i32
    %c0_i32_1 = arith.constant 0 : i32
    return %c0_i32, %c0_i32_0 : i32, i32
  }
  func.func @transform_9(%arg0: i32) -> (i32, i32) {
    %c0_i32 = arith.constant 0 : i32
    %c0_i32_0 = arith.constant 0 : i32
    %c0_i32_1 = arith.constant 0 : i32
    return %c0_i32, %c0_i32_0 : i32, i32
  }
  func.func @transform_10(%arg0: i32) -> (i32, i32) {
    %c0_i32 = arith.constant 0 : i32
    %c0_i32_0 = arith.constant 0 : i32
    %c0_i32_1 = arith.constant 0 : i32
    return %c0_i32, %c0_i32_0 : i32, i32
  }
  func.func @transform_11(%arg0: i32) -> (i32, i32) {
    %c0_i32 = arith.constant 0 : i32
    %c0_i32_0 = arith.constant 0 : i32
    return %arg0, %c0_i32 : i32, i32
  }
}

</mosaic_0001>

<bundles_post_ra>
// kernel: div.29
= control target key start
LH: loop header
LB: loop body
LE: loop exit
PB: predicated region body
PF: predicated region fallthrough
CT: control target
= control target key end

     0   :  { %s37_s0 = inlined_call_operand.vmem [shape: f32[2,16], index: 0, kind: input, shape index: {}]   ;;  %s38_s1 = inlined_call_operand.vmem [shape: f32[2,16], index: 1, kind: input, shape index: {}]   ;;  %s39_s2 = inlined_call_operand.vmem [shape: f32[2,16], index: 2, kind: output, shape index: {}]  }
   0x1   :  { %v4_v0 = vld [vmem:[%s38_s1] sm:$0x3] }
   0x2   :  { %11 = vrcp.f32 %v4_v0  ;;  %v3_v1 = vld [vmem:[%s37_s0] sm:$0x3] }
   0xf   :  { %v12_v2 = vpop.eup %11 }
  0x10   :  { %v8_v3 = vmul.f32 %v12_v2, %v3_v1 }
  0x12   :  { %10 = vst [vmem:[%s39_s2] sm:$0x3] %v8_v3 }

// kernel: div.30
= control target key start
LH: loop header
LB: loop body
LE: loop exit
PB: predicated region body
PF: predicated region fallthrough
CT: control target
= control target key end

     0   :  { %v15_v4 = vmov 0.0   ;;  %s40_s0 = inlined_call_operand.vmem [shape: f32[2,16], index: 0, kind: input, shape index: {}]   ;;  %s41_s1 = inlined_call_operand.vmem [shape: f32[2,16], index: 1, kind: input, shape index: {}]   ;;  %s42_s2 = inlined_call_operand.vmem [shape: bf16[2,16], index: 2, kind: output, shape index: {}]  }
   0x1   :  { %v4_v0 = vld [vmem:[%s41_s1] sm:$0x3] }
   0x2   :  { %13 = vrcp.f32 %v4_v0  ;;  %v3_v1 = vld [vmem:[%s40_s0] sm:$0x3] }
   0xf   :  { %v14_v2 = vpop.eup %13 }
  0x10   :  { %v8_v3 = vmul.f32 %v14_v2, %v3_v1 }
  0x12   :  { %v10_v5 = vpack.c.bf16 %v15_v4, %v8_v3 }
  0x14   :  { %11 = vst [vmem:[%s42_s2] sm:$0x1] %v10_v5 }

// kernel: _lambda_.6
= control target key start
LH: loop header
LB: loop body
LE: loop exit
PB: predicated region body
PF: predicated region fallthrough
CT: control target
= control target key end

     0   :  { %v99_v0 = vmov 0.0   ;;  %vm100_vm0 = vmmov 0   ;;  %vm33_vm1 = vcmask 130048   ;;  %vm78_vm2 = vcmask 523264   ;;  %s139_s1 = inlined_call_operand.vmem [shape: bf16[16,64], index: 1, kind: input, shape index: {}]   ;;  %s140_s0 = inlined_call_operand.vmem [shape: f32[16,16], index: 0, kind: input, shape index: {}]   ;;  %s141_s2 = inlined_call_operand.vmem [shape: f32[1,64], index: 2, kind: input, shape index: {}]   ;;  %s142_s3 = inlined_call_operand.vmem [shape: f32[16,64], index: 3, kind: output, shape index: {}]  }
   0x1   :  { %90 = vmatprep.subr.bf16.mxu0 %v99_v0  ;;  %v98_v1 = vld [vmem:[%s139_s1] sm:$0xff]   ;;  %92 = vmatprep.mubr.msk.bf16.mxu0 %vm100_vm0, %v99_v0  ;;  %v16_v3 = vld [vmem:[%s140_s0 + $0x8] sm:$0xff] }
   0x2   :  { %v15_v2 = vld [vmem:[%s140_s0] sm:$0xff]  ;;  %91 = vmatpush3.bf16.msra.mxu0 %v98_v1 }
   0x3   :  { %v17_v4 = vpack.c.bf16 %v16_v3, %v15_v2  ;;  %v85_v5 = vld [vmem:[%s141_s2] ss:$0 sm:$0xff] }
   0x5   :  { %93 = vmatmul.mubr.msk.bf16.vlgmr.msra.gmra.mxu0 %vm33_vm1, %v17_v4 }
  0xc5   :  { %v71_v6 = vpop.f32.mrf.mxu0 }
  0xc6   :  { %v72_v7 = vadd.f32 %v85_v5, %v71_v6 }
  0xc7   :  { %v94_v8 = vpop.f32.mrf.mxu0 }
  0xc8   :  { %79 = vst.msk [vmem:[%s142_s3] sm:$0xff] %vm78_vm2, %v72_v7 }
  0xc9   :  { %v74_v9 = vpop.f32.mrf.mxu0 }
  0xca   :  { %v75_v10 = vadd.f32 %v85_v5, %v74_v9 }
  0xcb   :  { %v95_v11 = vpop.f32.mrf.mxu0 }
  0xcc   :  { %80 = vst.msk [vmem:[%s142_s3 + $0x8] sm:$0xff] %vm78_vm2, %v75_v10 }

// kernel: _lambda_.8
= control target key start
LH: loop header
LB: loop body
LE: loop exit
PB: predicated region body
PF: predicated region fallthrough
CT: control target
= control target key end

     0   :  { %s1215_s27 = smov 0   ;;  %s1217_s28 = smov 0   ;;  %s1316_s0 = inlined_call_operand.vmem [shape: f32[2,8,16], index: 0, kind: input, shape index: {}]   ;;  %s1317_s1 = inlined_call_operand.vmem [shape: f32[2,8,16], index: 1, kind: input, shape index: {}]   ;;  %s1318_s2 = inlined_call_operand.vmem [shape: f32[2,8,16], index: 2, kind: input, shape index: {}]   ;;  %s1319_s3 = inlined_call_operand.vmem [shape: bf16[2,4,8,8], index: 3, kind: input, shape index: {}]   ;;  %s1320_s4 = inlined_call_operand.vmem [shape: f32[2,1,8], index: 4, kind: input, shape index: {}]   ;;  %s1321_s5 = inlined_call_operand.vmem [shape: f32[4,16], index: 5, kind: input, shape index: {}]   ;;  %s1322_s6 = inlined_call_operand.vmem [shape: bf16[4,16,16], index: 6, kind: input, shape index: {}]   ;;  %s1323_s7 = inlined_call_operand.vmem [shape: f32[1,16], index: 7, kind: input, shape index: {}]   ;;  %s1324_s8 = inlined_call_operand.vmem [shape: f32[2,8,16], index: 8, kind: output, shape index: {}]  }
   0x1   :  { %s1219_s29 = smov 0  }
   0x2 LB: > { %s30_s30 = sadd.s32 1, %s1161_s28  ;;  %p1010_p0 = scmp.ge.s32.totalorder %s1165_s29, 1  ;;  %s1165_s29 = sphi %s1219_s29, %s18_s29   ;;  %s1161_s28 = sphi %s1217_s28, %s1326_s28   ;;  %s1157_s27 = sphi %s1215_s27, %s1325_s27  }
   0x3   : > { %p32_p1 = scmp.ge.s32.totalorder %s30_s30, 2  ;;  %p321_p2 = scmp.lt.s32.totalorder %s1165_s29, 3 }
   0x5   : > { %s1328_s30 = smov (%p32_p1, %s30_s30), 0  ;;  %p322_p3 = pnand %p1010_p0, %p321_p2 }
   0x6   : > { %p378_p4 = scmp.lt.s32.totalorder (!%p322_p3), %s1157_s27, 1 }
   0x7   : > { %325 = sbr.rel (%p322_p3) target bundleno = 959 (0x3bf), region = 52 }
   0xc   : > { %v1017_v0 = vld.sshfl [vmem:[%s1321_s5] sm:$0x33 pattern:$0x75316420]  ;;  %v426_v1 = vlaneseq  ;;  %s1330_s27 = smov (!%p378_p4, %s1157_s27), 1  ;;  %vm467_vm0 = vcmask 130048  }
   0xd   : > { %v1167_v2 = vmov 1966171168   ;;  %s1239_s11 = sshll.u32 %s1330_s27, 3  ;;  %v422_v5 = vcombine.high %v1017_v0, %v1017_v0  ;;  %s1034_s18 = sshll.u32 %s1330_s27, 4  ;;  %vm549_vm1 = vcmask 64512   ;;  %vm604_vm2 = vcmask 1043456  }
   0xe   : > { %v424_v3 = vunpack.c.l.s4 %v1167_v2  ;;  %v427_v4 = vshrl.u32 %v426_v1, 7  ;;  %s388_s14 = scalar_lea.vmem %s1317_s1, %s1239_s11  ;;  %s384_s17 = scalar_lea.vmem %s1316_s0, %s1239_s11  ;;  %vm1169_vm3 = vmmov 0  }
   0xf   : > { %v465_v7 = vld [vmem:[%s388_s14] sm:$0xff]  ;;  %s400_s21 = scalar_lea.vmem %s1319_s3, %s1034_s18  ;;  %s403_s24 = scalar_lea.vmem %s1320_s4, %s1330_s27 }
  0x10   : > { %v425_v6 = vunpack.c.0.s8 %v424_v3  ;;  %v441_v9 = vsub.s32 0, %v427_v4  ;;  %v466_v10 = vpack.c.bf16 %v465_v7, %v465_v7  ;;  %v412_v14 = vld [vmem:[%s384_s17] sm:$0xff]  ;;  %v1043_v27 = vld [vmem:[%s400_s21 + $0x8] sm:$0xff]   ;;  %s392_s27 = scalar_lea.vmem %s1318_s2, %s1239_s11  ;;  %s410_s22 = scalar_lea.vmem %s1324_s8, %s1239_s11 }
  0x11   : > { %v1036_v28 = vld [vmem:[%s400_s21] sm:$0xff]   ;;  %v1041_v29 = vunpack.c.l.bf16 %v1043_v27  ;;  %v1042_v34 = vunpack.c.h.bf16 %v1043_v27 }
  0x12   : > { %v428_v8 = vsub.s32 %v425_v6, %v427_v4  ;;  %1094 = vmatprep.subr.msk.bf16.mxu0 %vm467_vm0, %v466_v10  ;;  %v475_v13 = vsel %vm467_vm0, %v466_v10, 0  ;;  %v1037_v30 = vunpack.c.l.bf16 %v1036_v28  ;;  %v1020_v32 = vld [vmem:[%s403_s24] ss:$0 sm:$0xff]  ;;  %v1038_v38 = vunpack.c.h.bf16 %v1036_v28  ;;  %v1125_v28 = vld [vmem:[%s1322_s6 + $0x10] sm:$0xff]  }
  0x13   : > { %1059 = vmatpush3.bf16.xpose.msra.mxu0 %v475_v13  ;;  %v596_v6 = vld [vmem:[%s392_s27] sm:$0xff] }
  0x14   : > { %v429_v11 = vrot.slane %v1017_v0, %v428_v8  ;;  %v436_v12 = vrot.slane %v422_v5, %v428_v8  ;;  %v597_v7 = vpack.c.bf16 %v596_v6, %v596_v6 }
  0x16   : > { %v437_v15 = vcombine.high %v429_v11, %v429_v11  ;;  %v438_v16 = vcombine.high %v436_v12, %v436_v12  ;;  %v442_v17 = vrot.slane %v429_v11, %v441_v9  ;;  %v446_v18 = vrot.slane %v436_v12, %v441_v9  ;;  %1095 = vmatprep.subr.msk.bf16.mxu1 %vm604_vm2, %v597_v7 }
  0x17   : > { %v606_v8 = vsel %vm604_vm2, %v597_v7, 0 }
  0x18   : > { %v459_v19 = vmul.f32 %v442_v17, %v412_v14  ;;  %v460_v20 = vmul.f32 %v446_v18, %v412_v14  ;;  %v450_v21 = vrot.slane %v437_v15, %v441_v9  ;;  %v454_v22 = vrot.slane %v438_v16, %v441_v9  ;;  %1065 = vmatpush3.bf16.msra.mxu1 %v606_v8 }
  0x19   : > { %v1168_v9 = vmov 0.0  }
  0x1a   : > { %v463_v23 = vpack.c.bf16 %v460_v20, %v459_v19  ;;  %v461_v24 = vmul.f32 %v450_v21, %v412_v14  ;;  %v462_v25 = vmul.f32 %v454_v22, %v412_v14  ;;  %1070 = vmatprep.subr.bf16.mxu1 %v1168_v9  ;;  %1076 = vmatprep.subr.bf16.mxu0 %v1168_v9 }
  0x1c   : > { %1060 = vmatprep.mubr.msk.bf16.mxu0 %vm467_vm0, %v463_v23  ;;  %v464_v26 = vpack.c.bf16 %v462_v25, %v461_v24  ;;  %v1123_v23 = vld [vmem:[%s1322_s6] sm:$0xff]   ;;  %v1124_v25 = vld [vmem:[%s1322_s6 + $0x8] sm:$0xff]  }
  0x1e   : > { %1061 = vmatmul.mubr.msk.bf16.vlgmr.msra.gmra.mxu0 %vm467_vm0, %v464_v26 }
  0x1f   : > { %1077 = vmatpush3.bf16.msra.mxu0 %v1124_v25  ;;  %1078 = vmatprep.mubr.msk.bf16.mxu0 %vm1169_vm3, %v1168_v9 }
  0x20   : > { %1088 = vmatprep.subr.bf16.mxu0 %v1168_v9 }
  0xde   : > { %v1062_v31 = vpop.f32.mrf.mxu0 }
  0xdf   : > { %v536_v33 = vmul.f32 %v1062_v31, %v1041_v29 }
  0xe0   : > { %v511_v35 = vpop.f32.mrf.mxu0 }
  0xe1   : > { %v534_v36 = vmul.f32 %v1037_v30, %v511_v35  ;;  %v547_v37 = vadd.f32 %v1020_v32, %v536_v33 }
  0xe2   : > { %v1063_v39 = vpop.f32.mrf.mxu0 }
  0xe3   : > { %v537_v40 = vmul.f32 %v1063_v39, %v1042_v34  ;;  %v556_v41 = vsel %vm549_vm1, %v547_v37, -inf  ;;  %v545_v42 = vadd.f32 %v1020_v32, %v534_v36 }
  0xe4   : > { %557 = vmax.xlane.f32.xlu1 %v556_v41  ;;  %v514_v43 = vpop.f32.mrf.mxu0 }
  0xe5   : > { %v535_v44 = vmul.f32 %v1038_v38, %v514_v43  ;;  %v550_v45 = vsel %vm549_vm1, %v545_v42, -inf  ;;  %v548_v46 = vadd.f32 %v1020_v32, %v537_v40 }
  0xe6   : > { %551 = vmax.xlane.f32.xlu0 %v550_v45 }
  0xe7   : > { %v559_v47 = vsel %vm549_vm1, %v548_v46, -inf  ;;  %v546_v48 = vadd.f32 %v1020_v32, %v535_v44  ;;  %v1126_v32 = vld [vmem:[%s1322_s6 + $0x18] sm:$0xff]  }
  0xe8   : > { %560 = vmax.xlane.f32.xlu1 %v559_v47 }
  0xe9   : > { %v553_v49 = vsel %vm549_vm1, %v546_v48, -inf }
  0xea   : > { %554 = vmax.xlane.f32.xlu0 %v553_v49 }
 0x16d   : > { %v558_v50 = vpop.xlane.xlu1 %557 }
 0x16e   : > { %v564_v51 = vsub.f32 %v547_v37, %v558_v50 }
 0x16f   : > { %v552_v52 = vpop.xlane.xlu0 %551 }
 0x170   : > { %v562_v53 = vsub.f32 %v545_v42, %v552_v52  ;;  %v570_v55 = vmul.f32 1.442695, %v564_v51 }
 0x171   : > { %v561_v54 = vpop.xlane.xlu1 %560 }
 0x172   : > { %v566_v56 = vmul.f32 1.442695, %v562_v53  ;;  %v565_v57 = vsub.f32 %v548_v46, %v561_v54  ;;  %v1031_v54 = vld [vmem:[%s1323_s7] ss:$0 sm:$0xff] }
 0x173   : > { %v555_v58 = vpop.xlane.xlu0 %554 }
 0x174   : > { %1127 = vpow2.f32 %v566_v56  ;;  %v563_v59 = vsub.f32 %v546_v48, %v555_v58  ;;  %v572_v60 = vmul.f32 1.442695, %v565_v57 }
 0x175   : > { %1129 = vpow2.f32 %v570_v55 }
 0x176   : > { %v568_v61 = vmul.f32 1.442695, %v563_v59 }
 0x178   : > { %1131 = vpow2.f32 %v568_v61 }
 0x179   : > { %1133 = vpow2.f32 %v572_v60 }
 0x181   : > { %v1128_v62 = vpop.eup %1127 }
 0x182   : > { %v574_v63 = vsel %vm549_vm1, %v1128_v62, 0.0  ;;  %v1130_v0 = vpop.eup %1129 }
 0x183   : > { %575 = vadd.xlane.f32.xlu0 %v574_v63  ;;  %v580_v2 = vsel %vm549_vm1, %v1130_v0, 0.0 }
 0x185   : > { %v1132_v1 = vpop.eup %1131 }
 0x186   : > { %v577_v3 = vsel %vm549_vm1, %v1132_v1, 0.0  ;;  %v1134_v4 = vpop.eup %1133 }
 0x187   : > { %581 = vadd.xlane.f32.xlu0 %v580_v2  ;;  %578 = vadd.xlane.f32.xlu1 %v577_v3  ;;  %v583_v5 = vsel %vm549_vm1, %v1134_v4, 0.0 }
 0x18b   : > { %584 = vadd.xlane.f32.xlu1 %v583_v5 }
 0x20c   : > { %v576_v10 = vpop.xlane.xlu0 %575 }
 0x20d   : > { %1135 = vrcp.f32 %v576_v10 }
 0x210   : > { %v579_v11 = vpop.xlane.xlu1 %578  ;;  %v582_v12 = vpop.xlane.xlu0 %581 }
 0x211   : > { %1137 = vrcp.f32 %v579_v11 }
 0x212   : > { %1139 = vrcp.f32 %v582_v12 }
 0x214   : > { %v585_v13 = vpop.xlane.xlu1 %584 }
 0x215   : > { %1141 = vrcp.f32 %v585_v13 }
 0x21a   : > { %v1136_v14 = vpop.eup %1135 }
 0x21b   : > { %v590_v16 = vmul.f32 %v1136_v14, %v1128_v62 }
 0x21e   : > { %v1138_v15 = vpop.eup %1137 }
 0x21f   : > { %v591_v17 = vmul.f32 %v1138_v15, %v1132_v1  ;;  %v1140_v18 = vpop.eup %1139 }
 0x220   : > { %v592_v21 = vmul.f32 %v1140_v18, %v1130_v0 }
 0x221   : > { %v594_v19 = vpack.c.bf16 %v591_v17, %v590_v16 }
 0x222   : > { %v1142_v20 = vpop.eup %1141 }
 0x223   : > { %1066 = vmatprep.mubr.msk.bf16.mxu1 %vm549_vm1, %v594_v19  ;;  %v593_v22 = vmul.f32 %v1142_v20, %v1134_v4 }
 0x225   : > { %v595_v24 = vpack.c.bf16 %v593_v22, %v592_v21 }
 0x227   : > { %1067 = vmatmul.mubr.msk.bf16.vlgmr.msra.gmra.mxu1 %vm549_vm1, %v595_v24 }
 0x228   : > { %1071 = vmatpush3.bf16.msra.mxu1 %v1123_v23  ;;  %1072 = vmatprep.mubr.msk.bf16.mxu1 %vm1169_vm3, %v1168_v9 }
 0x229   : > { %1082 = vmatprep.subr.bf16.mxu1 %v1168_v9 }
 0x2e7   : > { %v1068_v26 = vpop.f32.mrf.mxu1 }
 0x2e8   : > { %v659_v34 = vpack.c.bf16 %v1068_v26, %v1068_v26 }
 0x2e9   : > { %v642_v27 = vpop.f32.mrf.mxu1 }
 0x2ea   : > { %v657_v29 = vpack.c.bf16 %v642_v27, %v642_v27 }
 0x2eb   : > { %v1069_v30 = vpop.f32.mrf.mxu1 }
 0x2ec   : > { %1073 = vmatmul.mubr.msk.bf16.vlgmr.msra.gmra.mxu1 %vm467_vm0, %v657_v29  ;;  %v660_v35 = vpack.c.bf16 %v1069_v30, %v1069_v30 }
 0x2ed   : > { %v645_v31 = vpop.f32.mrf.mxu1  ;;  %1083 = vmatpush3.bf16.msra.mxu1 %v1125_v28  ;;  %1084 = vmatprep.mubr.msk.bf16.mxu1 %vm1169_vm3, %v1168_v9 }
 0x2ee   : > { %v658_v33 = vpack.c.bf16 %v645_v31, %v645_v31 }
 0x2f0   : > { %1079 = vmatmul.mubr.msk.bf16.vlgmr.msra.gmra.mxu0 %vm467_vm0, %v658_v33 }
 0x2f1   : > { %1089 = vmatpush3.bf16.msra.mxu0 %v1126_v32  ;;  %1090 = vmatprep.mubr.msk.bf16.mxu0 %vm1169_vm3, %v1168_v9 }
 0x2f4   : > { %1085 = vmatmul.mubr.msk.bf16.vlgmr.msra.gmra.mxu1 %vm467_vm0, %v659_v34 }
 0x2f8   : > { %1091 = vmatmul.mubr.msk.bf16.vlgmr.msra.gmra.mxu0 %vm467_vm0, %v660_v35 }
 0x3ac   : > { %v712_v36 = vpop.f32.mrf.mxu1 }
 0x3ad   : > { %v865_v45 = vsel %vm467_vm0, %v712_v36, 0.0 }
 0x3ae   : > { %v1074_v37 = vpop.f32.mrf.mxu1 }
 0x3b0   : > { %v715_v38 = vpop.f32.mrf.mxu1  ;;  %v761_v39 = vpop.f32.mrf.mxu0 }
 0x3b1   : > { %v866_v42 = vsel %vm467_vm0, %v761_v39, 0.0 }
 0x3b2   : > { %v1075_v40 = vpop.f32.mrf.mxu1  ;;  %v1080_v41 = vpop.f32.mrf.mxu0  ;;  %v867_v47 = vadd.f32 %v866_v42, %v865_v45 }
 0x3b4   : > { %v764_v43 = vpop.f32.mrf.mxu0  ;;  %v810_v44 = vpop.f32.mrf.mxu1 }
 0x3b5   : > { %v868_v46 = vsel %vm467_vm0, %v810_v44, 0.0 }
 0x3b6   : > { %v1081_v48 = vpop.f32.mrf.mxu0  ;;  %v1086_v49 = vpop.f32.mrf.mxu1  ;;  %v869_v50 = vadd.f32 %v868_v46, %v867_v47 }
 0x3b8   : > { %v813_v51 = vpop.f32.mrf.mxu1  ;;  %v859_v52 = vpop.f32.mrf.mxu0 }
 0x3b9   : > { %v870_v53 = vsel %vm467_vm0, %v859_v52, 0.0 }
 0x3ba   : > { %v871_v55 = vadd.f32 %v870_v53, %v869_v50  ;;  %v1087_v56 = vpop.f32.mrf.mxu1  ;;  %v1092_v57 = vpop.f32.mrf.mxu0 }
 0x3bc   : > { %v879_v58 = vadd.f32 %v1031_v54, %v871_v55  ;;  %v862_v59 = vpop.f32.mrf.mxu0 }
 0x3be   : > { %880 = vst.msk [vmem:[%s410_s22] sm:$0xff] %vm467_vm0, %v879_v58  ;;  %v1093_v60 = vpop.f32.mrf.mxu0 }
 0x3bf PF: > { %s18_s29 = sadd.s32 1, %s1165_s29   ;;  %s1325_s27 = smov %s1161_s28 }
 0x3c0   : > { %p15_p5 = scmp.ge.s32.totalorder %s18_s29, 4   ;;  %s1326_s28 = smov %s1328_s30 }
 0x3c2   :  { %17 = sbr.rel (!%p15_p5) target bundleno = 2 (0x2), region = 94 }

// kernel: _lambda_.9
= control target key start
LH: loop header
LB: loop body
LE: loop exit
PB: predicated region body
PF: predicated region fallthrough
CT: control target
= control target key end

     0   :  { %v98_v0 = vmov 0.0   ;;  %vm99_vm0 = vmmov 0   ;;  %vm33_vm1 = vcmask 130048   ;;  %s138_s1 = inlined_call_operand.vmem [shape: bf16[16,16], index: 1, kind: input, shape index: {}]   ;;  %s139_s0 = inlined_call_operand.vmem [shape: f32[16,16], index: 0, kind: input, shape index: {}]   ;;  %s140_s2 = inlined_call_operand.vmem [shape: f32[1,16], index: 2, kind: input, shape index: {}]   ;;  %s141_s3 = inlined_call_operand.vmem [shape: f32[16,16], index: 3, kind: output, shape index: {}]  }
   0x1   :  { %89 = vmatprep.subr.bf16.mxu0 %v98_v0  ;;  %v97_v1 = vld [vmem:[%s138_s1] sm:$0xff]   ;;  %91 = vmatprep.mubr.msk.bf16.mxu0 %vm99_vm0, %v98_v0  ;;  %v16_v3 = vld [vmem:[%s139_s0 + $0x8] sm:$0xff] }
   0x2   :  { %v15_v2 = vld [vmem:[%s139_s0] sm:$0xff]  ;;  %90 = vmatpush3.bf16.msra.mxu0 %v97_v1 }
   0x3   :  { %v17_v4 = vpack.c.bf16 %v16_v3, %v15_v2  ;;  %v84_v5 = vld [vmem:[%s140_s2] ss:$0 sm:$0xff] }
   0x5   :  { %92 = vmatmul.mubr.msk.bf16.vlgmr.msra.gmra.mxu0 %vm33_vm1, %v17_v4 }
  0xc5   :  { %v71_v6 = vpop.f32.mrf.mxu0 }
  0xc6   :  { %v72_v7 = vadd.f32 %v84_v5, %v71_v6 }
  0xc7   :  { %v93_v8 = vpop.f32.mrf.mxu0 }
  0xc8   :  { %78 = vst.msk [vmem:[%s141_s3] sm:$0xff] %vm33_vm1, %v72_v7 }
  0xc9   :  { %v74_v9 = vpop.f32.mrf.mxu0 }
  0xca   :  { %v75_v10 = vadd.f32 %v84_v5, %v74_v9 }
  0xcb   :  { %v94_v11 = vpop.f32.mrf.mxu0 }
  0xcc   :  { %79 = vst.msk [vmem:[%s141_s3 + $0x8] sm:$0xff] %vm33_vm1, %v75_v10 }

// kernel: _lambda_.7
= control target key start
LH: loop header
LB: loop body
LE: loop exit
PB: predicated region body
PF: predicated region fallthrough
CT: control target
= control target key end

     0   :  { %s4179_s6 = smov 1   ;;  %s4180_s10 = smov 2   ;;  %s5404_s0 = inlined_call_operand.smem [shape: u32[31], index: -1, kind: input, shape index: {}] }
   0x1   :  { %s4226_s5 = sld [smem:[%s5404_s0]]   ;;  %s4181_s14 = smov 3  }
   0x2   :  { %s4231_s9 = sld [smem:[%s5404_s0 + %s4179_s6]]   ;;  %s4182_s18 = smov 4  }
   0x3   :  { %s4236_s13 = sld [smem:[%s5404_s0 + %s4180_s10]]   ;;  %s4183_s22 = smov 5  }
   0x4   :  { %s4241_s17 = sld [smem:[%s5404_s0 + %s4181_s14]]   ;;  %s4184_s26 = smov 6  }
   0x5   :  { %s4246_s21 = sld [smem:[%s5404_s0 + %s4182_s18]]   ;;  %s4185_s30 = smov 7  }
   0x6   :  { %s4251_s25 = sld [smem:[%s5404_s0 + %s4183_s22]]   ;;  %s4186_s4 = smov 8  }
   0x7   :  { %s4256_s29 = sld [smem:[%s5404_s0 + %s4184_s26]]   ;;  %s4187_s10 = smov 9  }
   0x8   :  { %s4261_s3 = sld [smem:[%s5404_s0 + %s4185_s30]]   ;;  %s4188_s15 = smov 10  }
   0x9   :  { %s4266_s8 = sld [smem:[%s5404_s0 + %s4186_s4]]   ;;  %s4189_s20 = smov 11  }
   0xa   :  { %s4271_s14 = sld [smem:[%s5404_s0 + %s4187_s10]]   ;;  %s4190_s26 = smov 12  }
   0xb   :  { %5446 = sst [smem:[#allocation2_spill]] %s4246_s21  ;;  %s4191_s1 = smov 13  }
   0xc   :  { %5447 = sst [smem:[#allocation3_spill]] %s4251_s25  ;;  %s4192_s7 = smov 14  }
   0xd   :  { %s4276_s19 = sld [smem:[%s5404_s0 + %s4188_s15]]   ;;  %s4193_s15 = smov 15  }
   0xe   :  { %s4281_s24 = sld [smem:[%s5404_s0 + %s4189_s20]]   ;;  %s4194_s22 = smov 16  }
   0xf   :  { %5448 = sst [smem:[#allocation4_spill]] %s4266_s8  ;;  %s4195_s28 = smov 17  }
  0x10   :  { %5449 = sst [smem:[#allocation5_spill]] %s4271_s14  ;;  %s4380_s16 = smov 0  }
  0x11   :  { %s4286_s30 = sld [smem:[%s5404_s0 + %s4190_s26]]   ;;  %s4382_s18 = smov 0  }
  0x12   :  { %s4291_s6 = sld [smem:[%s5404_s0 + %s4191_s1]]  }
  0x13   :  { %s4296_s12 = sld [smem:[%s5404_s0 + %s4192_s7]]   ;;  %s4196_s7 = smov 18  }
  0x14   :  { %s4301_s20 = sld [smem:[%s5404_s0 + %s4193_s15]]   ;;  %s4197_s15 = smov 19  }
  0x15   :  { %s4306_s27 = sld [smem:[%s5404_s0 + %s4194_s22]]   ;;  %s4198_s22 = smov 20  }
  0x16   :  { %s4311_s4 = sld [smem:[%s5404_s0 + %s4195_s28]]   ;;  %s4199_s28 = smov 21  }
  0x17   :  { %s4316_s14 = sld [smem:[%s5404_s0 + %s4196_s7]]   ;;  %s4200_s7 = smov 22  }
  0x18   :  { %5450 = sst [smem:[#allocation6_spill]] %s4291_s6 }
  0x19   :  { %s4321_s8 = sld [smem:[%s5404_s0 + %s4197_s15]]   ;;  %s4201_s15 = smov 23  }
  0x1a   :  { %s4326_s21 = sld [smem:[%s5404_s0 + %s4198_s22]]   ;;  %s4202_s22 = smov 24  }
  0x1b   :  { %s4336_s6 = sld [smem:[%s5404_s0 + %s4200_s7]]   ;;  %s4204_s7 = smov 26  }
  0x1c   :  { %5451 = sst [smem:[#allocation7_spill]] %s4311_s4 }
  0x1d   :  { %s4331_s4 = sld [smem:[%s5404_s0 + %s4199_s28]]   ;;  %s4203_s28 = smov 25  }
  0x1f   :  { %5452 = sst [smem:[#allocation8_spill]] %s4321_s8 }
  0x20   :  { %5453 = sst [smem:[#allocation9_spill]] %s4326_s21 }
  0x21   :  { %5455 = sst [smem:[#allocation11_spill]] %s4336_s6 }
  0x22   :  { %s4341_s8 = sld [smem:[%s5404_s0 + %s4201_s15]]   ;;  %s4205_s15 = smov 27  }
  0x23   :  { %5454 = sst [smem:[#allocation10_spill]] %s4331_s4 }
  0x24   :  { %s4346_s21 = sld [smem:[%s5404_s0 + %s4202_s22]]   ;;  %s4206_s22 = smov 28  }
  0x25   :  { %s4351_s4 = sld [smem:[%s5404_s0 + %s4203_s28]]   ;;  %s4207_s28 = smov 29  }
  0x26   :  { %s4356_s6 = sld [smem:[%s5404_s0 + %s4204_s7]]   ;;  %s4208_s7 = smov 30  }
  0x27   :  { %s4371_s25 = sld [smem:[%s5404_s0 + %s4207_s28]]  }
  0x28   :  { %5456 = sst [smem:[#allocation12_spill]] %s4341_s8 }
  0x29   :  { %s4361_s8 = sld [smem:[%s5404_s0 + %s4205_s15]]   ;;  %s4378_s15 = smov 0  }
  0x2a   :  { %5457 = sst [smem:[#allocation13_spill]] %s4346_s21 }
  0x2b   :  { %s4366_s21 = sld [smem:[%s5404_s0 + %s4206_s22]]  }
  0x2c   :  { %5458 = sst [smem:[#allocation14_spill]] %s4356_s6 }
  0x2d   :  { %s4376_s6 = sld [smem:[%s5404_s0 + %s4208_s7]]  }
  0x2e LB: > { %s84_s0 = sadd.s32 1, %s4173_s16  ;;  %p3894_p0 = scmp.ge.s32.totalorder %s4177_s18, 1  ;;  %s4177_s18 = sphi %s4382_s18, %s72_s18   ;;  %s4173_s16 = sphi %s4380_s16, %s5554_s16   ;;  %s4169_s15 = sphi %s4378_s15, %s5553_s15  }
  0x2f   : > { %p86_p1 = scmp.ge.s32.totalorder %s84_s0, 2  ;;  %p991_p2 = scmp.lt.s32.totalorder %s4177_s18, 3 }
  0x31   : > { %s5556_s0 = smov (%p86_p1, %s84_s0), 0  ;;  %p992_p3 = pnand %p3894_p0, %p991_p2 }
  0x33   : > { %995 = sbr.rel (%p992_p3) target bundleno = 1040 (0x410), region = 116 }
  0x38   : > { %v1712_v0 = vld [vmem:[%s4286_s30] sm:$0xf]  ;;  %vm1732_vm0 = vcmask 1043456   ;;  %p1176_p4 = scmp.lt.s32.totalorder %s4169_s15, 1  ;;  %v4209_v1 = vmov 1   ;;  %v1306_v5 = vlaneseq  ;;  %vm1691_vm1 = vcmask 64512  }
  0x39   : > { %4055 = vmatprep.subr.msk.bf16.mxu0 %vm1732_vm0, %v1712_v0  ;;  %4124 = vset.pattern.permute.xlu0 %v4209_v1  ;;  %v1734_v2 = vsel %vm1732_vm0, %v1712_v0, 0  ;;  %v4210_v3 = vmov 1966171168   ;;  %v4211_v26 = vmov 0   ;;  %v1921_v56 = vld [vmem:[%s4296_s12] sm:$0xf] }
  0x3a   : > { %4122 = vset.pattern.permute.xlu1 %v4209_v1  ;;  %4000 = vmatpush3.bf16.msra.mxu0 %v1734_v2  ;;  %s5558_s15 = smov (!%p1176_p4, %s4169_s15), 1  ;;  %v1304_v4 = vunpack.c.l.s4 %v4210_v3  ;;  %v4418_v15 = vshrl.u32 %v1306_v5, 7  ;;  %v1942_v60 = vsel %vm1732_vm0, %v1921_v56, 0  ;;  %vm2488_vm2 = vcmask 7168  }
  0x3b   : > { %s4404_s22 = sshll.u32 %s5558_s15, 6  ;;  %s4415_s28 = sshll.u32 %s5558_s15, 3  ;;  %4056 = vmatprep.subr.msk.bf16.mxu1 %vm1732_vm0, %v1921_v56  ;;  %vm2810_vm3 = vcmask 1041409   ;;  %vm2812_vm4 = vcmask 1042434   ;;  %vm2814_vm5 = vcmask 1043459   ;;  %vm2816_vm6 = vcmask 1044484  }
  0x3c   : > { %s4408_s23 = scalar_lea.vmem %s4231_s9, %s4404_s22  ;;  %s1183_s26 = scalar_lea.vmem %s4226_s5, %s4404_s22  ;;  %v1305_v14 = vunpack.c.0.s8 %v1304_v4  ;;  %v4436_v33 = vsub.s32 0, %v4418_v15  ;;  %4010 = vmatpush3.bf16.msra.mxu1 %v1942_v60  ;;  %vm2818_vm7 = vcmask 1045509   ;;  %vm2820_vm8 = vcmask 1046534  }
  0x3d   : > { %v1401_v6 = vld [vmem:[%s4408_s23 + $0x10] sm:$0xff]  ;;  %v1399_v7 = vld [vmem:[%s4408_s23] sm:$0xff]  ;;  %v1701_v9 = vld [vmem:[%s1183_s26 + $0x8] sm:$0xff]  ;;  %s1223_s1 = scalar_lea.vmem %s4256_s29, %s4415_s28  ;;  %s1227_s2 = scalar_lea.vmem %s4261_s3, %s4415_s28  ;;  %vm2822_vm9 = vcmask 1047559   ;;  %vm4216_vm10 = vmmov 0   ;;  %vm2880_vm11 = vcmask 130048  }
  0x3e   : > { %1469 = vperm.xlu0 %4124, %v1401_v6   ;;  %1461 = vperm.xlu1 %4122, %v1399_v7   ;;  %v1700_v8 = vld [vmem:[%s1183_s26] sm:$0xff]  ;;  %v1702_v10 = vld [vmem:[%s1183_s26 + $0x10] sm:$0xff]  ;;  %v1703_v12 = vld [vmem:[%s1183_s26 + $0x18] sm:$0xff]  ;;  %v4427_v23 = vsub.s32 %v1305_v14, %v4418_v15  ;;  %s1201_s7 = scalar_lea.vmem %s4236_s13, %s4415_s28  ;;  %s1205_s10 = scalar_lea.vmem %s4241_s17, %s4415_s28  ;;  %vm2882_vm12 = vcmask 195584   ;;  %vm2908_vm13 = vcmask 261120   ;;  %vm2347_vm14 = vcmask 27648  }
  0x3f   : > { %v1708_v11 = vpack.c.bf16 %v1701_v9, %v1700_v8  ;;  %v1405_v13 = vld [vmem:[%s4408_s23 + $0x30] sm:$0xff]  ;;  %v1709_v16 = vpack.c.bf16 %v1703_v12, %v1702_v10  ;;  %v1400_v17 = vld [vmem:[%s4408_s23 + $0x8] sm:$0xff]  ;;  %v1704_v18 = vld [vmem:[%s1183_s26 + $0x20] sm:$0xff]  ;;  %s4510_s11 = scalar_lea.vmem %s4351_s4, %s4404_s22 }
  0x40   : > { %v1705_v19 = vld [vmem:[%s1183_s26 + $0x28] sm:$0xff]  ;;  %v1706_v21 = vld [vmem:[%s1183_s26 + $0x30] sm:$0xff]  ;;  %v1707_v22 = vld [vmem:[%s1183_s26 + $0x38] sm:$0xff]  ;;  %s5478_s26 = sld [smem:[#allocation3_spill]] }
  0x41   : > { %4001 = vmatprep.mubr.msk.bf16.mxu0 %vm1691_vm1, %v1708_v11  ;;  %v1710_v20 = vpack.c.bf16 %v1705_v19, %v1704_v18  ;;  %v1299_v24 = vld [vmem:[%s1223_s1] sm:$0xff]  ;;  %v1402_v25 = vld [vmem:[%s4408_s23 + $0x18] sm:$0xff]  ;;  %v1711_v27 = vpack.c.bf16 %v1707_v22, %v1706_v21  ;;  %v1404_v35 = vld [vmem:[%s4408_s23 + $0x28] sm:$0xff] }
  0x42   : > { %4002 = vmatmul.mubr.msk.bf16.vlgmr.msra.gmra.mxu0 %vm1691_vm1, %v1709_v16  ;;  %1485 = vperm.xlu0 %4124, %v1405_v13   ;;  %v1309_v28 = vrot.slane %v1299_v24, %v4427_v23  ;;  %v1302_v30 = vcombine.high %v1299_v24, %v1299_v24  ;;  %v1403_v31 = vld [vmem:[%s4408_s23 + $0x20] sm:$0xff]  ;;  %v1406_v44 = vld [vmem:[%s4408_s23 + $0x38] sm:$0xff]  ;;  %s4212_s23 = smov 120  }
  0x43   : > { %1465 = vperm.xlu1 %4122, %v1400_v17   ;;  %4005 = vmatprep.mubr.msk.bf16.mxu0 %vm1691_vm1, %v1710_v20  ;;  %v4444_v38 = vld [vmem:[%s1227_s2] sm:$0xff]  ;;  %s5480_s2 = sld [smem:[#allocation6_spill]] }
  0x44   : > { %v1317_v29 = vcombine.high %v1309_v28, %v1309_v28  ;;  %v1316_v34 = vrot.slane %v1302_v30, %v4427_v23  ;;  %v1325_v45 = vrot.slane %v1309_v28, %v4427_v23  ;;  %v1527_v2 = vld [vmem:[%s1201_s7] sm:$0xff]  ;;  %s5481_s7 = sld [smem:[#allocation2_spill]] }
  0x45   : > { %v1536_v4 = vrot.slane %v1527_v2, %v4427_v23  ;;  %v1407_v8 = vld [vmem:[%s4276_s19] sm:$0x3]  ;;  %v1529_v14 = vcombine.high %v1527_v2, %v1527_v2 }
  0x46   : > { %4129 = vset.pattern.permute.xlu0 %v4211_v26  ;;  %v1339_v32 = vrot.slane %v1317_v29, %v4427_v23  ;;  %v1332_v37 = vrot.slane %v1316_v34, %v4427_v23  ;;  %v1354_v47 = vrot.slane %v1325_v45, %v4436_v33  ;;  %v1347_v48 = vcombine.high %v1325_v45, %v1325_v45  ;;  %v4488_v22 = vld [vmem:[%s4281_s24] ss:$0 sm:$0xff]  ;;  %s1216_s1 = scalar_lea.vmem %s5478_s26, %s4415_s28  ;;  %s5483_s26 = sld [smem:[#allocation5_spill]] }
  0x47   : > { %4123 = vset.pattern.permute.xlu1 %v4211_v26  ;;  %1410 = vperm.xlu0 %4129, %v1399_v7   ;;  %v1318_v52 = vcombine.high %v1316_v34, %v1316_v34  ;;  %v1544_v7 = vcombine.high %v1536_v4, %v1536_v4  ;;  %v4477_v12 = vrot.slane %v1407_v8, %v4436_v33  ;;  %v4494_v30 = vld [vmem:[%s1205_s10] sm:$0xff] }
  0x48   : > { %1425 = vperm.xlu1 %4123, %v1402_v25   ;;  %v1358_v36 = vrot.slane %v1339_v32, %v4436_v33  ;;  %v1370_v40 = vrot.slane %v1332_v37, %v4436_v33  ;;  %v1348_v41 = vcombine.high %v1332_v37, %v1332_v37  ;;  %v1391_v49 = vmul.f32 %v1354_v47, %v4444_v38 }
  0x49   : > { %v1362_v50 = vrot.slane %v1347_v48, %v4436_v33  ;;  %v1349_v51 = vcombine.high %v1339_v32, %v1339_v32  ;;  %v1346_v55 = vrot.slane %v1318_v52, %v4427_v23  ;;  %v1543_v21 = vrot.slane %v1529_v14, %v4427_v23 }
  0x4a   : > { %4006 = vmatmul.mubr.msk.bf16.gmra.mxu0 %vm1691_vm1, %v1711_v27  ;;  %v1392_v39 = vmul.f32 %v1358_v36, %v4444_v38  ;;  %v1395_v42 = vmul.f32 %v1370_v40, %v4444_v38  ;;  %v1378_v43 = vrot.slane %v1348_v41, %v4436_v33  ;;  %v1552_v36 = vrot.slane %v1536_v4, %v4427_v23  ;;  %s1209_s10 = scalar_lea.vmem %s5481_s7, %s4415_s28 }
  0x4b   : > { %1415 = vperm.xlu0 %4129, %v1400_v17   ;;  %v1393_v53 = vmul.f32 %v1362_v50, %v4444_v38  ;;  %v1366_v54 = vrot.slane %v1349_v51, %v4436_v33  ;;  %v1374_v58 = vrot.slane %v1346_v55, %v4436_v33  ;;  %v1350_v59 = vcombine.high %v1346_v55, %v1346_v55 }
  0x4c   : > { %4125 = vset.pattern.permute.xlu1 %v4209_v1  ;;  %v1397_v46 = vmul.f32 %v1378_v43, %v4444_v38  ;;  %v1559_v28 = vrot.slane %v1543_v21, %v4427_v23  ;;  %v1574_v52 = vcombine.high %v1552_v36, %v1552_v36  ;;  %s1233_s7 = scalar_lea.vmem %s5483_s26, %s5558_s15  ;;  %s4214_s26 = smov 8  }
  0x4d   : > { %1473 = vperm.xlu1 %4125, %v1402_v25   ;;  %v1394_v57 = vmul.f32 %v1366_v54, %v4444_v38  ;;  %v1396_v61 = vmul.f32 %v1374_v58, %v4444_v38  ;;  %v1382_v62 = vrot.slane %v1350_v59, %v4436_v33  ;;  %v1581_v59 = vrot.slane %v1552_v36, %v4436_v33 }
  0x4e   : > { %v1575_v34 = vcombine.high %v1559_v28, %v1559_v28  ;;  %v1597_v47 = vrot.slane %v1559_v28, %v4436_v33  ;;  %v1589_v2 = vrot.slane %v1574_v52, %v4436_v33 }
  0x4f   : > { %1420 = vperm.xlu0 %4129, %v1401_v6   ;;  %v1398_v63 = vmul.f32 %v1382_v62, %v4444_v38  ;;  %v1494_v6 = vsub.s32 1, %v4418_v15 }
  0x50   : > { %v1605_v50 = vrot.slane %v1575_v34, %v4436_v33 }
  0x51   : > { %4126 = vset.pattern.permute.xlu1 %v4211_v26  ;;  %v4474_v11 = vrot.slane %v1407_v8, %v1494_v6 }
  0x52   : > { %1430 = vperm.xlu1 %4126, %v1403_v31  }
  0x53   : > { %1435 = vperm.xlu0 %4129, %v1404_v35  }
  0x56   : > { %4127 = vset.pattern.permute.xlu1 %v4209_v1 }
  0x57   : > { %1477 = vperm.xlu1 %4127, %v1403_v31   ;;  %1440 = vperm.xlu0 %4129, %v1405_v13   ;;  %v4480_v13 = vrot.slane %v1544_v7, %v4427_v23  ;;  %v1545_v7 = vcombine.high %v1543_v21, %v1543_v21 }
  0x59   : > { %v1585_v19 = vrot.slane %v4480_v13, %v4436_v33 }
  0x5b   : > { %1481 = vperm.xlu1 %4127, %v1404_v35   ;;  %1650 = vperm.xlu0 %4129, %v1392_v39  }
  0x5f   : > { %4128 = vset.pattern.permute.xlu1 %v4211_v26  ;;  %1665 = vperm.xlu0 %4129, %v1395_v42  }
  0x60   : > { %1445 = vperm.xlu1 %4128, %v1406_v44  }
  0x63   : > { %1675 = vperm.xlu0 %4129, %v1397_v46  }
  0x64   : > { %4130 = vset.pattern.permute.xlu1 %v4209_v1 }
  0x65   : > { %1489 = vperm.xlu1 %4130, %v1406_v44  }
  0x69   : > { %4131 = vset.pattern.permute.xlu1 %v4211_v26 }
  0x6a   : > { %1645 = vperm.xlu1 %4131, %v1391_v49  }
  0x6e   : > { %1655 = vperm.xlu1 %4131, %v1393_v53  }
  0x72   : > { %1660 = vperm.xlu1 %4131, %v1394_v57  }
  0x76   : > { %1670 = vperm.xlu1 %4131, %v1396_v61  }
  0x7a   : > { %1680 = vperm.xlu1 %4131, %v1398_v63  }
  0xb9   : > { %v1462_v0 = vpop.permute.xlu1 %1461  ;;  %v1470_v1 = vpop.permute.xlu0 %1469 }
  0xba   : > { %v1496_v35 = vmul.f32 %v4474_v11, %v1462_v0  ;;  %v1498_v44 = vmul.f32 %v4474_v11, %v1470_v1  ;;  %v1576_v1 = vcombine.high %v4480_v13, %v4480_v13 }
  0xbd   : > { %v1486_v3 = vpop.permute.xlu0 %1485 }
  0xbe   : > { %v1466_v5 = vpop.permute.xlu1 %1465  ;;  %v1502_v40 = vmul.f32 %v4474_v11, %v1486_v3 }
  0xbf   : > { %v1497_v17 = vmul.f32 %v4474_v11, %v1466_v5 }
  0xc2   : > { %v1411_v9 = vpop.permute.xlu0 %1410 }
  0xc3   : > { %v1426_v10 = vpop.permute.xlu1 %1425  ;;  %v1452_v31 = vmul.f32 %v4477_v12, %v1411_v9 }
  0xc4   : > { %v1455_v62 = vmul.f32 %v4477_v12, %v1426_v10 }
  0xc5   : > { %v1504_v45 = vadd.f32 %v1496_v35, %v1452_v31 }
  0xc6   : > { %v1416_v16 = vpop.permute.xlu0 %1415 }
  0xc7   : > { %v1453_v15 = vmul.f32 %v4477_v12, %v1416_v16  ;;  %v1519_v60 = vadd.f32 %v4488_v22, %v1504_v45 }
  0xc8   : > { %v1474_v18 = vpop.permute.xlu1 %1473 }
  0xc9   : > { %v1505_v20 = vadd.f32 %v1497_v17, %v1453_v15  ;;  %v1499_v55 = vmul.f32 %v4474_v11, %v1474_v18  ;;  %v1618_v9 = vadd.f32 %v1581_v59, %v1519_v60  ;;  %v1593_v15 = vrot.slane %v1576_v1, %v4436_v33 }
  0xca   : > { %v1421_v24 = vpop.permute.xlu0 %1420 }
  0xcb   : > { %v1520_v25 = vadd.f32 %v4488_v22, %v1505_v20  ;;  %v1454_v46 = vmul.f32 %v4477_v12, %v1421_v24  ;;  %v1507_v4 = vadd.f32 %v1499_v55, %v1455_v62  ;;  %v1573_v20 = vrot.slane %v1545_v7, %v4427_v23 }
  0xcd   : > { %v1619_v26 = vadd.f32 %v1585_v19, %v1520_v25  ;;  %v1431_v27 = vpop.permute.xlu1 %1430  ;;  %v1506_v61 = vadd.f32 %v1498_v44, %v1454_v46  ;;  %v1522_v19 = vadd.f32 %v4488_v22, %v1507_v4  ;;  %v1627_v25 = vadd.f32 %v4494_v30, %v1618_v9 }
  0xce   : > { %v1436_v29 = vpop.permute.xlu0 %1435  ;;  %v1456_v41 = vmul.f32 %v4477_v12, %v1431_v27  ;;  %v1601_v34 = vrot.slane %v1573_v20, %v4436_v33  ;;  %v1577_v35 = vcombine.high %v1573_v20, %v1573_v20 }
  0xcf   : > { %v1628_v32 = vadd.f32 %v4494_v30, %v1619_v26  ;;  %v1521_v10 = vadd.f32 %v4488_v22, %v1506_v61  ;;  %v1457_v14 = vmul.f32 %v4477_v12, %v1436_v29  ;;  %v1635_v36 = vmax.f32 %v1627_v25, 0.0 }
  0xd1   : > { %v1636_v48 = vmax.f32 %v1628_v32, 0.0  ;;  %v1620_v26 = vadd.f32 %v1589_v2, %v1521_v10  ;;  %v1621_v32 = vadd.f32 %v1593_v15, %v1522_v19  ;;  %v3923_v2 = vld [vmem:[%s4301_s20] ss:$0 sm:$0xff] }
  0xd2   : > { %v1478_v37 = vpop.permute.xlu1 %1477  ;;  %v1441_v39 = vpop.permute.xlu0 %1440 }
  0xd3   : > { %v1500_v42 = vmul.f32 %v4474_v11, %v1478_v37  ;;  %v1458_v43 = vmul.f32 %v4477_v12, %v1441_v39  ;;  %v1629_v37 = vadd.f32 %v4494_v30, %v1620_v26 }
  0xd5   : > { %v1508_v49 = vadd.f32 %v1500_v42, %v1456_v41  ;;  %v1510_v51 = vadd.f32 %v1502_v40, %v1458_v43  ;;  %v1637_v43 = vmax.f32 %v1629_v37, 0.0 }
  0xd6   : > { %v1482_v53 = vpop.permute.xlu1 %1481  ;;  %v4512_v54 = vpop.permute.xlu0 %1650 }
  0xd7   : > { %5459 = vst [vmem:[#allocation15_spill] sm:$0xff] %v4512_v54  ;;  %v1523_v56 = vadd.f32 %v4488_v22, %v1508_v49  ;;  %v1525_v57 = vadd.f32 %v4488_v22, %v1510_v51  ;;  %v4518_v58 = vmul.f32 %v4512_v54, %v1636_v48  ;;  %v1501_v13 = vmul.f32 %v4474_v11, %v1482_v53 }
  0xd9   : > { %5460 = vst [vmem:[#allocation16_spill] sm:$0xff] %v4518_v58  ;;  %v1622_v63 = vadd.f32 %v1597_v47, %v1523_v56  ;;  %v1624_v0 = vadd.f32 %v1605_v50, %v1525_v57  ;;  %1693 = vst.msk [vmem:[%s4510_s11 + $0x8] sm:$0xff] %vm1691_vm1, %v4518_v58  ;;  %v1509_v27 = vadd.f32 %v1501_v13, %v1457_v14 }
  0xda   : > { %v4529_v3 = vpop.permute.xlu0 %1665 }
  0xdb   : > { %5461 = vst [vmem:[#allocation17_spill] sm:$0xff] %v4529_v3  ;;  %v1631_v5 = vadd.f32 %v4494_v30, %v1622_v63  ;;  %v1633_v6 = vadd.f32 %v4494_v30, %v1624_v0  ;;  %v1446_v8 = vpop.permute.xlu1 %1445  ;;  %v1524_v39 = vadd.f32 %v4488_v22, %v1509_v27  ;;  %v2498_v0 = vsel %vm2488_vm2, %v4444_v38, 0.0 }
  0xdc   : > { %v1459_v31 = vmul.f32 %v4477_v12, %v1446_v8  ;;  %v1609_v12 = vrot.slane %v1577_v35, %v4436_v33  ;;  %v2499_v1 = vrot.slane %v2498_v0, 4  ;;  %v2360_v8 = vld [vmem:[%s4316_s14] sm:$0xf] }
  0xdd   : > { %v1639_v16 = vmax.f32 %v1631_v5, 0.0  ;;  %v1641_v17 = vmax.f32 %v1633_v6, 0.0  ;;  %v1623_v44 = vadd.f32 %v1601_v34, %v1524_v39  ;;  %4058 = vmatprep.subr.msk.bf16.mxu1 %vm1732_vm0, %v2360_v8  ;;  %v2374_v10 = vsel %vm1732_vm0, %v2360_v8, 0  ;;  %v2131_v35 = vld [vmem:[%s4306_s27] sm:$0xf] }
  0xde   : > { %v4537_v18 = vpop.permute.xlu0 %1675  ;;  %v2500_v4 = vadd.f32 %v2499_v1, %v2498_v0  ;;  %4057 = vmatprep.subr.msk.bf16.mxu0 %vm1732_vm0, %v2131_v35  ;;  %v2152_v37 = vsel %vm1732_vm0, %v2131_v35, 0 }
  0xdf   : > { %5462 = vst [vmem:[#allocation18_spill] sm:$0xff] %v4537_v18  ;;  %v4542_v21 = vmul.f32 %v4529_v3, %v1639_v16  ;;  %v4545_v24 = vmul.f32 %v4537_v18, %v1641_v17  ;;  %v1632_v50 = vadd.f32 %v4494_v30, %v1623_v44  ;;  %4020 = vmatpush3.bf16.msra.mxu0 %v2152_v37 }
  0xe0   : > { %v1490_v28 = vpop.permute.xlu1 %1489  ;;  %v2501_v9 = vrot.slane %v2500_v4, 2 }
  0xe1   : > { %5463 = vst [vmem:[#allocation19_spill] sm:$0xff] %v4542_v21  ;;  %5464 = vst [vmem:[#allocation20_spill] sm:$0xff] %v4545_v24  ;;  %v1503_v29 = vmul.f32 %v4474_v11, %v1490_v28  ;;  %v1630_v11 = vadd.f32 %v4494_v30, %v1621_v32  ;;  %v1640_v53 = vmax.f32 %v1632_v50, 0.0 }
  0xe2   : > { %1696 = vst.msk [vmem:[%s4510_s11 + $0x20] sm:$0xff] %vm1691_vm1, %v4542_v21  ;;  %1698 = vst.msk [vmem:[%s4510_s11 + $0x30] sm:$0xff] %vm1691_vm1, %v4545_v24  ;;  %v2502_v15 = vadd.f32 %v2501_v9, %v2500_v4 }
  0xe3   : > { %v1511_v40 = vadd.f32 %v1503_v29, %v1459_v31  ;;  %v1638_v49 = vmax.f32 %v1630_v11, 0.0 }
  0xe4   : > { %v2503_v27 = vrot.slane %v2502_v15, 1 }
  0xe5   : > { %v4559_v41 = vpop.permute.xlu1 %1645  ;;  %v1526_v45 = vadd.f32 %v4488_v22, %v1511_v40 }
  0xe6   : > { %5465 = vst [vmem:[#allocation21_spill] sm:$0xff] %v4559_v41  ;;  %v4562_v42 = vmul.f32 %v4559_v41, %v1635_v36  ;;  %v2504_v34 = vadd.f32 %v2503_v27, %v2502_v15  ;;  %v2497_v36 = vsub.f32 1.0, %v4444_v38 }
  0xe7   : > { %v1625_v51 = vadd.f32 %v1609_v12, %v1526_v45 }
  0xe8   : > { %5466 = vst [vmem:[#allocation22_spill] sm:$0xff] %v4562_v42  ;;  %1692 = vst.msk [vmem:[%s4510_s11] sm:$0xff] %vm1691_vm1, %v4562_v42  ;;  %v1917_v46 = vpack.c.bf16 %v4518_v58, %v4562_v42  ;;  %v2575_v40 = vmul.f32 100000.0, %v2497_v36 }
  0xe9   : > { %v4572_v47 = vpop.permute.xlu1 %1655  ;;  %v1634_v55 = vadd.f32 %v4494_v30, %v1625_v51 }
  0xea   : > { %5467 = vst [vmem:[#allocation23_spill] sm:$0xff] %v4572_v47  ;;  %v4575_v48 = vmul.f32 %v4572_v47, %v1637_v43  ;;  %4011 = vmatprep.mubr.msk.bf16.mxu1 %vm1691_vm1, %v1917_v46  ;;  %v1810_v43 = vld [vmem:[%s1216_s1] sm:$0xff]  ;;  %v2960_v46 = vsel %vm1691_vm1, %v4518_v58, 0.0  ;;  %s5484_s1 = sld [smem:[#allocation13_spill]] }
  0xeb   : > { %v1642_v60 = vmax.f32 %v1634_v55, 0.0  ;;  %v1819_v45 = vrot.slane %v1810_v43, %v4427_v23  ;;  %v1812_v50 = vcombine.high %v1810_v43, %v1810_v43 }
  0xec   : > { %5468 = vst [vmem:[#allocation24_spill] sm:$0xff] %v4575_v48  ;;  %1694 = vst.msk [vmem:[%s4510_s11 + $0x10] sm:$0xff] %vm1691_vm1, %v4575_v48 }
  0xed   : > { %v4582_v22 = vpop.permute.xlu1 %1660  ;;  %v1827_v51 = vcombine.high %v1819_v45, %v1819_v45 }
  0xee   : > { %5469 = vst [vmem:[#allocation25_spill] sm:$0xff] %v4582_v22  ;;  %v4585_v52 = vmul.f32 %v4582_v22, %v1638_v49  ;;  %v2981_v49 = vsel %vm1691_vm1, %v4542_v21, 0.0 }
  0xef   : > { %v2982_v55 = vrot.slane %v2981_v49, 4  ;;  %v4677_v0 = vrot.slane %v1827_v51, %v4427_v23 }
  0xf0   : > { %5470 = vst [vmem:[#allocation26_spill] sm:$0xff] %v4585_v52  ;;  %1695 = vst.msk [vmem:[%s4510_s11 + $0x18] sm:$0xff] %vm1691_vm1, %v4585_v52  ;;  %v1918_v56 = vpack.c.bf16 %v4585_v52, %v4575_v48  ;;  %v2974_v4 = vsel %vm1691_vm1, %v4585_v52, 0.0 }
  0xf1   : > { %v4593_v57 = vpop.permute.xlu1 %1670  ;;  %v2983_v8 = vadd.f32 %v2982_v55, %v2981_v49  ;;  %v2975_v27 = vrot.slane %v2974_v4, 4  ;;  %v1859_v35 = vcombine.high %v4677_v0, %v4677_v0 }
  0xf2   : > { %5471 = vst [vmem:[#allocation27_spill] sm:$0xff] %v4593_v57  ;;  %v4596_v59 = vmul.f32 %v4593_v57, %v1640_v53  ;;  %4012 = vmatmul.mubr.msk.bf16.vlgmr.msra.gmra.mxu1 %vm1691_vm1, %v1918_v56  ;;  %v2961_v53 = vrot.slane %v2960_v46, 4 }
  0xf3   : > { %4030 = vmatpush3.bf16.msra.mxu1 %v2374_v10 }
  0xf4   : > { %5472 = vst [vmem:[#allocation28_spill] sm:$0xff] %v4596_v59  ;;  %1697 = vst.msk [vmem:[%s4510_s11 + $0x28] sm:$0xff] %vm1691_vm1, %v4596_v59  ;;  %v1919_v30 = vpack.c.bf16 %v4596_v59, %v4542_v21  ;;  %v2988_v10 = vsel %vm1691_vm1, %v4596_v59, 0.0 }
  0xf5   : > { %v4604_v61 = vpop.permute.xlu1 %1680 }
  0xf6   : > { %5473 = vst [vmem:[#allocation29_spill] sm:$0xff] %v4604_v61  ;;  %v4607_v62 = vmul.f32 %v4604_v61, %v1642_v60  ;;  %4015 = vmatprep.mubr.msk.bf16.mxu1 %vm1691_vm1, %v1919_v30  ;;  %v2953_v60 = vsel %vm1691_vm1, %v4562_v42, 0.0  ;;  %v4673_v30 = vrot.slane %v1819_v45, %v4427_v23 }
  0xf7   : > { %v2954_v9 = vrot.slane %v2953_v60, 4 }
  0xf8   : > { %5474 = vst [vmem:[#allocation30_spill] sm:$0xff] %v4607_v62  ;;  %1699 = vst.msk [vmem:[%s4510_s11 + $0x38] sm:$0xff] %vm1691_vm1, %v4607_v62  ;;  %v1920_v63 = vpack.c.bf16 %v4607_v62, %v4545_v24  ;;  %v1857_v15 = vcombine.high %v4673_v30, %v4673_v30  ;;  %s5482_s11 = sld [smem:[#allocation4_spill]] }
  0xf9   : > { %v2955_v43 = vadd.f32 %v2954_v9, %v2953_v60 }
  0xfa   : > { %4016 = vmatmul.mubr.msk.bf16.gmra.mxu1 %vm1691_vm1, %v1920_v63  ;;  %v1826_v63 = vrot.slane %v1812_v50, %v4427_v23  ;;  %v1872_v49 = vrot.slane %v1857_v15, %v4436_v33 }
  0xfb   : > { %v2956_v15 = vrot.slane %v2955_v43, 2 }
 0x102   : > { %v4003_v11 = vpop.f32.mrf.mxu0 }
 0x104   : > { %v1770_v12 = vpop.f32.mrf.mxu0 }
 0x106   : > { %v4004_v44 = vpop.f32.mrf.mxu0 }
 0x108   : > { %v4668_v56 = vpop.f32.mrf.mxu0 }
 0x1b2   : > { %v4013_v5 = vpop.f32.mrf.mxu1 }
 0x1b3   : > { %v4619_v6 = vadd.f32 %v4013_v5, %v3923_v2  ;;  %v1828_v5 = vcombine.high %v1826_v63, %v1826_v63 }
 0x1b4   : > { %v1978_v7 = vpop.f32.mrf.mxu1 }
 0x1b5   : > { %2029 = vrot.lane.b32.xlu0 %v4619_v6, %s4212_s23  ;;  %v4626_v13 = vadd.f32 %v3923_v2, %v1978_v7  ;;  %v2962_v7 = vadd.f32 %v2961_v53, %v2960_v46  ;;  %v4696_v36 = vrot.slane %v1828_v5, %v4427_v23  ;;  %v2976_v53 = vadd.f32 %v2975_v27, %v2974_v4 }
 0x1b6   : > { %v4014_v14 = vpop.f32.mrf.mxu1  ;;  %v1876_v5 = vrot.slane %v1859_v35, %v4436_v33 }
 0x1b7   : > { %v4628_v16 = vadd.f32 %v4014_v14, %v3923_v2  ;;  %v4007_v14 = vpop.f32.mrf.mxu0  ;;  %v2963_v37 = vrot.slane %v2962_v7, 2  ;;  %v1860_v60 = vcombine.high %v4696_v36, %v4696_v36 }
 0x1b8   : > { %v1981_v17 = vpop.f32.mrf.mxu1 }
 0x1b9   : > { %5475 = vst [vmem:[#allocation31_spill] sm:$0xff] %v4628_v16  ;;  %2031 = vrot.lane.b32.xlu1 %v4628_v16, %s4212_s23  ;;  %2025 = vrot.lane.b32.xlu0 %v4626_v13, %s4212_s23  ;;  %v4634_v20 = vadd.f32 %v3923_v2, %v1981_v17  ;;  %v3002_v17 = vsel %vm1691_vm1, %v4607_v62, 0.0  ;;  %v1786_v46 = vpop.f32.mrf.mxu0  ;;  %v2964_v9 = vadd.f32 %v2963_v37, %v2962_v7 }
 0x1ba   : > { %v4017_v19 = vpop.f32.mrf.mxu1  ;;  %v3003_v45 = vrot.slane %v3002_v17, 4  ;;  %v1884_v7 = vrot.slane %v4696_v36, %v4436_v33  ;;  %v2957_v37 = vadd.f32 %v2956_v15, %v2955_v43 }
 0x1bb   : > { %5476 = vst [vmem:[#allocation32_spill] sm:$0xff] %v4634_v20  ;;  %v4636_v25 = vadd.f32 %v4017_v19, %v3923_v2  ;;  %v4690_v19 = vrot.slane %v1826_v63, %v4427_v23  ;;  %v4008_v59 = vpop.f32.mrf.mxu0 }
 0x1bc   : > { %v1994_v26 = vpop.f32.mrf.mxu1  ;;  %v2958_v43 = vrot.slane %v2957_v37, 1 }
 0x1bd   : > { %2027 = vrot.lane.b32.xlu1 %v4634_v20, %s4212_s23  ;;  %2037 = vrot.lane.b32.xlu0 %v4636_v25, %s4212_s23  ;;  %v4642_v29 = vadd.f32 %v3923_v2, %v1994_v26  ;;  %v1858_v50 = vcombine.high %v4690_v19, %v4690_v19 }
 0x1be   : > { %v4018_v28 = vpop.f32.mrf.mxu1 }
 0x1bf   : > { %v4654_v39 = vadd.f32 %v4018_v28, %v3923_v2 }
 0x1c0   : > { %v1997_v31 = vpop.f32.mrf.mxu1 }
 0x1c1   : > { %v4644_v32 = vadd.f32 %v3923_v2, %v1997_v31  ;;  %2033 = vrot.lane.b32.xlu0 %v4642_v29, %s4212_s23  ;;  %5479 = vst [vmem:[#allocation34_spill] sm:$0xff] %v4654_v39  ;;  %v2967_v2 = vsel %vm1691_vm1, %v4575_v48, 0.0  ;;  %v2989_v31 = vrot.slane %v2988_v10, 4 }
 0x1c2   : > { %v2968_v26 = vrot.slane %v2967_v2, 4 }
 0x1c3   : > { %5477 = vst [vmem:[#allocation33_spill] sm:$0xff] %v4644_v32  ;;  %2035 = vrot.lane.b32.xlu1 %v4644_v32, %s4212_s23  ;;  %v2990_v23 = vadd.f32 %v2989_v31, %v2988_v10  ;;  %v2977_v10 = vrot.slane %v2976_v53, 2 }
 0x1c4   : > { %v2969_v51 = vadd.f32 %v2968_v26, %v2967_v2  ;;  %v1888_v2 = vrot.slane %v1858_v50, %v4436_v33 }
 0x1c5   : > { %2563 = vperm.xlu0 %4129, %v2504_v34   ;;  %v3918_v34 = vld [vmem:[%s5480_s2] ss:$0 sm:$0xff]  ;;  %v2991_v31 = vrot.slane %v2990_v23, 2  ;;  %s1230_s2 = scalar_lea.vmem %s5482_s11, %s5558_s15  ;;  %s4213_s11 = smov 16  }
 0x1c6   : > { %v1779_v55 = vadd.f32 %v4003_v11, %v3918_v34  ;;  %v1771_v21 = vadd.f32 %v3918_v34, %v1770_v12  ;;  %v1868_v11 = vrot.slane %v4677_v0, %v4436_v33  ;;  %v2970_v4 = vrot.slane %v2969_v51, 2 }
 0x1c7   : > { %2039 = vrot.lane.b32.xlu1 %v4654_v39, %s4212_s23  ;;  %v1782_v27 = vadd.f32 %v4004_v44, %v3918_v34  ;;  %v2965_v12 = vrot.slane %v2964_v9, 1  ;;  %v1774_v50 = vadd.f32 %v3918_v34, %v4668_v56  ;;  %v1787_v52 = vadd.f32 %v3918_v34, %v1786_v46 }
 0x1c8   : > { %v2971_v48 = vadd.f32 %v2970_v4, %v2969_v51  ;;  %v2992_v42 = vadd.f32 %v2991_v31, %v2990_v23  ;;  %v1798_v39 = vadd.f32 %v4008_v59, %v3918_v34  ;;  %v4743_v31 = vld [vmem:[%s1233_s7] ss:$0 sm:$0xff]  ;;  %s5536_s7 = sld [smem:[#allocation8_spill]] }
 0x1c9   : > { %2727 = vperm.xlu0 %4129, %v4444_v38   ;;  %v2995_v38 = vsel %vm1691_vm1, %v4545_v24, 0.0  ;;  %v3004_v24 = vadd.f32 %v3003_v45, %v3002_v17 }
 0x1ca   : > { %v2996_v1 = vrot.slane %v2995_v38, 4 }
 0x1cb   : > { %2578 = vperm.xlu1 %4131, %v2575_v40   ;;  %v2984_v40 = vrot.slane %v2983_v8, 2  ;;  %v3005_v45 = vrot.slane %v3004_v24, 2 }
 0x1cc   : > { %v2997_v28 = vadd.f32 %v2996_v1, %v2995_v38  ;;  %v1864_v38 = vrot.slane %v4673_v30, %v4436_v33  ;;  %v1801_v1 = vld [vmem:[%s1209_s10] sm:$0xff]  ;;  %v1880_v30 = vrot.slane %v4690_v19, %v4436_v33  ;;  %v1795_v19 = vadd.f32 %v4007_v14, %v3918_v34  ;;  %s4739_s10 = scalar_lea.vmem %s5484_s1, %s4404_s22  ;;  %s5525_s1 = sld [smem:[#allocation9_spill]] }
 0x1cd   : > { %v2985_v62 = vadd.f32 %v2984_v40, %v2983_v8  ;;  %v1804_v26 = vmul.f32 %v1801_v1, %v1779_v55  ;;  %v1892_v8 = vrot.slane %v1860_v60, %v4436_v33  ;;  %v1789_v40 = vpop.f32.mrf.mxu0  ;;  %v1802_v0 = vmul.f32 %v1801_v1, %v1771_v21 }
 0x1ce   : > { %v2998_v63 = vrot.slane %v2997_v28, 2  ;;  %v2978_v55 = vadd.f32 %v2977_v10, %v2976_v53  ;;  %v1805_v44 = vmul.f32 %v1801_v1, %v1782_v27  ;;  %v1790_v36 = vadd.f32 %v3918_v34, %v1789_v40  ;;  %v4741_v27 = vld [vmem:[%s1230_s2] ss:$0 sm:$0xff]  ;;  %s5526_s2 = sld [smem:[#allocation11_spill]] }
 0x1cf   : > { %v2986_v35 = vrot.slane %v2985_v62, 1  ;;  %v1903_v58 = vmul.f32 %v1872_v49, %v1804_v26  ;;  %v4717_v33 = vadd.f32 %v2965_v12, %v2964_v9  ;;  %v3006_v21 = vadd.f32 %v3005_v45, %v3004_v24 }
 0x1d0   : > { %v2999_v17 = vadd.f32 %v2998_v63, %v2997_v28  ;;  %v1803_v56 = vmul.f32 %v1801_v1, %v1774_v50  ;;  %v1808_v14 = vmul.f32 %v1801_v1, %v1795_v19  ;;  %v1806_v46 = vmul.f32 %v1801_v1, %v1787_v52 }
 0x1d1   : > { %v4719_v28 = vadd.f32 %v2986_v35, %v2985_v62  ;;  %v1901_v51 = vmul.f32 %v1864_v38, %v1802_v0  ;;  %v2972_v53 = vrot.slane %v2971_v48, 1  ;;  %v2979_v49 = vrot.slane %v2978_v55, 1 }
 0x1d2   : > { %v3000_v32 = vrot.slane %v2999_v17, 1  ;;  %v1911_v59 = vmul.f32 %v1903_v58, %v4572_v47  ;;  %v1904_v34 = vmul.f32 %v1876_v5, %v1805_v44  ;;  %v1809_v63 = vmul.f32 %v1801_v1, %v1798_v39 }
 0x1d3   : > { %v1807_v23 = vmul.f32 %v1801_v1, %v1790_v36  ;;  %v2993_v62 = vrot.slane %v2992_v42, 1  ;;  %v4724_v24 = vadd.f32 %v2958_v43, %v2957_v37  ;;  %v3007_v15 = vrot.slane %v3006_v21, 1 }
 0x1d4   : > { %v4722_v9 = vadd.f32 %v3000_v32, %v2999_v17  ;;  %v2011_v52 = vadd.f32 %v4619_v6, %v1911_v59  ;;  %v1909_v4 = vmul.f32 %v1901_v51, %v4559_v41  ;;  %v1907_v58 = vmul.f32 %v1888_v2, %v1808_v14 }
 0x1d5   : > { %v1902_v5 = vmul.f32 %v1868_v11, %v1803_v56  ;;  %v1905_v39 = vmul.f32 %v1880_v30, %v1806_v46  ;;  %v4732_v1 = vadd.f32 %v2972_v53, %v2971_v48  ;;  %v4734_v10 = vadd.f32 %v2979_v49, %v2978_v55 }
 0x1d6   : > { %5485 = vst [vmem:[#allocation35_spill] sm:$0xff] %v4722_v9  ;;  %v1912_v32 = vmul.f32 %v1904_v34, %v4582_v22  ;;  %v2009_v12 = vadd.f32 %v4626_v13, %v1909_v4  ;;  %v1906_v11 = vmul.f32 %v1884_v7, %v1807_v23  ;;  %v1908_v30 = vmul.f32 %v1892_v8, %v1809_v63 }
 0x1d7   : > { %v4746_v48 = vadd.f32 %v2993_v62, %v2992_v42  ;;  %v1915_v0 = vmul.f32 %v1907_v58, %v4537_v18  ;;  %v1910_v50 = vmul.f32 %v1902_v5, %v4512_v54  ;;  %v1913_v19 = vmul.f32 %v1905_v39, %v4529_v3 }
 0x1d8   : > { %v2012_v40 = vadd.f32 %v4628_v16, %v1912_v32  ;;  %v4755_v55 = vadd.f32 %v3007_v15, %v3006_v21  ;;  %v1914_v56 = vmul.f32 %v1906_v11, %v4593_v57  ;;  %v4766_v21 = vmul.f32 %v1908_v30, %v4604_v61 }
 0x1d9   : > { %5486 = vst [vmem:[#allocation36_spill] sm:$0xff] %v4746_v48  ;;  %v4769_v14 = vadd.f32 1.0, %v4626_v13  ;;  %v4772_v46 = vadd.f32 1.0, %v4619_v6  ;;  %v2015_v34 = vadd.f32 %v4636_v25, %v1915_v0  ;;  %v2010_v63 = vadd.f32 %v4634_v20, %v1910_v50 }
 0x1da   : > { %5487 = vst [vmem:[#allocation37_spill] sm:$0xff] %v4755_v55 }
 0x227   : > { %v2030_v60 = vpop.permute.xlu0 %2029 }
 0x228   : > { %v2051_v38 = vmul.f32 %v2030_v60, %v1911_v59  ;;  %v4783_v60 = vadd.f32 1.0, %v4636_v25 }
 0x22a   : > { %v2059_v26 = vadd.f32 %v2051_v38, %v2011_v52 }
 0x22b   : > { %v2026_v17 = vpop.permute.xlu0 %2025  ;;  %v2032_v2 = vpop.permute.xlu1 %2031 }
 0x22c   : > { %v4749_v35 = vmul.f32 %v2059_v26, %v4572_v47  ;;  %v2049_v37 = vmul.f32 %v2026_v17, %v1909_v4  ;;  %v2052_v45 = vmul.f32 %v2032_v2, %v1912_v32  ;;  %v2013_v26 = vadd.f32 %v4642_v29, %v1913_v19 }
 0x22e   : > { %2075 = vst.msk [vmem:[%s4739_s10 + $0x10] sm:$0xff] %vm1691_vm1, %v4749_v35  ;;  %v2090_v42 = vadd.f32 %v4741_v27, %v4749_v35  ;;  %v2105_v7 = vmul.f32 %v4743_v31, %v4749_v35  ;;  %v2057_v8 = vadd.f32 %v2049_v37, %v2009_v12  ;;  %v2060_v44 = vadd.f32 %v2052_v45, %v2012_v40  ;;  %v5488_v40 = vld [vmem:[#allocation33_spill] sm:$0xff] }
 0x22f   : > { %v2038_v36 = vpop.permute.xlu0 %2037  ;;  %v2028_v43 = vpop.permute.xlu1 %2027  ;;  %v2014_v45 = vadd.f32 %v5488_v40, %v1914_v56 }
 0x230   : > { %v2113_v51 = vadd.f32 %v2105_v7, %v2090_v42  ;;  %v4775_v53 = vmul.f32 %v2057_v8, %v4559_v41  ;;  %v4778_v49 = vmul.f32 %v2060_v44, %v4582_v22  ;;  %v2055_v59 = vmul.f32 %v2038_v36, %v1915_v0 }
 0x231   : > { %v2050_v23 = vmul.f32 %v2028_v43, %v1910_v50 }
 0x232   : > { %v4786_v13 = vmul.f32 %v2113_v51, %v4572_v47  ;;  %2073 = vst.msk [vmem:[%s4739_s10] sm:$0xff] %vm1691_vm1, %v4775_v53  ;;  %v2088_v6 = vadd.f32 %v4741_v27, %v4775_v53  ;;  %v2103_v62 = vmul.f32 %v4743_v31, %v4775_v53  ;;  %2076 = vst.msk [vmem:[%s4739_s10 + $0x18] sm:$0xff] %vm1691_vm1, %v4778_v49 }
 0x233   : > { %v2091_v52 = vadd.f32 %v4741_v27, %v4778_v49  ;;  %v2106_v25 = vmul.f32 %v4743_v31, %v4778_v49  ;;  %v2357_v38 = vpack.c.bf16 %v4778_v49, %v4749_v35  ;;  %v2063_v15 = vadd.f32 %v2055_v59, %v2015_v34  ;;  %v2034_v58 = vpop.permute.xlu0 %2033 }
 0x234   : > { %v2058_v4 = vadd.f32 %v2050_v23, %v2010_v63  ;;  %v2519_v5 = vsel %vm1691_vm1, %v4786_v13, 0.0  ;;  %v2111_v39 = vadd.f32 %v2103_v62, %v2088_v6  ;;  %v2053_v32 = vmul.f32 %v2034_v58, %v1913_v19 }
 0x235   : > { %v2520_v17 = vrot.slane %v2519_v5, 4  ;;  %v2114_v12 = vadd.f32 %v2106_v25, %v2091_v52  ;;  %v4808_v2 = vmul.f32 %v2063_v15, %v4537_v18  ;;  %v2036_v30 = vpop.permute.xlu1 %2035 }
 0x236   : > { %v2066_v11 = vmul.f32 %v2058_v4, %v4512_v54  ;;  %v4812_v35 = vmul.f32 %v2111_v39, %v4559_v41  ;;  %v2061_v37 = vadd.f32 %v2053_v32, %v2013_v26  ;;  %v2054_v0 = vmul.f32 %v2036_v30, %v1914_v56 }
 0x237   : > { %v2521_v50 = vadd.f32 %v2520_v17, %v2519_v5  ;;  %v4816_v42 = vmul.f32 %v2114_v12, %v4582_v22  ;;  %2079 = vst.msk [vmem:[%s4739_s10 + $0x30] sm:$0xff] %vm1691_vm1, %v4808_v2  ;;  %v2094_v19 = vadd.f32 %v4741_v27, %v4808_v2  ;;  %v2109_v7 = vmul.f32 %v4743_v31, %v4808_v2  ;;  %v5489_v12 = vld [vmem:[#allocation34_spill] sm:$0xff] }
 0x238   : > { %2074 = vst.msk [vmem:[%s4739_s10 + $0x8] sm:$0xff] %vm1691_vm1, %v2066_v11  ;;  %v2505_v8 = vsel %vm1691_vm1, %v4812_v35, 0.0  ;;  %v2089_v44 = vadd.f32 %v4741_v27, %v2066_v11  ;;  %v2104_v36 = vmul.f32 %v4743_v31, %v2066_v11  ;;  %v2069_v43 = vmul.f32 %v2061_v37, %v4529_v3 }
 0x239   : > { %v2522_v56 = vrot.slane %v2521_v50, 2  ;;  %v2506_v51 = vrot.slane %v2505_v8, 4  ;;  %v2526_v49 = vsel %vm1691_vm1, %v4816_v42, 0.0  ;;  %v2117_v59 = vadd.f32 %v2109_v7, %v2094_v19 }
 0x23a   : > { %v2527_v34 = vrot.slane %v2526_v49, 4  ;;  %v2112_v63 = vadd.f32 %v2104_v36, %v2089_v44  ;;  %2077 = vst.msk [vmem:[%s4739_s10 + $0x20] sm:$0xff] %vm1691_vm1, %v2069_v43  ;;  %v2092_v23 = vadd.f32 %v4741_v27, %v2069_v43  ;;  %v2107_v6 = vmul.f32 %v4743_v31, %v2069_v43 }
 0x23b   : > { %v2523_v62 = vadd.f32 %v2522_v56, %v2521_v50  ;;  %v2507_v52 = vadd.f32 %v2506_v51, %v2505_v8  ;;  %v4839_v25 = vmul.f32 %v2117_v59, %v4537_v18  ;;  %v2062_v15 = vadd.f32 %v2054_v0, %v2014_v45 }
 0x23c   : > { %v2528_v4 = vadd.f32 %v2527_v34, %v2526_v49  ;;  %v4842_v58 = vmul.f32 %v2112_v63, %v4512_v54  ;;  %v2115_v5 = vadd.f32 %v2107_v6, %v2092_v23  ;;  %v2356_v39 = vpack.c.bf16 %v2066_v11, %v4775_v53  ;;  %v2040_v53 = vpop.permute.xlu1 %2039  ;;  %v5503_v54 = vld [vmem:[#allocation19_spill] sm:$0xff] }
 0x23d   : > { %v2508_v26 = vrot.slane %v2507_v52, 2  ;;  %v2547_v32 = vsel %vm1691_vm1, %v4839_v25, 0.0  ;;  %v2070_v17 = vmul.f32 %v2062_v15, %v4593_v57  ;;  %v2016_v30 = vadd.f32 %v5489_v12, %v4766_v21 }
 0x23e   : > { %v2529_v37 = vrot.slane %v2528_v4, 2  ;;  %v2548_v50 = vrot.slane %v2547_v32, 4  ;;  %v2512_v45 = vsel %vm1691_vm1, %v4842_v58, 0.0  ;;  %v4853_v0 = vmul.f32 %v2115_v5, %v4529_v3  ;;  %4031 = vmatprep.mubr.msk.bf16.mxu1 %vm1691_vm1, %v2356_v39 }
 0x23f   : > { %v2524_v11 = vrot.slane %v2523_v62, 1  ;;  %v2509_v19 = vadd.f32 %v2508_v26, %v2507_v52  ;;  %v2513_v7 = vrot.slane %v2512_v45, 4  ;;  %2078 = vst.msk [vmem:[%s4739_s10 + $0x28] sm:$0xff] %vm1691_vm1, %v2070_v17  ;;  %v2093_v8 = vadd.f32 %v4741_v27, %v2070_v17  ;;  %4032 = vmatmul.mubr.msk.bf16.vlgmr.msra.gmra.mxu1 %vm1691_vm1, %v2357_v38 }
 0x240   : > { %v2530_v44 = vadd.f32 %v2529_v37, %v2528_v4  ;;  %v4860_v36 = vadd.f32 %v2548_v50, %v2547_v32  ;;  %v2533_v56 = vsel %vm1691_vm1, %v4853_v0, 0.0  ;;  %v2108_v51 = vmul.f32 %v4743_v31, %v2070_v17  ;;  %v2564_v23 = vpop.permute.xlu0 %2563 }
 0x241   : > { %v2510_v49 = vrot.slane %v2509_v19, 1  ;;  %v2514_v59 = vadd.f32 %v2513_v7, %v2512_v45  ;;  %v2534_v34 = vrot.slane %v2533_v56, 4  ;;  %v2056_v63 = vmul.f32 %v2040_v53, %v4766_v21 }
 0x242   : > { %v2531_v6 = vrot.slane %v2530_v44, 1  ;;  %v2116_v52 = vadd.f32 %v2108_v51, %v2093_v8  ;;  %v2127_v15 = vpack.c.bf16 %v4842_v58, %v4812_v35  ;;  %v2358_v38 = vpack.c.bf16 %v2070_v17, %v2069_v43 }
 0x243   : > { %v2515_v4 = vrot.slane %v2514_v59, 2  ;;  %v2535_v5 = vadd.f32 %v2534_v34, %v2533_v56  ;;  %v2064_v39 = vadd.f32 %v2056_v63, %v2016_v30  ;;  %v4869_v26 = vadd.f32 1.0, %v4642_v29 }
 0x244   : > { %v4871_v32 = vadd.f32 %v2524_v11, %v2523_v62  ;;  %v4874_v37 = vmul.f32 %v2116_v52, %v4593_v57  ;;  %4021 = vmatprep.mubr.msk.bf16.mxu0 %vm1691_vm1, %v2127_v15  ;;  %4035 = vmatprep.mubr.msk.bf16.mxu1 %vm1691_vm1, %v2358_v38  ;;  %v2128_v21 = vpack.c.bf16 %v4816_v42, %v4786_v13  ;;  %4153 = vrcp.f32 %v2564_v23 }
 0x245   : > { %v2511_v43 = vadd.f32 %v2510_v49, %v2509_v19  ;;  %v2516_v17 = vadd.f32 %v2515_v4, %v2514_v59  ;;  %v2536_v30 = vrot.slane %v2535_v5, 2  ;;  %v2072_v29 = vmul.f32 %v2064_v39, %v4604_v61 }
 0x246   : > { %v2532_v50 = vadd.f32 %v2531_v6, %v2530_v44  ;;  %v2540_v62 = vsel %vm1691_vm1, %v4874_v37, 0.0  ;;  %4022 = vmatmul.mubr.msk.bf16.vlgmr.msra.gmra.mxu0 %vm1691_vm1, %v2128_v21  ;;  %v2129_v45 = vpack.c.bf16 %v4874_v37, %v4853_v0  ;;  %v4886_v53 = vpop.permute.xlu1 %2578 }
 0x247   : > { %v2517_v7 = vrot.slane %v2516_v17, 1  ;;  %v4889_v8 = vadd.f32 %v2536_v30, %v2535_v5  ;;  %v2541_v19 = vrot.slane %v2540_v62, 4  ;;  %2080 = vst.msk [vmem:[%s4739_s10 + $0x38] sm:$0xff] %vm1691_vm1, %v2072_v29  ;;  %v2095_v44 = vadd.f32 %v4741_v27, %v2072_v29  ;;  %s4217_s10 = smov 24  }
 0x248   : > { %v2110_v56 = vmul.f32 %v4743_v31, %v2072_v29  ;;  %v2359_v51 = vpack.c.bf16 %v2072_v29, %v4808_v2  ;;  %4025 = vmatprep.mubr.msk.bf16.mxu0 %vm1691_vm1, %v2129_v45  ;;  %v2645_v49 = vsub.f32 %v4812_v35, %v4886_v53  ;;  %v2646_v59 = vsub.f32 %v4842_v58, %v4886_v53 }
 0x249   : > { %v2518_v34 = vadd.f32 %v2517_v7, %v2516_v17  ;;  %v4901_v63 = vadd.f32 %v2541_v19, %v2540_v62  ;;  %v2647_v23 = vsub.f32 %v4786_v13, %v4886_v53  ;;  %v2648_v27 = vsub.f32 %v4816_v42, %v4886_v53 }
 0x24a   : > { %v2118_v31 = vadd.f32 %v2110_v56, %v2095_v44  ;;  %4036 = vmatmul.mubr.msk.bf16.gmra.mxu1 %vm1691_vm1, %v2359_v51  ;;  %v2649_v2 = vsub.f32 %v4853_v0, %v4886_v53  ;;  %v2650_v6 = vsub.f32 %v4874_v37, %v4886_v53  ;;  %v2651_v52 = vsub.f32 %v4839_v25, %v4886_v53 }
 0x24b   : > { %v2653_v38 = vsel %vm1691_vm1, %v2645_v49, -inf  ;;  %v2660_v4 = vsel %vm1691_vm1, %v2646_v59, -inf  ;;  %v2667_v5 = vsel %vm1691_vm1, %v2647_v23, -inf  ;;  %v2674_v29 = vsel %vm1691_vm1, %v2648_v27, -inf  ;;  %v5502_v49 = vld [vmem:[#allocation26_spill] sm:$0xff] }
 0x24c   : > { %v4919_v39 = vmul.f32 %v2118_v31, %v4604_v61  ;;  %v2654_v21 = vrot.slane %v2653_v38, 4  ;;  %v2661_v17 = vrot.slane %v2660_v4, 4  ;;  %v2668_v30 = vrot.slane %v2667_v5, 4 }
 0x24d   : > { %v2681_v62 = vsel %vm1691_vm1, %v2649_v2, -inf  ;;  %v2688_v45 = vsel %vm1691_vm1, %v2650_v6, -inf  ;;  %v2695_v7 = vsel %vm1691_vm1, %v2651_v52, -inf  ;;  %v2675_v27 = vrot.slane %v2674_v29, 4 }
 0x24e   : > { %v4927_v19 = vsel %vm1691_vm1, %v4919_v39, 0.0  ;;  %v2130_v44 = vpack.c.bf16 %v4919_v39, %v4839_v25  ;;  %v2652_v56 = vsub.f32 %v4919_v39, %v4886_v53  ;;  %v2655_v51 = vmax.f32 %v2653_v38, %v2654_v21 }
 0x24f   : > { %v2662_v59 = vmax.f32 %v2660_v4, %v2661_v17  ;;  %v2669_v23 = vmax.f32 %v2667_v5, %v2668_v30  ;;  %v2682_v2 = vrot.slane %v2681_v62, 4  ;;  %v2689_v6 = vrot.slane %v2688_v45, 4 }
 0x250   : > { %4026 = vmatmul.mubr.msk.bf16.gmra.mxu0 %vm1691_vm1, %v2130_v44  ;;  %v2656_v31 = vrot.slane %v2655_v51, 2  ;;  %v2696_v52 = vrot.slane %v2695_v7, 4  ;;  %v2676_v61 = vmax.f32 %v2674_v29, %v2675_v27  ;;  %v2702_v3 = vsel %vm1691_vm1, %v2652_v56, -inf  ;;  %v5500_v44 = vld [vmem:[#allocation16_spill] sm:$0xff] }
 0x251   : > { %v4935_v11 = vpop.eup %4153  ;;  %v2663_v15 = vrot.slane %v2662_v59, 2  ;;  %v2670_v57 = vrot.slane %v2669_v23, 2  ;;  %v5501_v56 = vld [vmem:[#allocation24_spill] sm:$0xff] }
 0x252   : > { %v4939_v38 = vmul.f32 %v4935_v11, %v2511_v43  ;;  %v4942_v4 = vmul.f32 %v4935_v11, %v2518_v34  ;;  %v4946_v5 = vmul.f32 %v4935_v11, %v4871_v32  ;;  %v4949_v21 = vmul.f32 %v4935_v11, %v2532_v50 }
 0x253   : > { %v4953_v17 = vmul.f32 %v4935_v11, %v4724_v24  ;;  %v4957_v30 = vmul.f32 %v4935_v11, %v4717_v33  ;;  %v4961_v43 = vmul.f32 %v4935_v11, %v4732_v1  ;;  %v4965_v34 = vmul.f32 %v4935_v11, %v4734_v10  ;;  %v5499_v10 = vld [vmem:[#allocation22_spill] sm:$0xff] }
 0x254   : > { %5490 = vst [vmem:[#allocation38_spill] sm:$0xff] %v4939_v38  ;;  %5491 = vst [vmem:[#allocation39_spill] sm:$0xff] %v4942_v4  ;;  %v4969_v32 = vmul.f32 %v4935_v11, %v4719_v28  ;;  %v2709_v24 = vsub.f32 %v4812_v35, %v4939_v38  ;;  %v2710_v50 = vsub.f32 %v4842_v58, %v4942_v4 }
 0x255   : > { %5492 = vst [vmem:[#allocation40_spill] sm:$0xff] %v4946_v5  ;;  %5493 = vst [vmem:[#allocation41_spill] sm:$0xff] %v4949_v21  ;;  %v2711_v33 = vsub.f32 %v4786_v13, %v4946_v5  ;;  %v4979_v1 = vsub.f32 %v4816_v42, %v4949_v21  ;;  %v3145_v29 = vsub.f32 %v5499_v10, %v4953_v17 }
 0x256   : > { %5494 = vst [vmem:[#allocation42_spill] sm:$0xff] %v4953_v17  ;;  %5495 = vst [vmem:[#allocation43_spill] sm:$0xff] %v4957_v30  ;;  %v3146_v28 = vsub.f32 %v5500_v44, %v4957_v30  ;;  %v3147_v27 = vsub.f32 %v5501_v56, %v4961_v43  ;;  %v3148_v18 = vsub.f32 %v5502_v49, %v4965_v34 }
 0x257   : > { %5496 = vst [vmem:[#allocation44_spill] sm:$0xff] %v4961_v43  ;;  %5497 = vst [vmem:[#allocation45_spill] sm:$0xff] %v4965_v34  ;;  %v3149_v22 = vsub.f32 %v5503_v54, %v4969_v32  ;;  %v4991_v41 = vmul.f32 %v2709_v24, %v2709_v24  ;;  %v4993_v47 = vmul.f32 %v2710_v50, %v2710_v50 }
 0x258   : > { %5498 = vst [vmem:[#allocation46_spill] sm:$0xff] %v4969_v32  ;;  %v4995_v12 = vmul.f32 %v2711_v33, %v2711_v33  ;;  %v4997_v40 = vmul.f32 %v3145_v29, %v3145_v29  ;;  %v4999_v16 = vmul.f32 %v3146_v28, %v3146_v28  ;;  %v5001_v20 = vmul.f32 %v3147_v27, %v3147_v27 }
 0x259   : > { %v5003_v21 = vmul.f32 %v3148_v18, %v3148_v18  ;;  %v5005_v5 = vmul.f32 %v3149_v22, %v3149_v22  ;;  %v2657_v34 = vmax.f32 %v2655_v51, %v2656_v31  ;;  %v2664_v4 = vmax.f32 %v2662_v59, %v2663_v15 }
 0x25a   : > { %5504 = vst [vmem:[#allocation22_spill] sm:$0xff] %v4995_v12  ;;  %5505 = vst [vmem:[#allocation16_spill] sm:$0xff] %v4997_v40  ;;  %v2671_v24 = vmax.f32 %v2669_v23, %v2670_v57  ;;  %v2677_v32 = vrot.slane %v2676_v61, 2  ;;  %v2683_v50 = vmax.f32 %v2681_v62, %v2682_v2  ;;  %v2690_v38 = vmax.f32 %v2688_v45, %v2689_v6 }
 0x25b   : > { %5506 = vst [vmem:[#allocation24_spill] sm:$0xff] %v4999_v16  ;;  %5507 = vst [vmem:[#allocation26_spill] sm:$0xff] %v5001_v20  ;;  %v2658_v43 = vrot.slane %v2657_v34, 1  ;;  %v2665_v33 = vrot.slane %v2664_v4, 1  ;;  %v2697_v30 = vmax.f32 %v2695_v7, %v2696_v52  ;;  %v2703_v29 = vrot.slane %v2702_v3, 4 }
 0x25c   : > { %5508 = vst [vmem:[#allocation19_spill] sm:$0xff] %v5003_v21  ;;  %5509 = vst [vmem:[#allocation47_spill] sm:$0xff] %v5005_v5  ;;  %v2672_v28 = vrot.slane %v2671_v24, 1  ;;  %v2678_v17 = vmax.f32 %v2676_v61, %v2677_v32  ;;  %v2684_v27 = vrot.slane %v2683_v50, 2  ;;  %v2691_v20 = vrot.slane %v2690_v38, 2 }
 0x25d   : > { %v2659_v18 = vmax.f32 %v2657_v34, %v2658_v43  ;;  %v2666_v22 = vmax.f32 %v2664_v4, %v2665_v33  ;;  %v2698_v5 = vrot.slane %v2697_v30, 2  ;;  %v2704_v51 = vmax.f32 %v2702_v3, %v2703_v29 }
 0x25e   : > { %v2673_v15 = vmax.f32 %v2671_v24, %v2672_v28  ;;  %v2679_v57 = vrot.slane %v2678_v17, 1  ;;  %v2685_v59 = vmax.f32 %v2683_v50, %v2684_v27  ;;  %v2692_v62 = vmax.f32 %v2690_v38, %v2691_v20  ;;  %v5510_v50 = vld [vmem:[#allocation28_spill] sm:$0xff] }
 0x25f   : > { %v2699_v45 = vmax.f32 %v2697_v30, %v2698_v5  ;;  %v2705_v23 = vrot.slane %v2704_v51, 2  ;;  %v2851_v7 = vsel %vm2810_vm3, %v2666_v22, %v2659_v18  ;;  %v3081_v61 = vsub.f32 %v5499_v10, %v4886_v53  ;;  %v5511_v28 = vld [vmem:[#allocation20_spill] sm:$0xff]  ;;  %v5512_v18 = vld [vmem:[#allocation30_spill] sm:$0xff] }
 0x260   : > { %v2680_v31 = vmax.f32 %v2678_v17, %v2679_v57  ;;  %v2686_v2 = vrot.slane %v2685_v59, 1  ;;  %v2693_v6 = vrot.slane %v2692_v62, 1  ;;  %v2852_v52 = vsel %vm2812_vm4, %v2673_v15, %v2851_v7 }
 0x261   : > { %v2700_v4 = vrot.slane %v2699_v45, 1  ;;  %v2706_v3 = vmax.f32 %v2704_v51, %v2705_v23  ;;  %v3082_v43 = vsub.f32 %v5500_v44, %v4886_v53  ;;  %v3083_v20 = vsub.f32 %v5501_v56, %v4886_v53 }
 0x262   : > { %v2687_v38 = vmax.f32 %v2685_v59, %v2686_v2  ;;  %v2694_v5 = vmax.f32 %v2692_v62, %v2693_v6  ;;  %v2853_v30 = vsel %vm2814_vm5, %v2680_v31, %v2852_v52  ;;  %v3084_v34 = vsub.f32 %v5502_v49, %v4886_v53 }
 0x263   : > { %v2701_v17 = vmax.f32 %v2699_v45, %v2700_v4  ;;  %v2707_v32 = vrot.slane %v2706_v3, 1  ;;  %v3085_v24 = vsub.f32 %v5503_v54, %v4886_v53  ;;  %v3086_v33 = vsub.f32 %v5510_v50, %v4886_v53 }
 0x264   : > { %v2854_v29 = vsel %vm2816_vm6, %v2687_v38, %v2853_v30  ;;  %v3087_v27 = vsub.f32 %v5511_v28, %v4886_v53  ;;  %v3088_v22 = vsub.f32 %v5512_v18, %v4886_v53  ;;  %v3089_v51 = vsel %vm1691_vm1, %v3081_v61, -inf }
 0x265   : > { %v2708_v15 = vmax.f32 %v2706_v3, %v2707_v32  ;;  %v2855_v57 = vsel %vm2818_vm7, %v2694_v5, %v2854_v29  ;;  %v3090_v59 = vrot.slane %v3089_v51, 4  ;;  %v3096_v62 = vsel %vm1691_vm1, %v3082_v43, -inf }
 0x266   : > { %v2856_v45 = vsel %vm2820_vm8, %v2701_v17, %v2855_v57  ;;  %v3097_v23 = vrot.slane %v3096_v62, 4  ;;  %v3103_v7 = vsel %vm1691_vm1, %v3083_v20, -inf  ;;  %v3110_v31 = vsel %vm1691_vm1, %v3084_v34, -inf }
 0x267   : > { %v5034_v2 = vsel %vm2822_vm9, %v2708_v15, %v2856_v45  ;;  %v3091_v6 = vmax.f32 %v3089_v51, %v3090_v59  ;;  %v3104_v52 = vrot.slane %v3103_v7, 4  ;;  %v3111_v4 = vrot.slane %v3110_v31, 4 }
 0x268   : > { %v3098_v61 = vmax.f32 %v3096_v62, %v3097_v23  ;;  %v3117_v3 = vsel %vm1691_vm1, %v3085_v24, -inf  ;;  %v3124_v38 = vsel %vm1691_vm1, %v3086_v33, -inf  ;;  %v3131_v43 = vsel %vm1691_vm1, %v3087_v27, -inf }
 0x269   : > { %v3092_v5 = vrot.slane %v3091_v6, 2  ;;  %v3105_v30 = vmax.f32 %v3103_v7, %v3104_v52  ;;  %v3112_v17 = vmax.f32 %v3110_v31, %v3111_v4  ;;  %v3118_v32 = vrot.slane %v3117_v3, 4 }
 0x26a   : > { %v3099_v20 = vrot.slane %v3098_v61, 2  ;;  %v3125_v29 = vrot.slane %v3124_v38, 4  ;;  %v3132_v34 = vrot.slane %v3131_v43, 4  ;;  %v3138_v15 = vsel %vm1691_vm1, %v3088_v22, -inf }
 0x26b   : > { %v3093_v57 = vmax.f32 %v3091_v6, %v3092_v5  ;;  %v3106_v51 = vrot.slane %v3105_v30, 2  ;;  %v3113_v59 = vrot.slane %v3112_v17, 2  ;;  %v3119_v45 = vmax.f32 %v3117_v3, %v3118_v32 }
 0x26c   : > { %v3100_v62 = vmax.f32 %v3098_v61, %v3099_v20  ;;  %v3126_v23 = vmax.f32 %v3124_v38, %v3125_v29  ;;  %v3133_v24 = vmax.f32 %v3131_v43, %v3132_v34  ;;  %v3139_v21 = vrot.slane %v3138_v15, 4 }
 0x26d   : > { %v3094_v33 = vrot.slane %v3093_v57, 1  ;;  %v3107_v16 = vmax.f32 %v3105_v30, %v3106_v51  ;;  %v3114_v27 = vmax.f32 %v3112_v17, %v3113_v59  ;;  %v3120_v40 = vrot.slane %v3119_v45, 2 }
 0x26e   : > { %v3101_v7 = vrot.slane %v3100_v62, 1  ;;  %v3127_v31 = vrot.slane %v3126_v23, 2  ;;  %v3134_v52 = vrot.slane %v3133_v24, 2  ;;  %v3140_v4 = vmax.f32 %v3138_v15, %v3139_v21 }
 0x26f   : > { %v3095_v55 = vmax.f32 %v3093_v57, %v3094_v33  ;;  %v3108_v9 = vrot.slane %v3107_v16, 1  ;;  %v3115_v48 = vrot.slane %v3114_v27, 1  ;;  %v3121_v22 = vmax.f32 %v3119_v45, %v3120_v40 }
 0x270   : > { %v3102_v6 = vmax.f32 %v3100_v62, %v3101_v7  ;;  %v3128_v5 = vmax.f32 %v3126_v23, %v3127_v31  ;;  %v3135_v12 = vmax.f32 %v3133_v24, %v3134_v52  ;;  %v3141_v3 = vrot.slane %v3140_v4, 2 }
 0x271   : > { %v3109_v61 = vmax.f32 %v3107_v16, %v3108_v9  ;;  %v3116_v38 = vmax.f32 %v3114_v27, %v3115_v48  ;;  %v3122_v43 = vrot.slane %v3121_v22, 1  ;;  %v2581_v30 = vadd.f32 %v4886_v53, %v4812_v35 }
 0x272   : > { %v3129_v17 = vrot.slane %v3128_v5, 1  ;;  %v3136_v32 = vrot.slane %v3135_v12, 1  ;;  %v3142_v20 = vmax.f32 %v3140_v4, %v3141_v3  ;;  %v3275_v29 = vsel %vm2810_vm3, %v3102_v6, %v3095_v55 }
 0x273   : > { %v3123_v21 = vmax.f32 %v3121_v22, %v3122_v43  ;;  %v3276_v34 = vsel %vm2812_vm4, %v3109_v61, %v3275_v29  ;;  %v2582_v40 = vadd.f32 %v4886_v53, %v4842_v58  ;;  %v2583_v15 = vadd.f32 %v4886_v53, %v4786_v13 }
 0x274   : > { %v3130_v16 = vmax.f32 %v3128_v5, %v3129_v17  ;;  %v3137_v9 = vmax.f32 %v3135_v12, %v3136_v32  ;;  %v3143_v48 = vrot.slane %v3142_v20, 1  ;;  %v3277_v57 = vsel %vm2814_vm5, %v3116_v38, %v3276_v34 }
 0x275   : > { %v3278_v35 = vsel %vm2816_vm6, %v3123_v21, %v3277_v57  ;;  %v2584_v51 = vadd.f32 %v4886_v53, %v4816_v42  ;;  %v2585_v55 = vadd.f32 %v4886_v53, %v4853_v0  ;;  %v2586_v59 = vadd.f32 %v4886_v53, %v4874_v37 }
 0x276   : > { %v3144_v58 = vmax.f32 %v3142_v20, %v3143_v48  ;;  %v3279_v45 = vsel %vm2818_vm7, %v3130_v16, %v3278_v35  ;;  %v2587_v13 = vadd.f32 %v4886_v53, %v4839_v25  ;;  %v2588_v12 = vadd.f32 %v4886_v53, %v4919_v39 }
 0x277   : > { %v3280_v62 = vsel %vm2820_vm8, %v3137_v9, %v3279_v45  ;;  %v2589_v23 = vsel %vm1691_vm1, %v2581_v30, inf  ;;  %v2596_v42 = vsel %vm1691_vm1, %v2582_v40, inf  ;;  %v2603_v24 = vsel %vm1691_vm1, %v2583_v15, inf }
 0x278   : > { %v3281_v33 = vsel %vm2822_vm9, %v3144_v58, %v3280_v62  ;;  %v2590_v27 = vrot.slane %v2589_v23, 4  ;;  %v2597_v7 = vrot.slane %v2596_v42, 4  ;;  %v2604_v31 = vrot.slane %v2603_v24, 4 }
 0x279   : > { %v4137_v52 = vpack.i.bf16 %v3281_v33, %v5034_v2  ;;  %v2610_v4 = vsel %vm1691_vm1, %v2584_v51, inf  ;;  %v2617_v22 = vsel %vm1691_vm1, %v2585_v55, inf  ;;  %v2624_v6 = vsel %vm1691_vm1, %v2586_v59, inf }
 0x27a   : > { %v2591_v5 = vmin.f32 %v2589_v23, %v2590_v27  ;;  %v2598_v3 = vmin.f32 %v2596_v42, %v2597_v7  ;;  %v2605_v61 = vmin.f32 %v2603_v24, %v2604_v31  ;;  %v2611_v38 = vrot.slane %v2610_v4, 4 }
 0x27b   : > { %4138 = vrot.lane.b32.xlu0 %v4137_v52, %s4213_s11  ;;  %v2618_v43 = vrot.slane %v2617_v22, 4  ;;  %v2625_v30 = vrot.slane %v2624_v6, 4  ;;  %v2631_v17 = vsel %vm1691_vm1, %v2587_v13, inf  ;;  %v2638_v32 = vsel %vm1691_vm1, %v2588_v12, inf  ;;  %s5539_s11 = sld [smem:[#allocation7_spill]] }
 0x27c   : > { %v2592_v20 = vrot.slane %v2591_v5, 2  ;;  %v2599_v2 = vrot.slane %v2598_v3, 2  ;;  %v2606_v29 = vrot.slane %v2605_v61, 2  ;;  %v2612_v21 = vmin.f32 %v2610_v4, %v2611_v38 }
 0x27d   : > { %v2619_v34 = vmin.f32 %v2617_v22, %v2618_v43  ;;  %v2626_v40 = vmin.f32 %v2624_v6, %v2625_v30  ;;  %v2632_v15 = vrot.slane %v2631_v17, 4  ;;  %v2639_v16 = vrot.slane %v2638_v32, 4 }
 0x27e   : > { %v2593_v9 = vmin.f32 %v2591_v5, %v2592_v20  ;;  %v2600_v48 = vmin.f32 %v2598_v3, %v2599_v2  ;;  %v2607_v57 = vmin.f32 %v2605_v61, %v2606_v29  ;;  %v2613_v35 = vrot.slane %v2612_v21, 2 }
 0x27f   : > { %v2620_v51 = vrot.slane %v2619_v34, 2  ;;  %v2627_v55 = vrot.slane %v2626_v40, 2  ;;  %v2633_v59 = vmin.f32 %v2631_v17, %v2632_v15  ;;  %v2640_v58 = vmin.f32 %v2638_v32, %v2639_v16  ;;  %2259 = vrot.lane.b32.xlu0 %v4769_v14, %s4212_s23 }
 0x280   : > { %v2594_v45 = vrot.slane %v2593_v9, 1  ;;  %v2601_v13 = vrot.slane %v2600_v48, 1  ;;  %v2608_v12 = vrot.slane %v2607_v57, 1  ;;  %v2614_v62 = vmin.f32 %v2612_v21, %v2613_v35 }
 0x281   : > { %v2621_v23 = vmin.f32 %v2619_v34, %v2620_v51  ;;  %v2628_v42 = vmin.f32 %v2626_v40, %v2627_v55  ;;  %v2634_v24 = vrot.slane %v2633_v59, 2  ;;  %v2641_v33 = vrot.slane %v2640_v58, 2 }
 0x282   : > { %v2595_v27 = vmin.f32 %v2593_v9, %v2594_v45  ;;  %v2602_v7 = vmin.f32 %v2600_v48, %v2601_v13  ;;  %v2609_v31 = vmin.f32 %v2607_v57, %v2608_v12  ;;  %v2615_v52 = vrot.slane %v2614_v62, 1 }
 0x283   : > { %v2622_v4 = vrot.slane %v2621_v23, 1  ;;  %v2629_v22 = vrot.slane %v2628_v42, 1  ;;  %v2635_v6 = vmin.f32 %v2633_v59, %v2634_v24  ;;  %v2642_v5 = vmin.f32 %v2640_v58, %v2641_v33  ;;  %2263 = vrot.lane.b32.xlu0 %v4772_v46, %s4212_s23 }
 0x284   : > { %v2616_v14 = vmin.f32 %v2614_v62, %v2615_v52  ;;  %v2833_v3 = vsel %vm2810_vm3, %v2602_v7, %v2595_v27  ;;  %v3017_v61 = vadd.f32 %v4886_v53, %v5499_v10  ;;  %v3018_v38 = vadd.f32 %v4886_v53, %v5500_v44 }
 0x285   : > { %v2623_v43 = vmin.f32 %v2621_v23, %v2622_v4  ;;  %v2630_v30 = vmin.f32 %v2628_v42, %v2629_v22  ;;  %v2636_v17 = vrot.slane %v2635_v6, 1  ;;  %v2643_v32 = vrot.slane %v2642_v5, 1 }
 0x286   : > { %v2834_v20 = vsel %vm2812_vm4, %v2609_v31, %v2833_v3  ;;  %v3019_v2 = vadd.f32 %v4886_v53, %v5501_v56  ;;  %v3020_v46 = vadd.f32 %v4886_v53, %v5502_v49  ;;  %v3021_v29 = vadd.f32 %v4886_v53, %v5503_v54 }
 0x287   : > { %v2637_v21 = vmin.f32 %v2635_v6, %v2636_v17  ;;  %v2644_v10 = vmin.f32 %v2642_v5, %v2643_v32  ;;  %v2835_v34 = vsel %vm2814_vm5, %v2616_v14, %v2834_v20  ;;  %v3022_v44 = vadd.f32 %v4886_v53, %v5510_v50  ;;  %2267 = vrot.lane.b32.xlu0 %v4869_v26, %s4212_s23 }
 0x288   : > { %v2836_v40 = vsel %vm2816_vm6, %v2623_v43, %v2835_v34  ;;  %v3023_v56 = vadd.f32 %v4886_v53, %v5511_v28  ;;  %v3024_v49 = vadd.f32 %v4886_v53, %v5512_v18  ;;  %v3025_v54 = vsel %vm1691_vm1, %v3017_v61, inf }
 0x289   : > { %v2837_v15 = vsel %vm2818_vm7, %v2630_v30, %v2836_v40  ;;  %v3026_v16 = vrot.slane %v3025_v54, 4  ;;  %v3032_v9 = vsel %vm1691_vm1, %v3018_v38, inf  ;;  %v3039_v48 = vsel %vm1691_vm1, %v3019_v2, inf }
 0x28a   : > { %v2838_v57 = vsel %vm2820_vm8, %v2637_v21, %v2837_v15  ;;  %v3033_v26 = vrot.slane %v3032_v9, 4  ;;  %v3040_v35 = vrot.slane %v3039_v48, 4  ;;  %v3046_v51 = vsel %vm1691_vm1, %v3020_v46, inf }
 0x28b   : > { %v5105_v55 = vsel %vm2822_vm9, %v2644_v10, %v2838_v57  ;;  %v3027_v59 = vmin.f32 %v3025_v54, %v3026_v16  ;;  %v3047_v53 = vrot.slane %v3046_v51, 4  ;;  %v3053_v58 = vsel %vm1691_vm1, %v3021_v29, inf  ;;  %2271 = vrot.lane.b32.xlu0 %v4783_v60, %s4212_s23 }
 0x28c   : > { %v3034_v45 = vmin.f32 %v3032_v9, %v3033_v26  ;;  %v3041_v13 = vmin.f32 %v3039_v48, %v3040_v35  ;;  %v3054_v12 = vrot.slane %v3053_v58, 4  ;;  %v3060_v62 = vsel %vm1691_vm1, %v3022_v44, inf }
 0x28d   : > { %v3028_v23 = vrot.slane %v3027_v59, 2  ;;  %v3048_v42 = vmin.f32 %v3046_v51, %v3047_v53  ;;  %v3061_v24 = vrot.slane %v3060_v62, 4  ;;  %v3067_v33 = vsel %vm1691_vm1, %v3023_v56, inf }
 0x28e   : > { %v3035_v27 = vrot.slane %v3034_v45, 2  ;;  %v3042_v7 = vrot.slane %v3041_v13, 2  ;;  %v3055_v31 = vmin.f32 %v3053_v58, %v3054_v12  ;;  %v3068_v52 = vrot.slane %v3067_v33, 4 }
 0x28f   : > { %v3029_v4 = vmin.f32 %v3027_v59, %v3028_v23  ;;  %v3049_v22 = vrot.slane %v3048_v42, 2  ;;  %v3062_v6 = vmin.f32 %v3060_v62, %v3061_v24  ;;  %v3074_v5 = vsel %vm1691_vm1, %v3024_v49, inf }
 0x290   : > { %v3036_v60 = vmin.f32 %v3034_v45, %v3035_v27  ;;  %v3043_v14 = vmin.f32 %v3041_v13, %v3042_v7  ;;  %v3056_v3 = vrot.slane %v3055_v31, 2  ;;  %v3069_v61 = vmin.f32 %v3067_v33, %v3068_v52 }
 0x291   : > { %v3030_v38 = vrot.slane %v3029_v4, 1  ;;  %v3050_v43 = vmin.f32 %v3048_v42, %v3049_v22  ;;  %v3063_v30 = vrot.slane %v3062_v6, 2  ;;  %v3075_v17 = vrot.slane %v3074_v5, 4  ;;  %v5134_v22 = vpop.permute.xlu0 %2727 }
 0x292   : > { %v3037_v32 = vrot.slane %v3036_v60, 1  ;;  %v3044_v20 = vrot.slane %v3043_v14, 1  ;;  %v3057_v2 = vmin.f32 %v3055_v31, %v3056_v3  ;;  %v3070_v46 = vrot.slane %v3069_v61, 2 }
 0x293   : > { %v3031_v29 = vmin.f32 %v3029_v4, %v3030_v38  ;;  %v3051_v21 = vrot.slane %v3050_v43, 1  ;;  %v3064_v10 = vmin.f32 %v3062_v6, %v3063_v30  ;;  %v3076_v34 = vmin.f32 %v3074_v5, %v3075_v17  ;;  %v5516_v30 = vld [vmem:[#allocation22_spill] sm:$0xff] }
 0x294   : > { %v3038_v44 = vmin.f32 %v3036_v60, %v3037_v32  ;;  %v3045_v40 = vmin.f32 %v3043_v14, %v3044_v20  ;;  %v3058_v56 = vrot.slane %v3057_v2, 1  ;;  %v3071_v49 = vmin.f32 %v3069_v61, %v3070_v46 }
 0x295   : > { %v3052_v54 = vmin.f32 %v3050_v43, %v3051_v21  ;;  %v3065_v15 = vrot.slane %v3064_v10, 1  ;;  %v3077_v16 = vrot.slane %v3076_v34, 2  ;;  %v2538_v9 = vrot.slane %v4889_v8, 1 }
 0x296   : > { %v3059_v48 = vmin.f32 %v3057_v2, %v3058_v56  ;;  %v3072_v57 = vrot.slane %v3071_v49, 1  ;;  %v3257_v26 = vsel %vm2810_vm3, %v3038_v44, %v3031_v29  ;;  %v5513_v35 = vrot.slane %v4901_v63, 2 }
 0x297   : > { %v3066_v59 = vmin.f32 %v3064_v10, %v3065_v15  ;;  %v3078_v53 = vmin.f32 %v3076_v34, %v3077_v16  ;;  %v3258_v58 = vsel %vm2812_vm4, %v3045_v40, %v3257_v26  ;;  %v2539_v45 = vadd.f32 %v2538_v9, %v4889_v8 }
 0x298   : > { %v2544_v51 = vadd.f32 %v5513_v35, %v4901_v63  ;;  %v3073_v13 = vmin.f32 %v3071_v49, %v3072_v57  ;;  %v3259_v12 = vsel %vm2814_vm5, %v3052_v54, %v3258_v58  ;;  %v5514_v23 = vrot.slane %v4860_v36, 2 }
 0x299   : > { %v3079_v24 = vrot.slane %v3078_v53, 1  ;;  %v3260_v33 = vsel %vm2816_vm6, %v3059_v48, %v3259_v12  ;;  %v5515_v63 = vrot.slane %v4927_v19, 4  ;;  %v5129_v7 = vmul.f32 %v4935_v11, %v2539_v45 }
 0x29a   : > { %v2545_v62 = vrot.slane %v2544_v51, 1  ;;  %v2551_v42 = vadd.f32 %v5514_v23, %v4860_v36  ;;  %v3261_v8 = vsel %vm2818_vm7, %v3066_v59, %v3260_v33  ;;  %v2720_v4 = vmul.f32 %v4979_v1, %v4979_v1 }
 0x29b   : > { %v2556_v27 = vadd.f32 %v5515_v63, %v4927_v19  ;;  %v3080_v36 = vmin.f32 %v3078_v53, %v3079_v24  ;;  %v3262_v6 = vsel %vm2820_vm8, %v3073_v13, %v3261_v8  ;;  %v2713_v60 = vsub.f32 %v4853_v0, %v5129_v7 }
 0x29c   : > { %v2546_v31 = vadd.f32 %v2545_v62, %v2544_v51  ;;  %v2552_v52 = vrot.slane %v2551_v42, 1  ;;  %v2730_v3 = vmul.f32 %v5134_v22, %v4991_v41  ;;  %v2731_v61 = vmul.f32 %v5134_v22, %v4993_v47 }
 0x29d   : > { %v2557_v5 = vrot.slane %v2556_v27, 2  ;;  %v3263_v1 = vsel %vm2822_vm9, %v3080_v36, %v3262_v6  ;;  %v2721_v43 = vmul.f32 %v2713_v60, %v2713_v60  ;;  %v2732_v17 = vmul.f32 %v5134_v22, %v5516_v30 }
 0x29e   : > { %v2553_v19 = vadd.f32 %v2552_v52, %v2551_v42  ;;  %v5140_v14 = vmul.f32 %v4935_v11, %v2546_v31  ;;  %v4132_v32 = vpack.i.bf16 %v3263_v1, %v5105_v55  ;;  %v2733_v41 = vmul.f32 %v5134_v22, %v2720_v4 }
 0x29f   : > { %v2558_v38 = vadd.f32 %v2557_v5, %v2556_v27  ;;  %v2734_v47 = vmul.f32 %v5134_v22, %v2721_v43  ;;  %v2738_v46 = vsel %vm1691_vm1, %v2730_v3, 0.0  ;;  %v2745_v29 = vsel %vm1691_vm1, %v2731_v61, 0.0 }
 0x2a0   : > { %v5151_v0 = vmul.f32 %v4935_v11, %v2553_v19  ;;  %v2714_v20 = vsub.f32 %v4874_v37, %v5140_v14  ;;  %4133 = vrot.lane.b32.xlu1 %v4132_v32, %s4214_s26  ;;  %v2739_v10 = vrot.slane %v2738_v46, 4  ;;  %v2746_v34 = vrot.slane %v2745_v29, 4  ;;  %s5542_s26 = sld [smem:[#allocation14_spill]] }
 0x2a1   : > { %v2559_v2 = vrot.slane %v2558_v38, 1  ;;  %v2752_v37 = vsel %vm1691_vm1, %v2732_v17, 0.0  ;;  %v2759_v40 = vsel %vm1691_vm1, %v2733_v41, 0.0  ;;  %v2766_v56 = vsel %vm1691_vm1, %v2734_v47, 0.0 }
 0x2a2   : > { %v2715_v55 = vsub.f32 %v4839_v25, %v5151_v0  ;;  %v2722_v21 = vmul.f32 %v2714_v20, %v2714_v20  ;;  %v2740_v15 = vadd.f32 %v2739_v10, %v2738_v46  ;;  %v2747_v16 = vadd.f32 %v2746_v34, %v2745_v29  ;;  %v5517_v34 = vld [vmem:[#allocation36_spill] sm:$0xff] }
 0x2a3   : > { %v2560_v44 = vadd.f32 %v2559_v2, %v2558_v38  ;;  %v2753_v48 = vrot.slane %v2752_v37, 4  ;;  %v2760_v25 = vrot.slane %v2759_v40, 4  ;;  %v2767_v57 = vrot.slane %v2766_v56, 4 }
 0x2a4   : > { %v2723_v49 = vmul.f32 %v2715_v55, %v2715_v55  ;;  %v2735_v54 = vmul.f32 %v5134_v22, %v2722_v21  ;;  %v2741_v35 = vrot.slane %v2740_v15, 2  ;;  %v2748_v51 = vrot.slane %v2747_v16, 2 }
 0x2a5   : > { %v5166_v9 = vmul.f32 %v4935_v11, %v2560_v44  ;;  %v2754_v58 = vadd.f32 %v2753_v48, %v2752_v37  ;;  %v2761_v45 = vadd.f32 %v2760_v25, %v2759_v40  ;;  %v2768_v13 = vadd.f32 %v2767_v57, %v2766_v56  ;;  %v5518_v48 = vld [vmem:[#allocation35_spill] sm:$0xff] }
 0x2a6   : > { %v2736_v26 = vmul.f32 %v5134_v22, %v2723_v49  ;;  %v2773_v59 = vsel %vm1691_vm1, %v2735_v54, 0.0  ;;  %v2742_v12 = vadd.f32 %v2741_v35, %v2740_v15  ;;  %v2749_v62 = vadd.f32 %v2748_v51, %v2747_v16 }
 0x2a7   : > { %v2716_v53 = vsub.f32 %v4919_v39, %v5166_v9  ;;  %v2774_v23 = vrot.slane %v2773_v59, 4  ;;  %v2755_v33 = vrot.slane %v2754_v58, 2  ;;  %v2762_v63 = vrot.slane %v2761_v45, 2 }
 0x2a8   : > { %v2780_v42 = vsel %vm1691_vm1, %v2736_v26, 0.0  ;;  %v2769_v27 = vrot.slane %v2768_v13, 2  ;;  %v2743_v8 = vrot.slane %v2742_v12, 1  ;;  %v2750_v31 = vrot.slane %v2749_v62, 1  ;;  %v5519_v26 = vld [vmem:[#allocation37_spill] sm:$0xff] }
 0x2a9   : > { %v2724_v24 = vmul.f32 %v2716_v53, %v2716_v53  ;;  %v2775_v52 = vadd.f32 %v2774_v23, %v2773_v59  ;;  %v2781_v4 = vrot.slane %v2780_v42, 4  ;;  %v2756_v6 = vadd.f32 %v2755_v33, %v2754_v58  ;;  %v5520_v59 = vld [vmem:[#allocation16_spill] sm:$0xff] }
 0x2aa   : > { %v2763_v39 = vadd.f32 %v2762_v63, %v2761_v45  ;;  %v2770_v5 = vadd.f32 %v2769_v27, %v2768_v13  ;;  %v2744_v60 = vadd.f32 %v2743_v8, %v2742_v12  ;;  %v2751_v19 = vadd.f32 %v2750_v31, %v2749_v62  ;;  %v5521_v27 = vld [vmem:[#allocation24_spill] sm:$0xff] }
 0x2ab   : > { %v2737_v36 = vmul.f32 %v5134_v22, %v2724_v24  ;;  %v2776_v3 = vrot.slane %v2775_v52, 2  ;;  %v2782_v61 = vadd.f32 %v2781_v4, %v2780_v42  ;;  %v2757_v1 = vrot.slane %v2756_v6, 1  ;;  %v5522_v4 = vld [vmem:[#allocation26_spill] sm:$0xff] }
 0x2ac   : > { %v2764_v38 = vrot.slane %v2763_v39, 1  ;;  %v2771_v43 = vrot.slane %v2770_v5, 1  ;;  %v2794_v41 = vmul.f32 %v4935_v11, %v2744_v60  ;;  %v2795_v29 = vmul.f32 %v4935_v11, %v2751_v19 }
 0x2ad   : > { %v2787_v30 = vsel %vm1691_vm1, %v2737_v36, 0.0  ;;  %v2777_v17 = vadd.f32 %v2776_v3, %v2775_v52  ;;  %v2783_v32 = vrot.slane %v2782_v61, 2  ;;  %v2758_v2 = vadd.f32 %v2757_v1, %v2756_v6  ;;  %v5523_v6 = vld [vmem:[#allocation19_spill] sm:$0xff] }
 0x2ae   : > { %v2788_v20 = vrot.slane %v2787_v30, 4  ;;  %v2765_v47 = vadd.f32 %v2764_v38, %v2763_v39  ;;  %v2772_v46 = vadd.f32 %v2771_v43, %v2770_v5  ;;  %v5179_v44 = vmul.f32 %v4935_v11, %v5517_v34  ;;  %v5524_v5 = vld [vmem:[#allocation47_spill] sm:$0xff] }
 0x2af   : > { %v2778_v55 = vrot.slane %v2777_v17, 1  ;;  %v2784_v21 = vadd.f32 %v2783_v32, %v2782_v61  ;;  %v2796_v37 = vmul.f32 %v4935_v11, %v2758_v2  ;;  %v2869_v49 = vsel %vm2810_vm3, %v2795_v29, %v2794_v41 }
 0x2b0   : > { %v2789_v10 = vadd.f32 %v2788_v20, %v2787_v30  ;;  %v2797_v40 = vmul.f32 %v4935_v11, %v2765_v47  ;;  %v2798_v56 = vmul.f32 %v4935_v11, %v2772_v46  ;;  %v5187_v25 = vmul.f32 %v4935_v11, %v5518_v48 }
 0x2b1   : > { %v2779_v54 = vadd.f32 %v2778_v55, %v2777_v17  ;;  %v2785_v15 = vrot.slane %v2784_v21, 1  ;;  %v2870_v57 = vsel %vm2812_vm4, %v2796_v37, %v2869_v49  ;;  %v5192_v35 = vmul.f32 %v4935_v11, %v5519_v26 }
 0x2b2   : > { %v2790_v16 = vrot.slane %v2789_v10, 2  ;;  %v3150_v51 = vsub.f32 %v5510_v50, %v5179_v44  ;;  %v3161_v53 = vmul.f32 %v5520_v59, %v5134_v22  ;;  %v2871_v12 = vsel %vm2814_vm5, %v2797_v40, %v2870_v57 }
 0x2b3   : > { %v2786_v58 = vadd.f32 %v2785_v15, %v2784_v21  ;;  %v2799_v13 = vmul.f32 %v4935_v11, %v2779_v54  ;;  %v2872_v62 = vsel %vm2816_vm6, %v2798_v56, %v2871_v12  ;;  %v3151_v23 = vsub.f32 %v5511_v28, %v5187_v25 }
 0x2b4   : > { %v2791_v45 = vadd.f32 %v2790_v16, %v2789_v10  ;;  %v3152_v42 = vsub.f32 %v5512_v18, %v5192_v35  ;;  %v3158_v24 = vmul.f32 %v3150_v51, %v3150_v51  ;;  %v3162_v8 = vmul.f32 %v5521_v27, %v5134_v22 }
 0x2b5   : > { %v2800_v50 = vmul.f32 %v4935_v11, %v2786_v58  ;;  %v2873_v63 = vsel %vm2818_vm7, %v2799_v13, %v2872_v62  ;;  %v3159_v31 = vmul.f32 %v3151_v23, %v3151_v23  ;;  %v3163_v36 = vmul.f32 %v5522_v4, %v5134_v22 }
 0x2b6   : > { %v2792_v33 = vrot.slane %v2791_v45, 1  ;;  %v3160_v52 = vmul.f32 %v3152_v42, %v3152_v42  ;;  %v3164_v28 = vmul.f32 %v5523_v6, %v5134_v22  ;;  %v3165_v60 = vmul.f32 %v5524_v5, %v5134_v22 }
 0x2b7   : > { %v2874_v18 = vsel %vm2820_vm8, %v2800_v50, %v2873_v63  ;;  %v3166_v19 = vmul.f32 %v3158_v24, %v5134_v22  ;;  %v3167_v3 = vmul.f32 %v3159_v31, %v5134_v22  ;;  %v3169_v1 = vsel %vm1691_vm1, %v3161_v53, 0.0 }
 0x2b8   : > { %v2793_v39 = vadd.f32 %v2792_v33, %v2791_v45  ;;  %v3168_v61 = vmul.f32 %v3160_v52, %v5134_v22  ;;  %v3176_v38 = vsel %vm1691_vm1, %v3162_v8, 0.0  ;;  %v3170_v30 = vrot.slane %v3169_v1, 4 }
 0x2b9   : > { %v3177_v17 = vrot.slane %v3176_v38, 4  ;;  %v3183_v32 = vsel %vm1691_vm1, %v3163_v36, 0.0  ;;  %v3190_v41 = vsel %vm1691_vm1, %v3164_v28, 0.0  ;;  %v3197_v2 = vsel %vm1691_vm1, %v3165_v60, 0.0 }
 0x2ba   : > { %v2801_v43 = vmul.f32 %v4935_v11, %v2793_v39  ;;  %v3184_v20 = vrot.slane %v3183_v32, 4  ;;  %v3204_v47 = vsel %vm1691_vm1, %v3166_v19, 0.0  ;;  %v3171_v22 = vadd.f32 %v3170_v30, %v3169_v1 }
 0x2bb   : > { %v3178_v29 = vadd.f32 %v3177_v17, %v3176_v38  ;;  %v3191_v55 = vrot.slane %v3190_v41, 4  ;;  %v3198_v10 = vrot.slane %v3197_v2, 4  ;;  %v3205_v34 = vrot.slane %v3204_v47, 4 }
 0x2bc   : > { %v5227_v46 = vsel %vm2822_vm9, %v2801_v43, %v2874_v18  ;;  %v3185_v21 = vadd.f32 %v3184_v20, %v3183_v32  ;;  %v3211_v37 = vsel %vm1691_vm1, %v3167_v3, 0.0  ;;  %v3172_v40 = vrot.slane %v3171_v22, 2  ;;  %v5527_v32 = vld [vmem:[#allocation42_spill] sm:$0xff]  ;;  %v5528_v20 = vld [vmem:[#allocation43_spill] sm:$0xff] }
 0x2bd   : > { %v3179_v56 = vrot.slane %v3178_v29, 2  ;;  %v3192_v49 = vadd.f32 %v3191_v55, %v3190_v41  ;;  %v3212_v54 = vrot.slane %v3211_v37, 4  ;;  %v3199_v16 = vadd.f32 %v3198_v10, %v3197_v2  ;;  %v5529_v10 = vld [vmem:[#allocation44_spill] sm:$0xff] }
 0x2be   : > { %v3186_v15 = vrot.slane %v3185_v21, 2  ;;  %v3206_v48 = vadd.f32 %v3205_v34, %v3204_v47  ;;  %v3218_v57 = vsel %vm1691_vm1, %v3168_v61, 0.0  ;;  %v3173_v26 = vadd.f32 %v3172_v40, %v3171_v22  ;;  %v5531_v40 = vld [vmem:[#allocation39_spill] sm:$0xff] }
 0x2bf   : > { %v3180_v51 = vadd.f32 %v3179_v56, %v3178_v29  ;;  %v3193_v59 = vrot.slane %v3192_v49, 2  ;;  %v3213_v53 = vadd.f32 %v3212_v54, %v3211_v37  ;;  %v3200_v45 = vrot.slane %v3199_v16, 2  ;;  %v5530_v37 = vld [vmem:[#allocation38_spill] sm:$0xff] }
 0x2c0   : > { %v3187_v58 = vadd.f32 %v3186_v15, %v3185_v21  ;;  %v3207_v13 = vrot.slane %v3206_v48, 2  ;;  %v3219_v12 = vrot.slane %v3218_v57, 4  ;;  %v3174_v62 = vrot.slane %v3173_v26, 1 }
 0x2c1   : > { %v3181_v23 = vrot.slane %v3180_v51, 1  ;;  %v3194_v42 = vadd.f32 %v3193_v59, %v3192_v49  ;;  %v3214_v24 = vrot.slane %v3213_v53, 2  ;;  %v3201_v50 = vadd.f32 %v3200_v45, %v3199_v16  ;;  %v4149_v49 = vld [vmem:[%s5525_s1 + $0x8] sm:$0xff]   ;;  %v5532_v16 = vld [vmem:[#allocation45_spill] sm:$0xff] }
 0x2c2   : > { %v3188_v33 = vrot.slane %v3187_v58, 1  ;;  %v3208_v63 = vadd.f32 %v3207_v13, %v3206_v48  ;;  %v3220_v27 = vadd.f32 %v3219_v12, %v3218_v57  ;;  %v3175_v8 = vadd.f32 %v3174_v62, %v3173_v26  ;;  %v5533_v57 = vld [vmem:[#allocation40_spill] sm:$0xff]  ;;  %v5535_v45 = vld [vmem:[#allocation41_spill] sm:$0xff] }
 0x2c3   : > { %v3182_v31 = vadd.f32 %v3181_v23, %v3180_v51  ;;  %v3195_v52 = vrot.slane %v3194_v42, 1  ;;  %v3215_v4 = vadd.f32 %v3214_v24, %v3213_v53  ;;  %v3202_v6 = vrot.slane %v3201_v50, 1  ;;  %v4150_v51 = vld [vmem:[%s5526_s2 + $0x8] sm:$0xff]   ;;  %v5534_v53 = vld [vmem:[#allocation46_spill] sm:$0xff] }
 0x2c4   : > { %v3189_v36 = vadd.f32 %v3188_v33, %v3187_v58  ;;  %v3209_v28 = vrot.slane %v3208_v63, 1  ;;  %v3221_v39 = vrot.slane %v3220_v27, 2  ;;  %v3225_v60 = vmul.f32 %v4935_v11, %v3175_v8  ;;  %v5538_v8 = vld [vmem:[#allocation31_spill] sm:$0xff] }
 0x2c5   : > { %v3196_v18 = vadd.f32 %v3195_v52, %v3194_v42  ;;  %v3216_v5 = vrot.slane %v3215_v4, 1  ;;  %v3226_v19 = vmul.f32 %v4935_v11, %v3182_v31  ;;  %v3203_v3 = vadd.f32 %v3202_v6, %v3201_v50  ;;  %v5541_v52 = vld [vmem:[#allocation34_spill] sm:$0xff]  ;;  %v5294_v6 = vld [vmem:[%s5536_s7] ss:$0 sm:$0xff]  ;;  %s1282_s7 = scalar_lea.vmem %s4366_s21, %s4404_s22 }
 0x2c6   : > { %v3210_v61 = vadd.f32 %v3209_v28, %v3208_v63  ;;  %v3222_v1 = vadd.f32 %v3221_v39, %v3220_v27  ;;  %v3227_v38 = vmul.f32 %v4935_v11, %v3189_v36  ;;  %v3241_v41 = vsel %vm2810_vm3, %v5528_v20, %v5527_v32 }
 0x2c7   : > { %v3217_v43 = vadd.f32 %v3216_v5, %v3215_v4  ;;  %v3228_v30 = vmul.f32 %v4935_v11, %v3196_v18  ;;  %v3293_v17 = vsel %vm2810_vm3, %v3226_v19, %v3225_v60  ;;  %v3229_v47 = vmul.f32 %v4935_v11, %v3203_v3 }
 0x2c8   : > { %v3223_v2 = vrot.slane %v3222_v1, 1  ;;  %v3230_v22 = vmul.f32 %v4935_v11, %v3210_v61  ;;  %v3294_v29 = vsel %vm2812_vm4, %v3227_v38, %v3293_v17  ;;  %v3242_v34 = vsel %vm2812_vm4, %v5529_v10, %v3241_v41  ;;  %v3930_v61 = vld [vmem:[%s5539_s11] ss:$0 sm:$0xff]  ;;  %s3963_s11 = sshll.u32 %s5558_s15, 5  ;;  %s1290_s15 = scalar_lea.vmem %s4371_s25, %s4415_s28 }
 0x2c9   : > { %v3231_v55 = vmul.f32 %v4935_v11, %v3217_v43  ;;  %v3295_v21 = vsel %vm2814_vm5, %v3228_v30, %v3294_v29  ;;  %v2811_v56 = vsel %vm2810_vm3, %v5531_v40, %v5530_v37  ;;  %v3243_v48 = vsel %vm2814_vm5, %v5532_v16, %v3242_v34  ;;  %v5544_v34 = vld [vmem:[#allocation21_spill] sm:$0xff] }
 0x2ca   : > { %v3224_v54 = vadd.f32 %v3223_v2, %v3222_v1  ;;  %v3296_v15 = vsel %vm2816_vm6, %v3229_v47, %v3295_v21  ;;  %v2813_v26 = vsel %vm2812_vm4, %v5533_v57, %v2811_v56  ;;  %v3244_v58 = vsel %vm2816_vm6, %v5534_v53, %v3243_v48  ;;  %v5543_v47 = vld [vmem:[#allocation23_spill] sm:$0xff]  ;;  %v5545_v16 = vld [vmem:[#allocation25_spill] sm:$0xff] }
 0x2cb   : > { %v3297_v59 = vsel %vm2818_vm7, %v3230_v22, %v3296_v15  ;;  %v2815_v13 = vsel %vm2814_vm5, %v5535_v45, %v2813_v26  ;;  %v3245_v23 = vsel %vm2818_vm7, %v5179_v44, %v3244_v58  ;;  %v4215_v24 = vmov 0.0   ;;  %v4152_v44 = vld [vmem:[%s5526_s2] sm:$0xff]  }
 0x2cc   : > { %v3232_v12 = vmul.f32 %v4935_v11, %v3224_v54  ;;  %v3298_v62 = vsel %vm2820_vm8, %v3231_v55, %v3297_v59  ;;  %v2817_v42 = vsel %vm2816_vm6, %v5129_v7, %v2815_v13  ;;  %4039 = vmatprep.subr.bf16.mxu0 %v4215_v24  ;;  %v3246_v33 = vsel %vm2820_vm8, %v5187_v25, %v3245_v23  ;;  %v4151_v11 = vld [vmem:[%s5525_s1] sm:$0xff]  }
 0x2cd   : > { %v2819_v50 = vsel %vm2818_vm7, %v5140_v14, %v2817_v42  ;;  %4047 = vmatprep.subr.bf16.mxu1 %v4215_v24  ;;  %4040 = vmatpush3.bf16.msra.mxu0 %v4149_v49  ;;  %v5275_v27 = vsel %vm2822_vm9, %v5192_v35, %v3246_v33  ;;  %v5537_v35 = vld [vmem:[#allocation32_spill] sm:$0xff]  ;;  %v2250_v4 = vadd.f32 1.0, %v5541_v52  ;;  %v5546_v53 = vld [vmem:[#allocation15_spill] sm:$0xff] }
 0x2ce   : > { %v3299_v63 = vsel %vm2822_vm9, %v3232_v12, %v3298_v62  ;;  %v2821_v7 = vsel %vm2820_vm8, %v5151_v0, %v2819_v50  ;;  %4048 = vmatpush3.bf16.msra.mxu1 %v4150_v51  ;;  %4041 = vmatprep.subr.bf16.mxu0 %v4215_v24  ;;  %v2244_v0 = vadd.f32 1.0, %v5537_v35  ;;  %v5547_v50 = vld [vmem:[#allocation18_spill] sm:$0xff] }
 0x2cf   : > { %v4142_v25 = vpack.i.bf16 %v3299_v63, %v5227_v46  ;;  %v5283_v14 = vsel %vm2822_vm9, %v5166_v9, %v2821_v7  ;;  %4049 = vmatprep.subr.bf16.mxu1 %v4215_v24  ;;  %4043 = vmatprep.mubr.msk.bf16.mxu0 %vm4216_vm10, %v4215_v24  ;;  %v2246_v46 = vadd.f32 1.0, %v5538_v8  ;;  %v5540_v9 = vld [vmem:[#allocation33_spill] sm:$0xff] }
 0x2d0   : > { %4051 = vmatprep.mubr.msk.bf16.mxu1 %vm4216_vm10, %v4215_v24  ;;  %v2248_v31 = vadd.f32 1.0, %v5540_v9 }
 0x2d1   : > { %4143 = vrot.lane.b32.xlu1 %v4142_v25, %s4217_s10  ;;  %4042 = vmatpush3.bf16.msra.mxu0 %v4151_v11  ;;  %s5302_s10 = scalar_lea.vmem %s5542_s26, %s4404_s22  ;;  %s1272_s26 = scalar_lea.vmem %s4361_s8, %s3963_s11 }
 0x2d2   : > { %4050 = vmatpush3.bf16.msra.mxu1 %v4152_v44  ;;  %s5551_s22 = sld [smem:[#allocation10_spill]] }
 0x2d5   : > { %2261 = vrot.lane.b32.xlu1 %v2244_v0, %s4212_s23  ;;  %v5548_v0 = vld [vmem:[#allocation17_spill] sm:$0xff] }
 0x2d9   : > { %2265 = vrot.lane.b32.xlu1 %v2246_v46, %s4212_s23 }
 0x2dd   : > { %2269 = vrot.lane.b32.xlu1 %v2248_v31, %s4212_s23 }
 0x2e1   : > { %2273 = vrot.lane.b32.xlu1 %v2250_v4, %s4212_s23 }
 0x2ed   : > { %v4139_v59 = vpop.permute.xlu0 %4138 }
 0x2f1   : > { %v2260_v35 = vpop.permute.xlu0 %2259 }
 0x2ff   : > { %v4033_v36 = vpop.f32.mrf.mxu1 }
 0x300   : > { %v2443_v28 = vmax.f32 %v4033_v36, 0.0  ;;  %v5549_v36 = vld [vmem:[#allocation29_spill] sm:$0xff] }
 0x301   : > { %v2410_v39 = vpop.f32.mrf.mxu1 }
 0x302   : > { %v2441_v18 = vmax.f32 %v2410_v39, 0.0  ;;  %v2458_v5 = vmul.f32 %v5294_v6, %v2443_v28  ;;  %v5550_v39 = vld [vmem:[#allocation27_spill] sm:$0xff] }
 0x303   : > { %v4034_v60 = vpop.f32.mrf.mxu1 }
 0x304   : > { %v2444_v19 = vmax.f32 %v4034_v60, 0.0  ;;  %v2470_v3 = vsel %vm1691_vm1, %v2458_v5, 0.0  ;;  %v2456_v1 = vmul.f32 %v5294_v6, %v2441_v18  ;;  %v2264_v5 = vpop.permute.xlu0 %2263 }
 0x305   : > { %v2413_v38 = vpop.f32.mrf.mxu1  ;;  %2471 = vadd.xlane.f32.xlu0 %v2470_v3 }
 0x306   : > { %v2442_v43 = vmax.f32 %v2413_v38, 0.0  ;;  %v4023_v30 = vpop.f32.mrf.mxu0  ;;  %v2464_v20 = vsel %vm1691_vm1, %v2456_v1, 0.0  ;;  %v2459_v2 = vmul.f32 %v5294_v6, %v2444_v19 }
 0x307   : > { %v2197_v17 = vadd.f32 %v4023_v30, %v3930_v61  ;;  %v4140_v30 = vunpack.i.l.bf16 %v4139_v59 }
 0x308   : > { %v2188_v32 = vpop.f32.mrf.mxu0  ;;  %v2457_v41 = vmul.f32 %v5294_v6, %v2442_v43  ;;  %v2473_v15 = vsel %vm1691_vm1, %v2459_v2, 0.0  ;;  %v4141_v43 = vunpack.i.h.bf16 %v4139_v59 }
 0x309   : > { %v2221_v22 = vmul.f32 %v2197_v17, %v5543_v47  ;;  %v5308_v29 = vadd.f32 %v3930_v61, %v2188_v32  ;;  %2465 = vadd.xlane.f32.xlu0 %v2464_v20  ;;  %v2237_v4 = vadd.f32 1.0, %v2197_v17 }
 0x30a   : > { %v4037_v55 = vpop.f32.mrf.mxu1  ;;  %v4024_v21 = vpop.f32.mrf.mxu0  ;;  %v2467_v10 = vsel %vm1691_vm1, %v2457_v41, 0.0 }
 0x30b   : > { %2229 = vst.msk [vmem:[%s5302_s10 + $0x10] sm:$0xff] %vm1691_vm1, %v2221_v22  ;;  %v2219_v37 = vmul.f32 %v5308_v29, %v5544_v34  ;;  %v2447_v40 = vmax.f32 %v4037_v55, 0.0  ;;  %v5315_v56 = vadd.f32 %v4024_v21, %v3930_v61  ;;  %2468 = vadd.xlane.f32.xlu1 %v2467_v10  ;;  %v2285_v60 = vmul.f32 %v2264_v5, %v2237_v4 }
 0x30c   : > { %v2426_v49 = vpop.f32.mrf.mxu1  ;;  %v2191_v54 = vpop.f32.mrf.mxu0  ;;  %v2235_v59 = vadd.f32 1.0, %v5308_v29 }
 0x30d   : > { %2227 = vst.msk [vmem:[%s5302_s10] sm:$0xff] %vm1691_vm1, %v2219_v37  ;;  %v2222_v48 = vmul.f32 %v5315_v56, %v5545_v16  ;;  %v2192_v57 = vadd.f32 %v3930_v61, %v2191_v54  ;;  %2474 = vadd.xlane.f32.xlu0 %v2473_v15  ;;  %v2462_v51 = vmul.f32 %v5294_v6, %v2447_v40  ;;  %v2445_v38 = vmax.f32 %v2426_v49, 0.0 }
 0x30e   : > { %v4038_v26 = vpop.f32.mrf.mxu1  ;;  %v3967_v19 = vpack.c.bf16 %v2285_v60, %v2285_v60  ;;  %v3948_v60 = vld [vmem:[%s5551_s22] ss:$0 sm:$0xff] }
 0x30f   : > { %2230 = vst.msk [vmem:[%s5302_s10 + $0x18] sm:$0xff] %vm1691_vm1, %v2222_v48  ;;  %v2220_v58 = vmul.f32 %v2192_v57, %v5546_v53  ;;  %v2448_v45 = vmax.f32 %v4038_v26, 0.0  ;;  %v2482_v62 = vsel %vm1691_vm1, %v2462_v51, 0.0  ;;  %v2460_v41 = vmul.f32 %v5294_v6, %v2445_v38 }
 0x310   : > { %v4027_v13 = vpop.f32.mrf.mxu0  ;;  %v2429_v12 = vpop.f32.mrf.mxu1  ;;  %2483 = vadd.xlane.f32.xlu1 %v2482_v62  ;;  %v2236_v22 = vadd.f32 1.0, %v2192_v57 }
 0x311   : > { %2228 = vst.msk [vmem:[%s5302_s10 + $0x8] sm:$0xff] %vm1691_vm1, %v2220_v58  ;;  %v2213_v23 = vadd.f32 %v4027_v13, %v3930_v61  ;;  %v2446_v42 = vmax.f32 %v2429_v12, 0.0  ;;  %v2463_v24 = vmul.f32 %v5294_v6, %v2448_v45  ;;  %v2476_v54 = vsel %vm1691_vm1, %v2460_v41, 0.0 }
 0x312   : > { %v2204_v33 = vpop.f32.mrf.mxu0  ;;  %v4134_v3 = vpop.permute.xlu1 %4133  ;;  %v2238_v45 = vadd.f32 1.0, %v5315_v56  ;;  %v2283_v13 = vmul.f32 %v2260_v35, %v2235_v59 }
 0x313   : > { %v2225_v11 = vmul.f32 %v2213_v23, %v5547_v50  ;;  %v2205_v63 = vadd.f32 %v3930_v61, %v2204_v33  ;;  %v2485_v7 = vsel %vm1691_vm1, %v2463_v24, 0.0  ;;  %v2461_v25 = vmul.f32 %v5294_v6, %v2446_v42 }
 0x314   : > { %2486 = vadd.xlane.f32.xlu0 %v2485_v7  ;;  %v4028_v44 = vpop.f32.mrf.mxu0  ;;  %v4135_v1 = vunpack.i.l.bf16 %v4134_v3  ;;  %v2241_v6 = vadd.f32 1.0, %v2213_v23  ;;  %v3965_v62 = vpack.c.bf16 %v2283_v13, %v2283_v13 }
 0x315   : > { %2233 = vst.msk [vmem:[%s5302_s10 + $0x30] sm:$0xff] %vm1691_vm1, %v2225_v11  ;;  %v2223_v8 = vmul.f32 %v2205_v63, %v5548_v0  ;;  %v5336_v46 = vadd.f32 %v4028_v44, %v3930_v61  ;;  %v2479_v52 = vsel %vm1691_vm1, %v2461_v25, 0.0  ;;  %v2239_v37 = vadd.f32 1.0, %v2205_v63 }
 0x316   : > { %v2207_v9 = vpop.f32.mrf.mxu0  ;;  %v2879_v32 = vsel %vm1691_vm1, %v5283_v14, %v4135_v1 }
 0x317   : > { %2231 = vst.msk [vmem:[%s5302_s10 + $0x20] sm:$0xff] %vm1691_vm1, %v2223_v8  ;;  %v2208_v31 = vadd.f32 %v3930_v61, %v2207_v9  ;;  %v2226_v28 = vmul.f32 %v5336_v46, %v5549_v36  ;;  %v4136_v61 = vunpack.i.h.bf16 %v4134_v3  ;;  %v2881_v55 = vsel %vm2880_vm11, %v2879_v32, %v4140_v30 }
 0x318   : > { %2480 = vadd.xlane.f32.xlu0 %v2479_v52  ;;  %v2242_v24 = vadd.f32 1.0, %v5336_v46 }
 0x319   : > { %v2224_v18 = vmul.f32 %v2208_v31, %v5550_v39  ;;  %2234 = vst.msk [vmem:[%s5302_s10 + $0x38] sm:$0xff] %vm1691_vm1, %v2226_v28  ;;  %v3303_v17 = vsel %vm1691_vm1, %v5275_v27, %v4136_v61  ;;  %v2268_v27 = vpop.permute.xlu0 %2267  ;;  %v2240_v12 = vadd.f32 1.0, %v2208_v31 }
 0x31a   : > { %v3304_v21 = vsel %vm2880_vm11, %v3303_v17, %v4141_v43  ;;  %v2287_v48 = vmul.f32 %v2268_v27, %v2239_v37 }
 0x31b   : > { %2232 = vst.msk [vmem:[%s5302_s10 + $0x28] sm:$0xff] %vm1691_vm1, %v2224_v18  ;;  %s1297_s10 = scalar_lea.vmem %s4376_s6, %s4415_s28 }
 0x31c   : > { %v3969_v26 = vpack.c.bf16 %v2287_v48, %v2287_v48 }
 0x31d   : > { %v2272_v57 = vpop.permute.xlu0 %2271 }
 0x31e   : > { %v2289_v51 = vmul.f32 %v2272_v57, %v2241_v6 }
 0x320   : > { %v3971_v58 = vpack.c.bf16 %v2289_v51, %v2289_v51 }
 0x321   : > { %2327 = vrot.lane.b32.xlu1 %v3967_v19, %s4212_s23 }
 0x343   : > { %v4144_v20 = vpop.permute.xlu1 %4143 }
 0x344   : > { %v4146_v2 = vunpack.i.h.bf16 %v4144_v20  ;;  %v4145_v47 = vunpack.i.l.bf16 %v4144_v20 }
 0x345   : > { %2477 = vadd.xlane.f32.xlu1 %v2476_v54 }
 0x346   : > { %v3305_v10 = vsel %vm2882_vm12, %v3304_v21, %v4146_v2  ;;  %v2883_v34 = vsel %vm2882_vm12, %v2881_v55, %v4145_v47 }
 0x347   : > { %v3306_v40 = vpack.c.bf16 %v3305_v10, %v3305_v10  ;;  %v2884_v49 = vpack.c.bf16 %v2883_v34, %v2883_v34  ;;  %v2262_v14 = vpop.permute.xlu1 %2261 }
 0x348   : > { %v2284_v15 = vmul.f32 %v2262_v14, %v2236_v22 }
 0x349   : > { %4044 = vmatmul.mubr.msk.bf16.vlgmr.msra.gmra.mxu0 %vm2908_vm13, %v2884_v49  ;;  %4052 = vmatmul.mubr.msk.bf16.vlgmr.msra.gmra.mxu1 %vm2908_vm13, %v3306_v40 }
 0x34a   : > { %v3966_v16 = vpack.c.bf16 %v2284_v15, %v2284_v15 }
 0x34b   : > { %v2266_v53 = vpop.permute.xlu1 %2265 }
 0x34c   : > { %2325 = vrot.lane.b32.xlu0 %v3966_v16, %s4212_s23  ;;  %v2286_v23 = vmul.f32 %v2266_v53, %v2238_v45 }
 0x34e   : > { %v3968_v29 = vpack.c.bf16 %v2286_v23, %v2286_v23 }
 0x34f   : > { %v2270_v42 = vpop.permute.xlu1 %2269 }
 0x350   : > { %2331 = vrot.lane.b32.xlu0 %v3969_v26, %s4212_s23  ;;  %v2288_v33 = vmul.f32 %v2270_v42, %v2240_v12 }
 0x352   : > { %v3970_v56 = vpack.c.bf16 %v2288_v33, %v2288_v33 }
 0x353   : > { %v2274_v50 = vpop.permute.xlu1 %2273 }
 0x354   : > { %2335 = vrot.lane.b32.xlu0 %v3971_v58, %s4212_s23  ;;  %v2290_v11 = vmul.f32 %v2274_v50, %v2242_v24 }
 0x356   : > { %2323 = vrot.lane.b32.xlu1 %v3965_v62, %s4212_s23  ;;  %v3972_v63 = vpack.c.bf16 %v2290_v11, %v2290_v11 }
 0x35a   : > { %2329 = vrot.lane.b32.xlu1 %v3968_v29, %s4212_s23 }
 0x35e   : > { %2333 = vrot.lane.b32.xlu1 %v3970_v56, %s4212_s23 }
 0x362   : > { %2337 = vrot.lane.b32.xlu1 %v3972_v63, %s4212_s23  ;;  %s5552_s23 = sld [smem:[#allocation12_spill]] }
 0x368   : > { %v3952_v19 = vld [vmem:[%s5552_s23] ss:$0 sm:$0xff] }
 0x38e   : > { %v2472_v7 = vpop.xlane.xlu0 %2471 }
 0x38f   : > { %2491 = vst.msk [vmem:[%s1282_s7 + $0x10] sm:$0xff] %vm2488_vm2, %v2472_v7 }
 0x392   : > { %v2466_v44 = vpop.xlane.xlu0 %2465 }
 0x393   : > { %2489 = vst.msk [vmem:[%s1282_s7] sm:$0xff] %vm2488_vm2, %v2466_v44 }
 0x394   : > { %v2469_v25 = vpop.xlane.xlu1 %2468 }
 0x395   : > { %2490 = vst.msk [vmem:[%s1282_s7 + $0x8] sm:$0xff] %vm2488_vm2, %v2469_v25 }
 0x396   : > { %v2475_v35 = vpop.xlane.xlu0 %2474 }
 0x397   : > { %2492 = vst.msk [vmem:[%s1282_s7 + $0x18] sm:$0xff] %vm2488_vm2, %v2475_v35 }
 0x399   : > { %v2484_v0 = vpop.xlane.xlu1 %2483 }
 0x39a   : > { %2495 = vst.msk [vmem:[%s1282_s7 + $0x30] sm:$0xff] %vm2488_vm2, %v2484_v0 }
 0x39d   : > { %v2487_v8 = vpop.xlane.xlu0 %2486  ;;  %v2328_v46 = vpop.permute.xlu1 %2327 }
 0x39e   : > { %2496 = vst.msk [vmem:[%s1282_s7 + $0x38] sm:$0xff] %vm2488_vm2, %v2487_v8 }
 0x39f   : > { %2350 = vst.msk [vmem:[%s1272_s26 + $0x8] sm:$0xf] %vm2347_vm14, %v2328_v46 }
 0x3a1   : > { %v2481_v9 = vpop.xlane.xlu0 %2480 }
 0x3a2   : > { %2494 = vst.msk [vmem:[%s1282_s7 + $0x28] sm:$0xff] %vm2488_vm2, %v2481_v9 }
 0x3be   : > { %v2326_v31 = vpop.permute.xlu0 %2325 }
 0x3bf   : > { %2349 = vst.msk [vmem:[%s1272_s26 + $0x4] sm:$0xf] %vm2347_vm14, %v2326_v31 }
 0x3c2   : > { %v2332_v52 = vpop.permute.xlu0 %2331 }
 0x3c3   : > { %2352 = vst.msk [vmem:[%s1272_s26 + $0x10] sm:$0xf] %vm2347_vm14, %v2332_v52 }
 0x3c6   : > { %v2336_v4 = vpop.permute.xlu0 %2335 }
 0x3c7   : > { %2354 = vst.msk [vmem:[%s1272_s26 + $0x18] sm:$0xf] %vm2347_vm14, %v2336_v4 }
 0x3ce   : > { %v2478_v36 = vpop.xlane.xlu1 %2477 }
 0x3cf   : > { %2493 = vst.msk [vmem:[%s1282_s7 + $0x20] sm:$0xff] %vm2488_vm2, %v2478_v36 }
 0x3d2   : > { %v2324_v28 = vpop.permute.xlu1 %2323 }
 0x3d3   : > { %2348 = vst.msk [vmem:[%s1272_s26] sm:$0xf] %vm2347_vm14, %v2324_v28 }
 0x3d6   : > { %v2330_v39 = vpop.permute.xlu1 %2329 }
 0x3d7   : > { %2351 = vst.msk [vmem:[%s1272_s26 + $0xc] sm:$0xf] %vm2347_vm14, %v2330_v39 }
 0x3da   : > { %v2334_v18 = vpop.permute.xlu1 %2333 }
 0x3db   : > { %2353 = vst.msk [vmem:[%s1272_s26 + $0x14] sm:$0xf] %vm2347_vm14, %v2334_v18 }
 0x3de   : > { %v2338_v5 = vpop.permute.xlu1 %2337 }
 0x3df   : > { %2355 = vst.msk [vmem:[%s1272_s26 + $0x1c] sm:$0xf] %vm2347_vm14, %v2338_v5 }
 0x409   : > { %v2946_v3 = vpop.f32.mrf.mxu0  ;;  %v3367_v61 = vpop.f32.mrf.mxu1 }
 0x40a   : > { %v2947_v1 = vadd.f32 %v3948_v60, %v2946_v3  ;;  %v3368_v38 = vadd.f32 %v3952_v19, %v3367_v61 }
 0x40b   : > { %v4045_v43 = vpop.f32.mrf.mxu0  ;;  %v4053_v30 = vpop.f32.mrf.mxu1 }
 0x40c   : > { %2952 = vst.msk [vmem:[%s1290_s15] sm:$0xff] %vm2880_vm11, %v2947_v1  ;;  %3373 = vst.msk [vmem:[%s1297_s10] sm:$0xff] %vm2880_vm11, %v3368_v38 }
 0x40d   : > { %v2949_v17 = vpop.f32.mrf.mxu0  ;;  %v3370_v32 = vpop.f32.mrf.mxu1 }
 0x40f   : > { %v4046_v20 = vpop.f32.mrf.mxu0  ;;  %v4054_v41 = vpop.f32.mrf.mxu1 }
 0x410 PF: > { %s72_s18 = sadd.s32 1, %s4177_s18   ;;  %s5553_s15 = smov %s4173_s16 }
 0x411   : > { %p69_p5 = scmp.ge.s32.totalorder %s72_s18, 4   ;;  %s5554_s16 = smov %s5556_s0 }
 0x413   :  { %71 = sbr.rel (!%p69_p5) target bundleno = 46 (0x2e), region = 275 }

// kernel: _lambda_.10
= control target key start
LH: loop header
LB: loop body
LE: loop exit
PB: predicated region body
PF: predicated region fallthrough
CT: control target
= control target key end

     0   :  { %vm46_vm0 = vcmask 130048   ;;  %s497_s0 = inlined_call_operand.vmem [shape: f32[16,16], index: 0, kind: input, shape index: {}]   ;;  %s498_s1 = inlined_call_operand.vmem [shape: f32[16,16], index: 1, kind: input, shape index: {}]   ;;  %s499_s2 = inlined_call_operand.vmem [shape: f32[16,1], index: 2, kind: input, shape index: {}]   ;;  %s500_s3 = inlined_call_operand.vmem [shape: f32[1,16], index: 3, kind: input, shape index: {}]   ;;  %s501_s4 = inlined_call_operand.vmem [shape: f32[1,16], index: 4, kind: input, shape index: {}]   ;;  %s502_s5 = inlined_call_operand.vmem [shape: bf16[16,32], index: 5, kind: input, shape index: {}]   ;;  %s503_s6 = inlined_call_operand.vmem [shape: f32[1,32], index: 6, kind: input, shape index: {}]   ;;  %s504_s7 = inlined_call_operand.vmem [shape: bf16[32,16], index: 7, kind: input, shape index: {}]   ;;  %s505_s8 = inlined_call_operand.vmem [shape: f32[1,16], index: 8, kind: input, shape index: {}]   ;;  %s506_s9 = inlined_call_operand.vmem [shape: f32[1,16], index: 9, kind: input, shape index: {}]   ;;  %s507_s10 = inlined_call_operand.vmem [shape: f32[1,16], index: 10, kind: input, shape index: {}]   ;;  %s508_s11 = inlined_call_operand.hbm [shape: f32[16,16], index: 11, kind: output, shape index: {}]  }
   0x1   :  { %v40_v0 = vld [vmem:[%s497_s0] sm:$0xff]  ;;  %v41_v2 = vld [vmem:[%s497_s0 + $0x8] sm:$0xff] }
   0x2   :  { %v42_v1 = vld [vmem:[%s498_s1] sm:$0xff]  ;;  %v43_v4 = vld [vmem:[%s498_s1 + $0x8] sm:$0xff] }
   0x3   :  { %v44_v3 = vadd.f32 %v42_v1, %v40_v0  ;;  %v45_v5 = vadd.f32 %v43_v4, %v41_v2 }
   0x5   :  { %v47_v6 = vsel %vm46_vm0, %v44_v3, 0.0 }
   0x6   :  { %16 = vsyncpa [#allocation3], 0  ;;  %48 = vadd.xlane.f32.xlu0 %v47_v6  ;;  %v50_v7 = vsel %vm46_vm0, %v45_v5, 0.0  ;;  %v339_v18 = vld [vmem:[%s502_s5] sm:$0xff]   ;;  %v372_v19 = vmov 0.0   ;;  %vm373_vm1 = vmmov 0  }
   0x7   :  { %317 = vmatprep.subr.bf16.mxu0 %v372_v19  ;;  %319 = vmatprep.mubr.msk.bf16.mxu0 %vm373_vm1, %v372_v19  ;;  %v301_v28 = vld [vmem:[%s500_s3] ss:$0 sm:$0xff]  ;;  %v340_v37 = vld [vmem:[%s504_s7 + $0x8] sm:$0xff]   ;;  %vm178_vm2 = vcmask 261120   ;;  %v374_v60 = vmov 0  }
   0x8   :  { %318 = vmatpush3.bf16.msra.mxu0 %v339_v18  ;;  %323 = vmatprep.subr.bf16.mxu1 %v372_v19  ;;  %v302_v32 = vld [vmem:[%s501_s4] ss:$0 sm:$0xff] }
   0x9   :  { %327 = vmatprep.mubr.msk.bf16.mxu1 %vm373_vm1, %v372_v19  ;;  %324 = vmatpush3.bf16.msra.mxu1 %v340_v37  ;;  %v341_v38 = vld [vmem:[%s504_s7] sm:$0xff]  }
   0xa   :  { %51 = vadd.xlane.f32.xlu0 %v50_v7  ;;  %325 = vmatprep.subr.bf16.mxu1 %v372_v19  ;;  %v303_v39 = vld [vmem:[%s503_s6] ss:$0 sm:$0xff]  ;;  %v270_v7 = vld [vmem:[%s499_s2 + $0x8] sm:$0xff] }
   0xb   :  { %v306_v49 = vld [vmem:[%s505_s8] ss:$0 sm:$0xff]  ;;  %337 = vset.pattern.permute.xlu0 %v374_v60  ;;  %338 = vset.pattern.permute.xlu1 %v374_v60 }
   0xc   :  { %v311_v18 = vld [vmem:[%s507_s10] ss:$0 sm:$0xff] }
   0xd   :  { %326 = vmatpush3.bf16.msra.mxu1 %v341_v38 }
  0x8f   :  { %v49_v8 = vpop.xlane.xlu0 %48 }
  0x90   :  { %v54_v9 = vmul.f32 0.0625, %v49_v8  ;;  %v269_v8 = vld [vmem:[%s499_s2] sm:$0xff]  ;;  %s375_s2 = smov [#allocation2]  }
  0x91   :  { %s290_s20 = sshll.u32 %s375_s2, 4  ;;  %s291_s20 = int_to_ptr.vmem [resolvable:$true] %s290_s20 }
  0x92   :  { %v56_v10 = vsub.f32 %v44_v3, %v54_v9  ;;  %p355_p1 = scmp.lt.s32.totalorder %s291_s20, %s291_s20 }
  0x93   :  { %v52_v11 = vpop.xlane.xlu0 %51 }
  0x94   :  { %v55_v12 = vmul.f32 0.0625, %v52_v11  ;;  %v58_v13 = vmul.f32 %v56_v10, %v56_v10 }
  0x96   :  { %v57_v14 = vsub.f32 %v45_v5, %v55_v12  ;;  %v60_v15 = vsel %vm46_vm0, %v58_v13, 0.0 }
  0x97   :  { %61 = vadd.xlane.f32.xlu1 %v60_v15 }
  0x98   :  { %v59_v16 = vmul.f32 %v57_v14, %v57_v14 }
  0x9a   :  { %v63_v17 = vsel %vm46_vm0, %v59_v16, 0.0  ;;  %v310_v16 = vld [vmem:[%s506_s9] ss:$0 sm:$0xff]  ;;  %s350_s9 = scalar_lea.vmem %s291_s20, 256 }
  0x9b   :  { %64 = vadd.xlane.f32.xlu1 %v63_v17  ;;  %p351_p0 = scmp.ne.s32.totalorder %s291_s20, %s350_s9  ;;  %p356_p2 = scmp.lt.s32.totalorder %s350_s9, %s350_s9 }
  0x9d   :  { %p357_p3 = por %p356_p2, %p355_p1 }
  0x9f   :  { %p358_p4 = pnand %p357_p3, %p351_p0 }
 0x120   :  { %v62_v20 = vpop.xlane.xlu1 %61 }
 0x121   :  { %v66_v21 = vmul.f32 0.0625, %v62_v20 }
 0x123   :  { %v68_v22 = vadd.f32 1e-05, %v66_v21 }
 0x124   :  { %v65_v23 = vpop.xlane.xlu1 %64 }
 0x125   :  { %342 = vrsqrt.f32 %v68_v22  ;;  %v67_v24 = vmul.f32 0.0625, %v65_v23 }
 0x127   :  { %v69_v25 = vadd.f32 1e-05, %v67_v24 }
 0x129   :  { %344 = vrsqrt.f32 %v69_v25 }
 0x132   :  { %v343_v26 = vpop.eup %342 }
 0x133   :  { %v72_v27 = vmul.f32 %v343_v26, %v56_v10 }
 0x135   :  { %v81_v31 = vmul.f32 %v301_v28, %v72_v27 }
 0x136   :  { %v345_v29 = vpop.eup %344 }
 0x137   :  { %v73_v30 = vmul.f32 %v345_v29, %v57_v14  ;;  %v90_v34 = vadd.f32 %v302_v32, %v81_v31 }
 0x139   :  { %v82_v33 = vmul.f32 %v301_v28, %v73_v30 }
 0x13b   :  { %v91_v35 = vadd.f32 %v302_v32, %v82_v33 }
 0x13d   :  { %v92_v36 = vpack.c.bf16 %v91_v35, %v90_v34 }
 0x13f   :  { %320 = vmatmul.mubr.msk.bf16.vlgmr.msra.gmra.mxu0 %vm46_vm0, %v92_v36 }
 0x1ff   :  { %v145_v40 = vpop.f32.mrf.mxu0 }
 0x200   :  { %v146_v42 = vadd.f32 %v303_v39, %v145_v40 }
 0x201   :  { %v321_v41 = vpop.f32.mrf.mxu0 }
 0x202   :  { %v152_v46 = vmax.f32 %v146_v42, 0.0 }
 0x203   :  { %v148_v43 = vpop.f32.mrf.mxu0 }
 0x204   :  { %v149_v44 = vadd.f32 %v303_v39, %v148_v43 }
 0x205   :  { %v322_v45 = vpop.f32.mrf.mxu0 }
 0x206   :  { %v153_v47 = vmax.f32 %v149_v44, 0.0 }
 0x208   :  { %v154_v48 = vpack.c.bf16 %v153_v47, %v152_v46 }
 0x20a   :  { %328 = vmatmul.mubr.msk.bf16.vlgmr.msra.gmra.mxu1 %vm178_vm2, %v154_v48 }
 0x2ca   :  { %v216_v50 = vpop.f32.mrf.mxu1 }
 0x2cb   :  { %v217_v51 = vadd.f32 %v306_v49, %v216_v50 }
 0x2cc   :  { %v329_v52 = vpop.f32.mrf.mxu1 }
 0x2cd   :  { %v223_v53 = vadd.f32 %v217_v51, %v90_v34 }
 0x2ce   :  { %v219_v54 = vpop.f32.mrf.mxu1 }
 0x2cf   :  { %v220_v55 = vadd.f32 %v306_v49, %v219_v54  ;;  %v225_v56 = vsel %vm46_vm0, %v223_v53, 0.0 }
 0x2d0   :  { %226 = vadd.xlane.f32.xlu0 %v225_v56  ;;  %v330_v57 = vpop.f32.mrf.mxu1 }
 0x2d1   :  { %v224_v58 = vadd.f32 %v220_v55, %v91_v35 }
 0x2d3   :  { %v228_v59 = vsel %vm46_vm0, %v224_v58, 0.0 }
 0x2d4   :  { %229 = vadd.xlane.f32.xlu1 %v228_v59 }
 0x359   :  { %v227_v61 = vpop.xlane.xlu0 %226 }
 0x35a   :  { %v231_v62 = vmul.f32 0.0625, %v227_v61 }
 0x35c   :  { %v233_v63 = vsub.f32 %v223_v53, %v231_v62 }
 0x35d   :  { %v230_v0 = vpop.xlane.xlu1 %229 }
 0x35e   :  { %v232_v1 = vmul.f32 0.0625, %v230_v0  ;;  %v235_v2 = vmul.f32 %v233_v63, %v233_v63 }
 0x360   :  { %v234_v3 = vsub.f32 %v224_v58, %v232_v1  ;;  %v237_v4 = vsel %vm46_vm0, %v235_v2, 0.0 }
 0x361   :  { %238 = vadd.xlane.f32.xlu0 %v237_v4 }
 0x362   :  { %v236_v5 = vmul.f32 %v234_v3, %v234_v3 }
 0x364   :  { %v240_v6 = vsel %vm46_vm0, %v236_v5, 0.0 }
 0x365   :  { %241 = vadd.xlane.f32.xlu1 %v240_v6 }
 0x376   :  { %278 = vperm.xlu1 %338, %v270_v7  }
 0x377   :  { %273 = vperm.xlu0 %337, %v269_v8  }
 0x3ea   :  { %v239_v9 = vpop.xlane.xlu0 %238 }
 0x3eb   :  { %v243_v10 = vmul.f32 0.0625, %v239_v9 }
 0x3ed   :  { %v245_v11 = vadd.f32 1e-05, %v243_v10 }
 0x3ee   :  { %v242_v12 = vpop.xlane.xlu1 %241 }
 0x3ef   :  { %346 = vrsqrt.f32 %v245_v11  ;;  %v244_v13 = vmul.f32 0.0625, %v242_v12 }
 0x3f1   :  { %v246_v14 = vadd.f32 1e-05, %v244_v13 }
 0x3f2   :  { %v274_v21 = vpop.permute.xlu0 %273  ;;  %v279_v26 = vpop.permute.xlu1 %278 }
 0x3f3   :  { %348 = vrsqrt.f32 %v246_v14 }
 0x3fc   :  { %v347_v15 = vpop.eup %346 }
 0x3fd   :  { %v249_v17 = vmul.f32 %v347_v15, %v233_v63 }
 0x3ff   :  { %v258_v19 = vmul.f32 %v310_v16, %v249_v17 }
 0x400   :  { %v349_v20 = vpop.eup %348 }
 0x401   :  { %v267_v22 = vadd.f32 %v311_v18, %v258_v19  ;;  %v250_v23 = vmul.f32 %v349_v20, %v234_v3 }
 0x403   :  { %v281_v24 = vmul.f32 %v274_v21, %v267_v22  ;;  %v259_v25 = vmul.f32 %v310_v16, %v250_v23 }
 0x405   :  { %283 = vst.msk [vmem:[#allocation2] sm:$0xff] %vm46_vm0, %v281_v24  ;;  %v268_v27 = vadd.f32 %v311_v18, %v259_v25 }
 0x407   :  { %v282_v28 = vmul.f32 %v279_v26, %v268_v27 }
 0x409   :  { %284 = vst.msk [vmem:[#allocation2 + $0x8] sm:$0xff] %vm46_vm0, %v282_v28 }
 0x40a   :  { %361 = shalt.err (!%p358_p4)
}
 0x40b   :  { %s376_s10 = smov 128   ;;  %s377_s21 = smov 8  }
 0x40c   :  { %296 = dma.vmem_to_hbm [thread:$0]  %s291_s20, 256, %s508_s11, [#allocation3], %s376_s10, %s376_s10, %s377_s21  }
 0x40d   :  { %370 = dma.done.wait [#allocation3], 256  }
 0x40e   :  { %371 = vsyncadd [#allocation3], 4294967040 }
 0x40f   :  { %300 = vsyncpa [#allocation3], 1 }

// kernel: _lambda_.11
= control target key start
LH: loop header
LB: loop body
LE: loop exit
PB: predicated region body
PF: predicated region fallthrough
CT: control target
= control target key end

     0   :  { %vm87_vm0 = vcmask 64512   ;;  %vm383_vm1 = vcmask 1043456   ;;  %vm523_vm2 = vcmask 130048   ;;  %s2050_s0 = inlined_call_operand.vmem [shape: f32[128,8], index: 0, kind: input, shape index: {}]   ;;  %s2051_s1 = inlined_call_operand.vmem [shape: f32[128,8], index: 1, kind: input, shape index: {}]   ;;  %s2052_s5 = inlined_call_operand.vmem [shape: bf16[8,16], index: 5, kind: input, shape index: {}]   ;;  %s2053_s3 = inlined_call_operand.vmem [shape: f32[1,8], index: 3, kind: input, shape index: {}]   ;;  %s2054_s4 = inlined_call_operand.vmem [shape: f32[1,8], index: 4, kind: input, shape index: {}]   ;;  %s2055_s7 = inlined_call_operand.vmem [shape: bf16[16,8], index: 7, kind: input, shape index: {}]   ;;  %s2056_s2 = inlined_call_operand.vmem [shape: f32[128,1], index: 2, kind: input, shape index: {}]   ;;  %s2057_s6 = inlined_call_operand.vmem [shape: f32[1,16], index: 6, kind: input, shape index: {}]   ;;  %s2058_s8 = inlined_call_operand.vmem [shape: f32[1,8], index: 8, kind: input, shape index: {}]   ;;  %s2059_s9 = inlined_call_operand.vmem [shape: f32[1,8], index: 9, kind: input, shape index: {}]   ;;  %s2060_s10 = inlined_call_operand.vmem [shape: f32[1,8], index: 10, kind: input, shape index: {}]   ;;  %s2061_s11 = inlined_call_operand.vmem [shape: f32[128,8], index: 11, kind: output, shape index: {}]  }
   0x1   :  { %v39_v0 = vld [vmem:[%s2050_s0] sm:$0xff]  ;;  %v41_v2 = vld [vmem:[%s2050_s0 + $0x10] sm:$0xff]  ;;  %v40_v5 = vld [vmem:[%s2050_s0 + $0x8] sm:$0xff] }
   0x2   :  { %v55_v1 = vld [vmem:[%s2051_s1] sm:$0xff]  ;;  %v57_v4 = vld [vmem:[%s2051_s1 + $0x10] sm:$0xff]  ;;  %v56_v6 = vld [vmem:[%s2051_s1 + $0x8] sm:$0xff] }
   0x3   :  { %v1263_v3 = vadd.f32 %v55_v1, %v39_v0  ;;  %v1274_v7 = vadd.f32 %v57_v4, %v41_v2  ;;  %v1276_v8 = vadd.f32 %v56_v6, %v40_v5  ;;  %v42_v9 = vld [vmem:[%s2050_s0 + $0x18] sm:$0xff]  ;;  %v43_v11 = vld [vmem:[%s2050_s0 + $0x20] sm:$0xff]  ;;  %v44_v15 = vld [vmem:[%s2050_s0 + $0x28] sm:$0xff] }
   0x4   :  { %v58_v10 = vld [vmem:[%s2051_s1 + $0x18] sm:$0xff]  ;;  %v59_v14 = vld [vmem:[%s2051_s1 + $0x20] sm:$0xff]  ;;  %v60_v16 = vld [vmem:[%s2051_s1 + $0x28] sm:$0xff] }
   0x5   :  { %v88_v12 = vsel %vm87_vm0, %v1263_v3, 0.0  ;;  %v1289_v13 = vadd.f32 %v58_v10, %v42_v9  ;;  %v94_v17 = vsel %vm87_vm0, %v1274_v7, 0.0  ;;  %v91_v18 = vsel %vm87_vm0, %v1276_v8, 0.0  ;;  %v45_v22 = vld [vmem:[%s2050_s0 + $0x30] sm:$0xff]  ;;  %v46_v24 = vld [vmem:[%s2050_s0 + $0x38] sm:$0xff]  ;;  %v47_v30 = vld [vmem:[%s2050_s0 + $0x40] sm:$0xff] }
   0x6   :  { %89 = vadd.xlane.f32.xlu0 %v88_v12  ;;  %95 = vadd.xlane.f32.xlu1 %v94_v17  ;;  %v1304_v19 = vadd.f32 %v59_v14, %v43_v11  ;;  %v1308_v21 = vadd.f32 %v60_v16, %v44_v15  ;;  %v61_v23 = vld [vmem:[%s2051_s1 + $0x30] sm:$0xff]  ;;  %v62_v25 = vld [vmem:[%s2051_s1 + $0x38] sm:$0xff]  ;;  %v63_v31 = vld [vmem:[%s2051_s1 + $0x40] sm:$0xff] }
   0x7   :  { %v97_v20 = vsel %vm87_vm0, %v1289_v13, 0.0  ;;  %v1324_v27 = vadd.f32 %v61_v23, %v45_v22  ;;  %v1328_v29 = vadd.f32 %v62_v25, %v46_v24  ;;  %v48_v32 = vld [vmem:[%s2050_s0 + $0x48] sm:$0xff]  ;;  %v1344_v35 = vadd.f32 %v63_v31, %v47_v30  ;;  %v49_v38 = vld [vmem:[%s2050_s0 + $0x50] sm:$0xff]  ;;  %v50_v40 = vld [vmem:[%s2050_s0 + $0x58] sm:$0xff] }
   0x8   :  { %v100_v26 = vsel %vm87_vm0, %v1304_v19, 0.0  ;;  %v103_v28 = vsel %vm87_vm0, %v1308_v21, 0.0  ;;  %v64_v33 = vld [vmem:[%s2051_s1 + $0x48] sm:$0xff]  ;;  %v65_v39 = vld [vmem:[%s2051_s1 + $0x50] sm:$0xff]  ;;  %v66_v41 = vld [vmem:[%s2051_s1 + $0x58] sm:$0xff] }
   0x9   :  { %v106_v34 = vsel %vm87_vm0, %v1324_v27, 0.0  ;;  %v109_v36 = vsel %vm87_vm0, %v1328_v29, 0.0  ;;  %v1348_v37 = vadd.f32 %v64_v33, %v48_v32  ;;  %v112_v42 = vsel %vm87_vm0, %v1344_v35, 0.0  ;;  %v51_v46 = vld [vmem:[%s2050_s0 + $0x60] sm:$0xff]  ;;  %v52_v48 = vld [vmem:[%s2050_s0 + $0x68] sm:$0xff]  ;;  %v53_v54 = vld [vmem:[%s2050_s0 + $0x70] sm:$0xff] }
   0xa   :  { %92 = vadd.xlane.f32.xlu0 %v91_v18  ;;  %98 = vadd.xlane.f32.xlu1 %v97_v20  ;;  %v1364_v43 = vadd.f32 %v65_v39, %v49_v38  ;;  %v1368_v45 = vadd.f32 %v66_v41, %v50_v40  ;;  %v67_v47 = vld [vmem:[%s2051_s1 + $0x60] sm:$0xff]  ;;  %v68_v49 = vld [vmem:[%s2051_s1 + $0x68] sm:$0xff]  ;;  %v69_v55 = vld [vmem:[%s2051_s1 + $0x70] sm:$0xff] }
   0xb   :  { %v115_v44 = vsel %vm87_vm0, %v1348_v37, 0.0  ;;  %v1384_v51 = vadd.f32 %v67_v47, %v51_v46  ;;  %v1388_v53 = vadd.f32 %v68_v49, %v52_v48  ;;  %v54_v56 = vld [vmem:[%s2050_s0 + $0x78] sm:$0xff]  ;;  %v1404_v59 = vadd.f32 %v69_v55, %v53_v54 }
   0xc   :  { %v118_v50 = vsel %vm87_vm0, %v1364_v43, 0.0  ;;  %v121_v52 = vsel %vm87_vm0, %v1368_v45, 0.0  ;;  %v70_v57 = vld [vmem:[%s2051_s1 + $0x78] sm:$0xff] }
   0xd   :  { %v124_v58 = vsel %vm87_vm0, %v1384_v51, 0.0  ;;  %v127_v60 = vsel %vm87_vm0, %v1388_v53, 0.0  ;;  %v1408_v61 = vadd.f32 %v70_v57, %v54_v56  ;;  %v130_v62 = vsel %vm87_vm0, %v1404_v59, 0.0 }
   0xe   :  { %101 = vadd.xlane.f32.xlu0 %v100_v26  ;;  %104 = vadd.xlane.f32.xlu1 %v103_v28 }
   0xf   :  { %v133_v63 = vsel %vm87_vm0, %v1408_v61, 0.0 }
  0x12   :  { %107 = vadd.xlane.f32.xlu0 %v106_v34  ;;  %110 = vadd.xlane.f32.xlu1 %v109_v36 }
  0x16   :  { %113 = vadd.xlane.f32.xlu0 %v112_v42  ;;  %116 = vadd.xlane.f32.xlu1 %v115_v44 }
  0x1a   :  { %119 = vadd.xlane.f32.xlu0 %v118_v50  ;;  %122 = vadd.xlane.f32.xlu1 %v121_v52 }
  0x1e   :  { %125 = vadd.xlane.f32.xlu0 %v124_v58  ;;  %128 = vadd.xlane.f32.xlu1 %v127_v60 }
  0x22   :  { %131 = vadd.xlane.f32.xlu0 %v130_v62  ;;  %134 = vadd.xlane.f32.xlu1 %v133_v63 }
  0x8f   :  { %v90_v0 = vpop.xlane.xlu0 %89  ;;  %v96_v2 = vpop.xlane.xlu1 %95 }
  0x90   :  { %v137_v1 = vmul.f32 0.125, %v90_v0  ;;  %v139_v4 = vmul.f32 0.125, %v96_v2 }
  0x92   :  { %v1415_v5 = vsub.f32 %v1263_v3, %v137_v1  ;;  %v1418_v6 = vsub.f32 %v1274_v7, %v139_v4 }
  0x93   :  { %v93_v9 = vpop.xlane.xlu0 %92  ;;  %v99_v11 = vpop.xlane.xlu1 %98 }
  0x94   :  { %v138_v10 = vmul.f32 0.125, %v93_v9  ;;  %v169_v12 = vmul.f32 %v1415_v5, %v1415_v5  ;;  %v140_v14 = vmul.f32 0.125, %v99_v11  ;;  %v171_v15 = vmul.f32 %v1418_v6, %v1418_v6 }
  0x96   :  { %v1425_v16 = vsub.f32 %v1276_v8, %v138_v10  ;;  %v185_v17 = vsel %vm87_vm0, %v169_v12, 0.0  ;;  %v1429_v3 = vsub.f32 %v1289_v13, %v140_v14  ;;  %v191_v22 = vsel %vm87_vm0, %v171_v15, 0.0 }
  0x97   :  { %186 = vadd.xlane.f32.xlu0 %v185_v17  ;;  %v102_v7 = vpop.xlane.xlu0 %101  ;;  %v105_v20 = vpop.xlane.xlu1 %104 }
  0x98   :  { %v141_v18 = vmul.f32 0.125, %v102_v7  ;;  %v170_v23 = vmul.f32 %v1425_v16, %v1425_v16  ;;  %v142_v24 = vmul.f32 0.125, %v105_v20  ;;  %v172_v25 = vmul.f32 %v1429_v3, %v1429_v3 }
  0x9a   :  { %v1437_v8 = vsub.f32 %v1304_v19, %v141_v18  ;;  %v188_v26 = vsel %vm87_vm0, %v170_v23, 0.0  ;;  %v1441_v13 = vsub.f32 %v1308_v21, %v142_v24  ;;  %v194_v32 = vsel %vm87_vm0, %v172_v25, 0.0 }
  0x9b   :  { %192 = vadd.xlane.f32.xlu0 %v191_v22  ;;  %189 = vadd.xlane.f32.xlu1 %v188_v26  ;;  %v108_v28 = vpop.xlane.xlu0 %107  ;;  %v111_v31 = vpop.xlane.xlu1 %110 }
  0x9c   :  { %v143_v30 = vmul.f32 0.125, %v108_v28  ;;  %v173_v33 = vmul.f32 %v1437_v8, %v1437_v8  ;;  %v144_v34 = vmul.f32 0.125, %v111_v31  ;;  %v174_v19 = vmul.f32 %v1441_v13, %v1441_v13 }
  0x9e   :  { %v1449_v36 = vsub.f32 %v1324_v27, %v143_v30  ;;  %v197_v21 = vsel %vm87_vm0, %v173_v33, 0.0  ;;  %v1453_v38 = vsub.f32 %v1328_v29, %v144_v34  ;;  %v200_v42 = vsel %vm87_vm0, %v174_v19, 0.0 }
  0x9f   :  { %195 = vadd.xlane.f32.xlu1 %v194_v32  ;;  %198 = vadd.xlane.f32.xlu0 %v197_v21  ;;  %v114_v39 = vpop.xlane.xlu0 %113  ;;  %v117_v41 = vpop.xlane.xlu1 %116 }
  0xa0   :  { %v145_v40 = vmul.f32 0.125, %v114_v39  ;;  %v175_v44 = vmul.f32 %v1449_v36, %v1449_v36  ;;  %v146_v46 = vmul.f32 0.125, %v117_v41  ;;  %v176_v27 = vmul.f32 %v1453_v38, %v1453_v38 }
  0xa2   :  { %v1461_v47 = vsub.f32 %v1344_v35, %v145_v40  ;;  %v203_v29 = vsel %vm87_vm0, %v175_v44, 0.0  ;;  %v1465_v48 = vsub.f32 %v1348_v37, %v146_v46  ;;  %v206_v54 = vsel %vm87_vm0, %v176_v27, 0.0 }
  0xa3   :  { %201 = vadd.xlane.f32.xlu1 %v200_v42  ;;  %204 = vadd.xlane.f32.xlu0 %v203_v29  ;;  %v120_v49 = vpop.xlane.xlu0 %119  ;;  %v123_v52 = vpop.xlane.xlu1 %122 }
  0xa4   :  { %v147_v50 = vmul.f32 0.125, %v120_v49  ;;  %v177_v55 = vmul.f32 %v1461_v47, %v1461_v47  ;;  %v148_v56 = vmul.f32 0.125, %v123_v52  ;;  %v178_v35 = vmul.f32 %v1465_v48, %v1465_v48 }
  0xa6   :  { %v1473_v57 = vsub.f32 %v1364_v43, %v147_v50  ;;  %v209_v37 = vsel %vm87_vm0, %v177_v55, 0.0  ;;  %v1477_v58 = vsub.f32 %v1368_v45, %v148_v56  ;;  %v212_v0 = vsel %vm87_vm0, %v178_v35, 0.0 }
  0xa7   :  { %207 = vadd.xlane.f32.xlu1 %v206_v54  ;;  %210 = vadd.xlane.f32.xlu0 %v209_v37  ;;  %v126_v60 = vpop.xlane.xlu0 %125  ;;  %v129_v63 = vpop.xlane.xlu1 %128 }
  0xa8   :  { %v149_v62 = vmul.f32 0.125, %v126_v60  ;;  %v179_v1 = vmul.f32 %v1473_v57, %v1473_v57  ;;  %v150_v2 = vmul.f32 0.125, %v129_v63  ;;  %v180_v43 = vmul.f32 %v1477_v58, %v1477_v58 }
  0xaa   :  { %v1485_v4 = vsub.f32 %v1384_v51, %v149_v62  ;;  %v215_v45 = vsel %vm87_vm0, %v179_v1, 0.0  ;;  %v1489_v9 = vsub.f32 %v1388_v53, %v150_v2  ;;  %v218_v14 = vsel %vm87_vm0, %v180_v43, 0.0  ;;  %v1517_v1 = vld [vmem:[%s2053_s3] ss:$0 sm:$0xff] }
  0xab   :  { %213 = vadd.xlane.f32.xlu1 %v212_v0  ;;  %216 = vadd.xlane.f32.xlu0 %v215_v45  ;;  %v132_v10 = vpop.xlane.xlu0 %131  ;;  %v135_v12 = vpop.xlane.xlu1 %134 }
  0xac   :  { %v151_v11 = vmul.f32 0.125, %v132_v10  ;;  %v181_v15 = vmul.f32 %v1485_v4, %v1485_v4  ;;  %v152_v17 = vmul.f32 0.125, %v135_v12  ;;  %v182_v51 = vmul.f32 %v1489_v9, %v1489_v9 }
  0xae   :  { %v1497_v7 = vsub.f32 %v1404_v59, %v151_v11  ;;  %v221_v53 = vsel %vm87_vm0, %v181_v15, 0.0  ;;  %v1501_v18 = vsub.f32 %v1408_v61, %v152_v17  ;;  %v224_v20 = vsel %vm87_vm0, %v182_v51, 0.0  ;;  %v351_v61 = vld [vmem:[%s2052_s5] sm:$0xf] }
  0xaf   :  { %219 = vadd.xlane.f32.xlu1 %v218_v14  ;;  %222 = vadd.xlane.f32.xlu0 %v221_v53  ;;  %v385_v25 = vsel %vm383_vm1, %v351_v61, 0 }
  0xb0   :  { %v183_v22 = vmul.f32 %v1497_v7, %v1497_v7  ;;  %v184_v23 = vmul.f32 %v1501_v18, %v1501_v18  ;;  %1124 = vmatprep.subr.msk.bf16.mxu0 %vm383_vm1, %v351_v61 }
  0xb1   :  { %1089 = vmatpush3.bf16.msra.mxu0 %v385_v25 }
  0xb2   :  { %v227_v24 = vsel %vm87_vm0, %v183_v22, 0.0  ;;  %v230_v59 = vsel %vm87_vm0, %v184_v23, 0.0 }
  0xb3   :  { %225 = vadd.xlane.f32.xlu1 %v224_v20  ;;  %228 = vadd.xlane.f32.xlu0 %v227_v24 }
  0xb7   :  { %231 = vadd.xlane.f32.xlu1 %v230_v59 }
 0x120   :  { %v187_v26 = vpop.xlane.xlu0 %186 }
 0x121   :  { %v233_v28 = vmul.f32 0.125, %v187_v26 }
 0x123   :  { %v249_v30 = vadd.f32 1e-05, %v233_v28 }
 0x124   :  { %v190_v31 = vpop.xlane.xlu1 %189  ;;  %v193_v32 = vpop.xlane.xlu0 %192 }
 0x125   :  { %1129 = vrsqrt.f32 %v249_v30  ;;  %v234_v33 = vmul.f32 0.125, %v190_v31  ;;  %v235_v34 = vmul.f32 0.125, %v193_v32 }
 0x127   :  { %v250_v19 = vadd.f32 1e-05, %v234_v33  ;;  %v251_v21 = vadd.f32 1e-05, %v235_v34 }
 0x128   :  { %v196_v39 = vpop.xlane.xlu1 %195  ;;  %v199_v40 = vpop.xlane.xlu0 %198 }
 0x129   :  { %1131 = vrsqrt.f32 %v250_v19  ;;  %v236_v41 = vmul.f32 0.125, %v196_v39  ;;  %v237_v42 = vmul.f32 0.125, %v199_v40 }
 0x12a   :  { %1133 = vrsqrt.f32 %v251_v21 }
 0x12b   :  { %v252_v44 = vadd.f32 1e-05, %v236_v41  ;;  %v253_v46 = vadd.f32 1e-05, %v237_v42 }
 0x12c   :  { %v202_v27 = vpop.xlane.xlu1 %201  ;;  %v205_v29 = vpop.xlane.xlu0 %204 }
 0x12d   :  { %1135 = vrsqrt.f32 %v252_v44  ;;  %v238_v49 = vmul.f32 0.125, %v202_v27  ;;  %v239_v50 = vmul.f32 0.125, %v205_v29 }
 0x12e   :  { %1137 = vrsqrt.f32 %v253_v46 }
 0x12f   :  { %v254_v52 = vadd.f32 1e-05, %v238_v49  ;;  %v255_v54 = vadd.f32 1e-05, %v239_v50 }
 0x130   :  { %v208_v55 = vpop.xlane.xlu1 %207  ;;  %v211_v56 = vpop.xlane.xlu0 %210 }
 0x131   :  { %1139 = vrsqrt.f32 %v254_v52  ;;  %v240_v35 = vmul.f32 0.125, %v208_v55  ;;  %v241_v37 = vmul.f32 0.125, %v211_v56 }
 0x132   :  { %v1130_v60 = vpop.eup %1129  ;;  %1141 = vrsqrt.f32 %v255_v54 }
 0x133   :  { %v256_v62 = vadd.f32 1e-05, %v240_v35  ;;  %v257_v63 = vadd.f32 1e-05, %v241_v37  ;;  %v281_v0 = vmul.f32 %v1130_v60, %v1415_v5  ;;  %v1524_v5 = vld [vmem:[%s2054_s4] ss:$0 sm:$0xff] }
 0x134   :  { %v214_v2 = vpop.xlane.xlu1 %213  ;;  %v217_v43 = vpop.xlane.xlu0 %216 }
 0x135   :  { %1143 = vrsqrt.f32 %v256_v62  ;;  %v242_v45 = vmul.f32 0.125, %v214_v2  ;;  %v243_v10 = vmul.f32 0.125, %v217_v43  ;;  %v304_v12 = vmul.f32 %v1517_v1, %v281_v0 }
 0x136   :  { %v1132_v11 = vpop.eup %1131  ;;  %1145 = vrsqrt.f32 %v257_v63 }
 0x137   :  { %v1134_v14 = vpop.eup %1133  ;;  %v258_v15 = vadd.f32 1e-05, %v242_v45  ;;  %v259_v17 = vadd.f32 1e-05, %v243_v10  ;;  %v282_v51 = vmul.f32 %v1132_v11, %v1425_v16  ;;  %v1529_v25 = vadd.f32 %v1524_v5, %v304_v12 }
 0x138   :  { %v220_v53 = vpop.xlane.xlu1 %219  ;;  %v223_v20 = vpop.xlane.xlu0 %222  ;;  %v283_v22 = vmul.f32 %v1134_v14, %v1418_v6 }
 0x139   :  { %1147 = vrsqrt.f32 %v258_v15  ;;  %v244_v23 = vmul.f32 0.125, %v220_v53  ;;  %v245_v24 = vmul.f32 0.125, %v223_v20  ;;  %v305_v59 = vmul.f32 %v1517_v1, %v282_v51 }
 0x13a   :  { %v1136_v61 = vpop.eup %1135  ;;  %1149 = vrsqrt.f32 %v259_v17  ;;  %v306_v33 = vmul.f32 %v1517_v1, %v283_v22 }
 0x13b   :  { %v1138_v16 = vpop.eup %1137  ;;  %v260_v26 = vadd.f32 1e-05, %v244_v23  ;;  %v261_v28 = vadd.f32 1e-05, %v245_v24  ;;  %v1532_v30 = vadd.f32 %v1524_v5, %v305_v59  ;;  %v284_v31 = vmul.f32 %v1136_v61, %v1429_v3 }
 0x13c   :  { %v226_v32 = vpop.xlane.xlu1 %225  ;;  %v229_v6 = vpop.xlane.xlu0 %228  ;;  %v285_v34 = vmul.f32 %v1138_v16, %v1437_v8  ;;  %v1544_v29 = vadd.f32 %v1524_v5, %v306_v33 }
 0x13d   :  { %1151 = vrsqrt.f32 %v260_v26  ;;  %v246_v19 = vmul.f32 0.125, %v226_v32  ;;  %v247_v21 = vmul.f32 0.125, %v229_v6  ;;  %v343_v39 = vpack.c.bf16 %v1532_v30, %v1529_v25 }
 0x13e   :  { %v1140_v40 = vpop.eup %1139  ;;  %1153 = vrsqrt.f32 %v261_v28  ;;  %v307_v41 = vmul.f32 %v1517_v1, %v284_v31  ;;  %v308_v42 = vmul.f32 %v1517_v1, %v285_v34 }
 0x13f   :  { %v1142_v44 = vpop.eup %1141  ;;  %v262_v3 = vadd.f32 1e-05, %v246_v19  ;;  %v263_v46 = vadd.f32 1e-05, %v247_v21  ;;  %1090 = vmatprep.mubr.msk.bf16.mxu0 %vm87_vm0, %v343_v39  ;;  %v286_v27 = vmul.f32 %v1140_v40, %v1441_v13 }
 0x140   :  { %v232_v8 = vpop.xlane.xlu1 %231  ;;  %v1547_v49 = vadd.f32 %v1524_v5, %v307_v41  ;;  %v287_v50 = vmul.f32 %v1142_v44, %v1449_v36  ;;  %v1554_v13 = vadd.f32 %v1524_v5, %v308_v42  ;;  %v1128_v41 = vld [vmem:[%s2055_s7] sm:$0xff]   ;;  %v916_v42 = vld [vmem:[%s2056_s2 + $0x8] sm:$0xff] }
 0x141   :  { %1155 = vrsqrt.f32 %v262_v3  ;;  %v248_v52 = vmul.f32 0.125, %v232_v8  ;;  %v309_v54 = vmul.f32 %v1517_v1, %v286_v27  ;;  %1106 = vmatprep.subr.bf16.mxu1 %v1128_v41  ;;  %v915_v44 = vld [vmem:[%s2056_s2] sm:$0xff]  ;;  %v924_v3 = vld [vmem:[%s2056_s2 + $0x48] sm:$0xff]  ;;  %v926_v27 = vld [vmem:[%s2056_s2 + $0x58] sm:$0xff] }
 0x142   :  { %v1144_v55 = vpop.eup %1143  ;;  %1157 = vrsqrt.f32 %v263_v46  ;;  %v344_v56 = vpack.c.bf16 %v1547_v49, %v1544_v29  ;;  %v310_v36 = vmul.f32 %v1517_v1, %v287_v50  ;;  %1107 = vmatpush3.bf16.msra.mxu1 %v1128_v41  ;;  %v918_v46 = vld [vmem:[%s2056_s2 + $0x18] sm:$0xff]  ;;  %v919_v8 = vld [vmem:[%s2056_s2 + $0x20] sm:$0xff]  ;;  %v920_v50 = vld [vmem:[%s2056_s2 + $0x28] sm:$0xff] }
 0x143   :  { %v1146_v35 = vpop.eup %1145  ;;  %v264_v37 = vadd.f32 1e-05, %v248_v52  ;;  %v1557_v60 = vadd.f32 %v1524_v5, %v309_v54  ;;  %v288_v62 = vmul.f32 %v1144_v55, %v1453_v38  ;;  %v921_v52 = vld [vmem:[%s2056_s2 + $0x30] sm:$0xff]  ;;  %v922_v54 = vld [vmem:[%s2056_s2 + $0x38] sm:$0xff]  ;;  %v923_v55 = vld [vmem:[%s2056_s2 + $0x40] sm:$0xff] }
 0x144   :  { %1091 = vmatmul.mubr.msk.bf16.vlgmr.msra.gmra.mxu0 %vm87_vm0, %v344_v56  ;;  %v289_v63 = vmul.f32 %v1146_v35, %v1461_v47  ;;  %v1568_v10 = vadd.f32 %v1524_v5, %v310_v36  ;;  %v925_v56 = vld [vmem:[%s2056_s2 + $0x50] sm:$0xff] }
 0x145   :  { %1159 = vrsqrt.f32 %v264_v37  ;;  %v345_v0 = vpack.c.bf16 %v1557_v60, %v1554_v13  ;;  %v311_v2 = vmul.f32 %v1517_v1, %v288_v62  ;;  %v1049_v62 = vld [vmem:[%s2057_s6] ss:$0 sm:$0xff] }
 0x146   :  { %v1148_v43 = vpop.eup %1147  ;;  %v312_v47 = vmul.f32 %v1517_v1, %v289_v63 }
 0x147   :  { %v1150_v45 = vpop.eup %1149  ;;  %1094 = vmatprep.mubr.msk.bf16.mxu0 %vm87_vm0, %v345_v0  ;;  %v1571_v38 = vadd.f32 %v1524_v5, %v311_v2  ;;  %v290_v11 = vmul.f32 %v1148_v43, %v1465_v48 }
 0x148   :  { %v291_v12 = vmul.f32 %v1150_v45, %v1473_v57  ;;  %v1580_v53 = vadd.f32 %v1524_v5, %v312_v47 }
 0x149   :  { %v346_v14 = vpack.c.bf16 %v1571_v38, %v1568_v10  ;;  %v313_v15 = vmul.f32 %v1517_v1, %v290_v11 }
 0x14a   :  { %v1152_v17 = vpop.eup %1151  ;;  %v314_v48 = vmul.f32 %v1517_v1, %v291_v12 }
 0x14b   :  { %v1154_v51 = vpop.eup %1153  ;;  %v1583_v20 = vadd.f32 %v1524_v5, %v313_v15  ;;  %v292_v22 = vmul.f32 %v1152_v17, %v1477_v58 }
 0x14c   :  { %1095 = vmatmul.mubr.msk.bf16.gmra.mxu0 %vm87_vm0, %v346_v14  ;;  %v293_v57 = vmul.f32 %v1154_v51, %v1485_v4  ;;  %v1594_v16 = vadd.f32 %v1524_v5, %v314_v48 }
 0x14d   :  { %v347_v23 = vpack.c.bf16 %v1583_v20, %v1580_v53  ;;  %v315_v24 = vmul.f32 %v1517_v1, %v292_v22 }
 0x14e   :  { %v1156_v59 = vpop.eup %1155  ;;  %v316_v28 = vmul.f32 %v1517_v1, %v293_v57 }
 0x14f   :  { %v1158_v61 = vpop.eup %1157  ;;  %1098 = vmatprep.mubr.msk.bf16.mxu0 %vm87_vm0, %v347_v23  ;;  %v1597_v58 = vadd.f32 %v1524_v5, %v315_v24  ;;  %v294_v26 = vmul.f32 %v1156_v59, %v1489_v9 }
 0x150   :  { %v295_v4 = vmul.f32 %v1158_v61, %v1497_v7  ;;  %v1606_v33 = vadd.f32 %v1524_v5, %v316_v28 }
 0x151   :  { %v348_v31 = vpack.c.bf16 %v1597_v58, %v1594_v16  ;;  %v317_v32 = vmul.f32 %v1517_v1, %v294_v26 }
 0x152   :  { %v1160_v6 = vpop.eup %1159  ;;  %v318_v9 = vmul.f32 %v1517_v1, %v295_v4 }
 0x153   :  { %v1609_v34 = vadd.f32 %v1524_v5, %v317_v32  ;;  %v296_v19 = vmul.f32 %v1160_v6, %v1501_v18 }
 0x154   :  { %1099 = vmatmul.mubr.msk.bf16.gmra.mxu0 %vm87_vm0, %v348_v31  ;;  %v1619_v39 = vadd.f32 %v1524_v5, %v318_v9 }
 0x155   :  { %v349_v7 = vpack.c.bf16 %v1609_v34, %v1606_v33  ;;  %v319_v21 = vmul.f32 %v1517_v1, %v296_v19  ;;  %v1193_v1 = vmov 0  }
 0x156   :  { %1127 = vset.pattern.permute.xlu1 %v1193_v1  ;;  %1126 = vset.pattern.permute.xlu0 %v1193_v1 }
 0x157   :  { %1102 = vmatprep.mubr.msk.bf16.mxu0 %vm87_vm0, %v349_v7  ;;  %v1622_v40 = vadd.f32 %v1524_v5, %v319_v21  ;;  %938 = vperm.xlu1 %1127, %v916_v42   ;;  %v917_v5 = vld [vmem:[%s2056_s2 + $0x10] sm:$0xff] }
 0x158   :  { %933 = vperm.xlu0 %1126, %v915_v44  }
 0x159   :  { %v350_v18 = vpack.c.bf16 %v1622_v40, %v1619_v39 }
 0x15b   :  { %943 = vperm.xlu1 %1127, %v917_v5  }
 0x15c   :  { %1103 = vmatmul.mubr.msk.bf16.gmra.mxu0 %vm87_vm0, %v350_v18  ;;  %978 = vperm.xlu0 %1126, %v924_v3  }
 0x15f   :  { %948 = vperm.xlu1 %1127, %v918_v46  }
 0x160   :  { %988 = vperm.xlu0 %1126, %v926_v27  }
 0x163   :  { %953 = vperm.xlu1 %1127, %v919_v8  }
 0x167   :  { %958 = vperm.xlu1 %1127, %v920_v50  }
 0x16b   :  { %963 = vperm.xlu1 %1127, %v921_v52  }
 0x16f   :  { %968 = vperm.xlu1 %1127, %v922_v54  }
 0x173   :  { %973 = vperm.xlu1 %1127, %v923_v55  }
 0x177   :  { %983 = vperm.xlu1 %1127, %v925_v56  }
 0x204   :  { %v1092_v35 = vpop.f32.mrf.mxu0 }
 0x205   :  { %v430_v2 = vadd.f32 %v1092_v35, %v1049_v62 }
 0x206   :  { %v421_v37 = vpop.f32.mrf.mxu0 }
 0x207   :  { %v422_v63 = vadd.f32 %v1049_v62, %v421_v37  ;;  %v486_v15 = vmax.f32 %v430_v2, 0.0 }
 0x208   :  { %v1093_v36 = vpop.f32.mrf.mxu0 }
 0x209   :  { %v433_v0 = vadd.f32 %v1093_v36, %v1049_v62  ;;  %v484_v12 = vmax.f32 %v422_v63, 0.0 }
 0x20a   :  { %v424_v43 = vpop.f32.mrf.mxu0 }
 0x20b   :  { %v425_v45 = vadd.f32 %v1049_v62, %v424_v43  ;;  %v487_v11 = vmax.f32 %v433_v0, 0.0 }
 0x20c   :  { %v1096_v47 = vpop.f32.mrf.mxu0 }
 0x20d   :  { %v485_v14 = vmax.f32 %v425_v45, 0.0  ;;  %v501_v22 = vpack.c.bf16 %v487_v11, %v486_v15  ;;  %v446_v24 = vadd.f32 %v1096_v47, %v1049_v62  ;;  %v1680_v47 = vld [vmem:[%s2058_s8] ss:$0 sm:$0xff] }
 0x20e   :  { %v437_v17 = vpop.f32.mrf.mxu0 }
 0x20f   :  { %v500_v51 = vpack.c.bf16 %v485_v14, %v484_v12  ;;  %v438_v57 = vadd.f32 %v1049_v62, %v437_v17  ;;  %v490_v32 = vmax.f32 %v446_v24, 0.0 }
 0x210   :  { %v1097_v48 = vpop.f32.mrf.mxu0 }
 0x211   :  { %v449_v23 = vadd.f32 %v1097_v48, %v1049_v62  ;;  %1108 = vmatprep.mubr.msk.bf16.mxu1 %vm523_vm2, %v500_v51  ;;  %v488_v4 = vmax.f32 %v438_v57, 0.0 }
 0x212   :  { %v440_v59 = vpop.f32.mrf.mxu0  ;;  %1109 = vmatmul.mubr.msk.bf16.vlgmr.msra.gmra.mxu1 %vm523_vm2, %v501_v22 }
 0x213   :  { %v441_v61 = vadd.f32 %v1049_v62, %v440_v59  ;;  %v491_v26 = vmax.f32 %v449_v23, 0.0 }
 0x214   :  { %v1100_v28 = vpop.f32.mrf.mxu0 }
 0x215   :  { %v489_v31 = vmax.f32 %v441_v61, 0.0  ;;  %v503_v9 = vpack.c.bf16 %v491_v26, %v490_v32  ;;  %v462_v41 = vadd.f32 %v1100_v28, %v1049_v62 }
 0x216   :  { %v453_v6 = vpop.f32.mrf.mxu0 }
 0x217   :  { %v502_v19 = vpack.c.bf16 %v489_v31, %v488_v4  ;;  %v454_v21 = vadd.f32 %v1049_v62, %v453_v6  ;;  %v494_v27 = vmax.f32 %v462_v41, 0.0 }
 0x218   :  { %v1101_v7 = vpop.f32.mrf.mxu0 }
 0x219   :  { %v465_v18 = vadd.f32 %v1101_v7, %v1049_v62  ;;  %1112 = vmatprep.mubr.msk.bf16.mxu1 %vm523_vm2, %v502_v19  ;;  %v492_v3 = vmax.f32 %v454_v21, 0.0 }
 0x21a   :  { %v456_v1 = vpop.f32.mrf.mxu0  ;;  %1113 = vmatmul.mubr.msk.bf16.gmra.mxu1 %vm523_vm2, %v503_v9 }
 0x21b   :  { %v457_v42 = vadd.f32 %v1049_v62, %v456_v1  ;;  %v495_v5 = vmax.f32 %v465_v18, 0.0 }
 0x21c   :  { %v1104_v44 = vpop.f32.mrf.mxu0 }
 0x21d   :  { %v493_v46 = vmax.f32 %v457_v42, 0.0  ;;  %v505_v52 = vpack.c.bf16 %v495_v5, %v494_v27  ;;  %v478_v35 = vadd.f32 %v1104_v44, %v1049_v62 }
 0x21e   :  { %v469_v8 = vpop.f32.mrf.mxu0 }
 0x21f   :  { %v504_v50 = vpack.c.bf16 %v493_v46, %v492_v3  ;;  %v470_v55 = vadd.f32 %v1049_v62, %v469_v8  ;;  %v498_v43 = vmax.f32 %v478_v35, 0.0 }
 0x220   :  { %v1105_v54 = vpop.f32.mrf.mxu0 }
 0x221   :  { %v481_v56 = vadd.f32 %v1105_v54, %v1049_v62  ;;  %1116 = vmatprep.mubr.msk.bf16.mxu1 %vm523_vm2, %v504_v50  ;;  %v496_v0 = vmax.f32 %v470_v55, 0.0 }
 0x222   :  { %v472_v37 = vpop.f32.mrf.mxu0  ;;  %1117 = vmatmul.mubr.msk.bf16.gmra.mxu1 %vm523_vm2, %v505_v52 }
 0x223   :  { %v473_v36 = vadd.f32 %v1049_v62, %v472_v37  ;;  %v499_v63 = vmax.f32 %v481_v56, 0.0 }
 0x225   :  { %v497_v2 = vmax.f32 %v473_v36, 0.0  ;;  %v507_v11 = vpack.c.bf16 %v499_v63, %v498_v43 }
 0x227   :  { %v506_v45 = vpack.c.bf16 %v497_v2, %v496_v0 }
 0x229   :  { %1120 = vmatprep.mubr.msk.bf16.mxu1 %vm523_vm2, %v506_v45 }
 0x22a   :  { %1121 = vmatmul.mubr.msk.bf16.gmra.mxu1 %vm523_vm2, %v507_v11 }
 0x2d2   :  { %v1110_v12 = vpop.f32.mrf.mxu1 }
 0x2d3   :  { %v591_v14 = vadd.f32 %v1110_v12, %v1680_v47 }
 0x2d4   :  { %v582_v15 = vpop.f32.mrf.mxu1 }
 0x2d5   :  { %v583_v62 = vadd.f32 %v1680_v47, %v582_v15  ;;  %v1685_v17 = vadd.f32 %v591_v14, %v1544_v29 }
 0x2d6   :  { %v1111_v51 = vpop.f32.mrf.mxu1 }
 0x2d7   :  { %v594_v22 = vadd.f32 %v1111_v51, %v1680_v47  ;;  %v667_v48 = vsel %vm87_vm0, %v1685_v17, 0.0  ;;  %v1691_v57 = vadd.f32 %v583_v62, %v1529_v25  ;;  %v1784_v62 = vpop.permute.xlu1 %938 }
 0x2d8   :  { %668 = vadd.xlane.f32.xlu0 %v667_v48  ;;  %v585_v23 = vpop.f32.mrf.mxu1 }
 0x2d9   :  { %v586_v24 = vadd.f32 %v1680_v47, %v585_v23  ;;  %v1695_v59 = vadd.f32 %v594_v22, %v1547_v49  ;;  %v661_v28 = vsel %vm87_vm0, %v1691_v57, 0.0 }
 0x2da   :  { %v1114_v61 = vpop.f32.mrf.mxu1 }
 0x2db   :  { %v607_v29 = vadd.f32 %v1114_v61, %v1680_v47  ;;  %v670_v26 = vsel %vm87_vm0, %v1695_v59, 0.0  ;;  %v1703_v4 = vadd.f32 %v586_v24, %v1532_v30  ;;  %v1796_v24 = vpop.permute.xlu0 %933 }
 0x2dc   :  { %671 = vadd.xlane.f32.xlu1 %v670_v26  ;;  %662 = vadd.xlane.f32.xlu0 %v661_v28  ;;  %v598_v25 = vpop.f32.mrf.mxu1 }
 0x2dd   :  { %v599_v31 = vadd.f32 %v1680_v47, %v598_v25  ;;  %v1707_v49 = vadd.f32 %v607_v29, %v1568_v10  ;;  %v664_v19 = vsel %vm87_vm0, %v1703_v4, 0.0 }
 0x2de   :  { %v1115_v32 = vpop.f32.mrf.mxu1 }
 0x2df   :  { %v610_v6 = vadd.f32 %v1115_v32, %v1680_v47  ;;  %v679_v9 = vsel %vm87_vm0, %v1707_v49, 0.0  ;;  %v1715_v30 = vadd.f32 %v599_v31, %v1554_v13  ;;  %v1800_v29 = vpop.permute.xlu0 %978 }
 0x2e0   :  { %665 = vadd.xlane.f32.xlu1 %v664_v19  ;;  %680 = vadd.xlane.f32.xlu0 %v679_v9  ;;  %v601_v7 = vpop.f32.mrf.mxu1 }
 0x2e1   :  { %v602_v21 = vadd.f32 %v1680_v47, %v601_v7  ;;  %v1719_v10 = vadd.f32 %v610_v6, %v1571_v38  ;;  %v673_v42 = vsel %vm87_vm0, %v1715_v30, 0.0 }
 0x2e2   :  { %v1118_v18 = vpop.f32.mrf.mxu1 }
 0x2e3   :  { %v623_v41 = vadd.f32 %v1118_v18, %v1680_v47  ;;  %v682_v1 = vsel %vm87_vm0, %v1719_v10, 0.0  ;;  %v1727_v13 = vadd.f32 %v602_v21, %v1557_v60  ;;  %v1804_v28 = vpop.permute.xlu0 %988 }
 0x2e4   :  { %683 = vadd.xlane.f32.xlu1 %v682_v1  ;;  %674 = vadd.xlane.f32.xlu0 %v673_v42  ;;  %v614_v5 = vpop.f32.mrf.mxu1 }
 0x2e5   :  { %v615_v44 = vadd.f32 %v1680_v47, %v614_v5  ;;  %v1731_v38 = vadd.f32 %v623_v41, %v1594_v16  ;;  %v676_v27 = vsel %vm87_vm0, %v1727_v13, 0.0 }
 0x2e6   :  { %v1119_v3 = vpop.f32.mrf.mxu1 }
 0x2e7   :  { %v626_v46 = vadd.f32 %v1119_v3, %v1680_v47  ;;  %v691_v8 = vsel %vm87_vm0, %v1731_v38, 0.0  ;;  %v1739_v60 = vadd.f32 %v615_v44, %v1580_v53 }
 0x2e8   :  { %677 = vadd.xlane.f32.xlu1 %v676_v27  ;;  %692 = vadd.xlane.f32.xlu0 %v691_v8  ;;  %v617_v50 = vpop.f32.mrf.mxu1 }
 0x2e9   :  { %v618_v52 = vadd.f32 %v1680_v47, %v617_v50  ;;  %v1743_v16 = vadd.f32 %v626_v46, %v1597_v58  ;;  %v685_v35 = vsel %vm87_vm0, %v1739_v60, 0.0 }
 0x2ea   :  { %v1122_v54 = vpop.f32.mrf.mxu1 }
 0x2eb   :  { %v639_v55 = vadd.f32 %v1122_v54, %v1680_v47  ;;  %v694_v56 = vsel %vm87_vm0, %v1743_v16, 0.0  ;;  %v1751_v53 = vadd.f32 %v618_v52, %v1583_v20 }
 0x2ec   :  { %695 = vadd.xlane.f32.xlu1 %v694_v56  ;;  %686 = vadd.xlane.f32.xlu0 %v685_v35  ;;  %v630_v37 = vpop.f32.mrf.mxu1 }
 0x2ed   :  { %v631_v36 = vadd.f32 %v1680_v47, %v630_v37  ;;  %v1755_v58 = vadd.f32 %v639_v55, %v1619_v39  ;;  %v688_v2 = vsel %vm87_vm0, %v1751_v53, 0.0 }
 0x2ee   :  { %v1123_v63 = vpop.f32.mrf.mxu1 }
 0x2ef   :  { %v642_v0 = vadd.f32 %v1123_v63, %v1680_v47  ;;  %v703_v43 = vsel %vm87_vm0, %v1755_v58, 0.0  ;;  %v1763_v20 = vadd.f32 %v631_v36, %v1606_v33 }
 0x2f0   :  { %689 = vadd.xlane.f32.xlu1 %v688_v2  ;;  %704 = vadd.xlane.f32.xlu0 %v703_v43  ;;  %v633_v45 = vpop.f32.mrf.mxu1 }
 0x2f1   :  { %v634_v11 = vadd.f32 %v1680_v47, %v633_v45  ;;  %v1767_v39 = vadd.f32 %v642_v0, %v1622_v40  ;;  %v697_v14 = vsel %vm87_vm0, %v1763_v20, 0.0  ;;  %v927_v40 = vld [vmem:[%s2056_s2 + $0x60] sm:$0xff]  ;;  %v928_v47 = vld [vmem:[%s2056_s2 + $0x68] sm:$0xff] }
 0x2f3   :  { %v706_v12 = vsel %vm87_vm0, %v1767_v39, 0.0  ;;  %v1774_v15 = vadd.f32 %v634_v11, %v1609_v34  ;;  %v1786_v34 = vpop.permute.xlu1 %943 }
 0x2f4   :  { %707 = vadd.xlane.f32.xlu1 %v706_v12  ;;  %698 = vadd.xlane.f32.xlu0 %v697_v14 }
 0x2f5   :  { %v700_v33 = vsel %vm87_vm0, %v1774_v15, 0.0 }
 0x2f7   :  { %v1788_v51 = vpop.permute.xlu1 %948 }
 0x2f8   :  { %701 = vadd.xlane.f32.xlu1 %v700_v33 }
 0x2fb   :  { %v1790_v22 = vpop.permute.xlu1 %953 }
 0x2ff   :  { %v1792_v48 = vpop.permute.xlu1 %958 }
 0x303   :  { %v1794_v23 = vpop.permute.xlu1 %963 }
 0x307   :  { %v1798_v61 = vpop.permute.xlu1 %968 }
 0x309   :  { %993 = vperm.xlu1 %1127, %v927_v40  }
 0x30a   :  { %998 = vperm.xlu0 %1126, %v928_v47  }
 0x30b   :  { %v1802_v26 = vpop.permute.xlu1 %973 }
 0x30f   :  { %v1806_v25 = vpop.permute.xlu1 %983 }
 0x361   :  { %v669_v31 = vpop.xlane.xlu0 %668 }
 0x362   :  { %v711_v32 = vmul.f32 0.125, %v669_v31 }
 0x364   :  { %v1809_v6 = vsub.f32 %v1685_v17, %v711_v32 }
 0x365   :  { %v672_v19 = vpop.xlane.xlu1 %671  ;;  %v663_v9 = vpop.xlane.xlu0 %662 }
 0x366   :  { %v712_v7 = vmul.f32 0.125, %v672_v19  ;;  %v709_v21 = vmul.f32 0.125, %v663_v9  ;;  %v743_v18 = vmul.f32 %v1809_v6, %v1809_v6 }
 0x368   :  { %v1814_v41 = vsub.f32 %v1695_v59, %v712_v7  ;;  %v1817_v1 = vsub.f32 %v1691_v57, %v709_v21  ;;  %v763_v42 = vsel %vm87_vm0, %v743_v18, 0.0 }
 0x369   :  { %v666_v5 = vpop.xlane.xlu1 %665  ;;  %764 = vadd.xlane.f32.xlu0 %v763_v42  ;;  %v681_v44 = vpop.xlane.xlu0 %680 }
 0x36a   :  { %v710_v17 = vmul.f32 0.125, %v666_v5  ;;  %v715_v3 = vmul.f32 0.125, %v681_v44  ;;  %v744_v46 = vmul.f32 %v1814_v41, %v1814_v41  ;;  %v741_v27 = vmul.f32 %v1817_v1, %v1817_v1 }
 0x36c   :  { %v1825_v8 = vsub.f32 %v1703_v4, %v710_v17  ;;  %v1828_v59 = vsub.f32 %v1707_v49, %v715_v3  ;;  %v766_v57 = vsel %vm87_vm0, %v744_v46, 0.0  ;;  %v757_v50 = vsel %vm87_vm0, %v741_v27, 0.0 }
 0x36d   :  { %v684_v52 = vpop.xlane.xlu1 %683  ;;  %767 = vadd.xlane.f32.xlu1 %v766_v57  ;;  %758 = vadd.xlane.f32.xlu0 %v757_v50  ;;  %v675_v54 = vpop.xlane.xlu0 %674 }
 0x36e   :  { %v716_v55 = vmul.f32 0.125, %v684_v52  ;;  %v713_v56 = vmul.f32 0.125, %v675_v54  ;;  %v742_v35 = vmul.f32 %v1825_v8, %v1825_v8  ;;  %v747_v4 = vmul.f32 %v1828_v59, %v1828_v59 }
 0x370   :  { %v1837_v37 = vsub.f32 %v1719_v10, %v716_v55  ;;  %v1840_v49 = vsub.f32 %v1715_v30, %v713_v56  ;;  %v760_v36 = vsel %vm87_vm0, %v742_v35, 0.0  ;;  %v775_v63 = vsel %vm87_vm0, %v747_v4, 0.0 }
 0x371   :  { %v678_v0 = vpop.xlane.xlu1 %677  ;;  %761 = vadd.xlane.f32.xlu1 %v760_v36  ;;  %776 = vadd.xlane.f32.xlu0 %v775_v63  ;;  %v693_v2 = vpop.xlane.xlu0 %692 }
 0x372   :  { %v714_v43 = vmul.f32 0.125, %v678_v0  ;;  %v719_v45 = vmul.f32 0.125, %v693_v2  ;;  %v748_v11 = vmul.f32 %v1837_v37, %v1837_v37  ;;  %v745_v10 = vmul.f32 %v1840_v49, %v1840_v49 }
 0x374   :  { %v1849_v12 = vsub.f32 %v1727_v13, %v714_v43  ;;  %v1852_v30 = vsub.f32 %v1731_v38, %v719_v45  ;;  %v778_v14 = vsel %vm87_vm0, %v748_v11, 0.0  ;;  %v769_v33 = vsel %vm87_vm0, %v745_v10, 0.0  ;;  %v929_v10 = vld [vmem:[%s2056_s2 + $0x70] sm:$0xff] }
 0x375   :  { %v696_v40 = vpop.xlane.xlu1 %695  ;;  %779 = vadd.xlane.f32.xlu1 %v778_v14  ;;  %770 = vadd.xlane.f32.xlu0 %v769_v33  ;;  %v687_v47 = vpop.xlane.xlu0 %686 }
 0x376   :  { %v720_v31 = vmul.f32 0.125, %v696_v40  ;;  %v717_v32 = vmul.f32 0.125, %v687_v47  ;;  %v746_v19 = vmul.f32 %v1849_v12, %v1849_v12  ;;  %v751_v13 = vmul.f32 %v1852_v30, %v1852_v30 }
 0x378   :  { %v1861_v9 = vsub.f32 %v1743_v16, %v720_v31  ;;  %v1864_v38 = vsub.f32 %v1739_v60, %v717_v32  ;;  %v772_v7 = vsel %vm87_vm0, %v746_v19, 0.0  ;;  %v787_v21 = vsel %vm87_vm0, %v751_v13, 0.0 }
 0x379   :  { %v690_v18 = vpop.xlane.xlu1 %689  ;;  %773 = vadd.xlane.f32.xlu1 %v772_v7  ;;  %788 = vadd.xlane.f32.xlu0 %v787_v21  ;;  %v705_v42 = vpop.xlane.xlu0 %704 }
 0x37a   :  { %v718_v5 = vmul.f32 0.125, %v690_v18  ;;  %v723_v44 = vmul.f32 0.125, %v705_v42  ;;  %v752_v17 = vmul.f32 %v1861_v9, %v1861_v9  ;;  %v749_v16 = vmul.f32 %v1864_v38, %v1864_v38 }
 0x37c   :  { %v1873_v3 = vsub.f32 %v1751_v53, %v718_v5  ;;  %v1876_v60 = vsub.f32 %v1755_v58, %v723_v44  ;;  %v790_v46 = vsel %vm87_vm0, %v752_v17, 0.0  ;;  %v781_v27 = vsel %vm87_vm0, %v749_v16, 0.0 }
 0x37d   :  { %v708_v57 = vpop.xlane.xlu1 %707  ;;  %791 = vadd.xlane.f32.xlu1 %v790_v46  ;;  %782 = vadd.xlane.f32.xlu0 %v781_v27  ;;  %v699_v50 = vpop.xlane.xlu0 %698 }
 0x37e   :  { %v724_v52 = vmul.f32 0.125, %v708_v57  ;;  %v721_v54 = vmul.f32 0.125, %v699_v50  ;;  %v750_v55 = vmul.f32 %v1873_v3, %v1873_v3  ;;  %v755_v53 = vmul.f32 %v1876_v60, %v1876_v60 }
 0x380   :  { %v1885_v56 = vsub.f32 %v1767_v39, %v724_v52  ;;  %v1888_v58 = vsub.f32 %v1763_v20, %v721_v54  ;;  %v784_v35 = vsel %vm87_vm0, %v750_v55, 0.0  ;;  %v799_v4 = vsel %vm87_vm0, %v755_v53, 0.0 }
 0x381   :  { %785 = vadd.xlane.f32.xlu1 %v784_v35  ;;  %v702_v36 = vpop.xlane.xlu1 %701  ;;  %800 = vadd.xlane.f32.xlu0 %v799_v4 }
 0x382   :  { %v722_v63 = vmul.f32 0.125, %v702_v36  ;;  %v756_v0 = vmul.f32 %v1885_v56, %v1885_v56  ;;  %v753_v2 = vmul.f32 %v1888_v58, %v1888_v58 }
 0x384   :  { %v1897_v39 = vsub.f32 %v1774_v15, %v722_v63  ;;  %v802_v20 = vsel %vm87_vm0, %v756_v0, 0.0  ;;  %v793_v43 = vsel %vm87_vm0, %v753_v2, 0.0  ;;  %v930_v15 = vld [vmem:[%s2056_s2 + $0x78] sm:$0xff]  ;;  %v1917_v0 = vld [vmem:[%s2059_s9] ss:$0 sm:$0xff] }
 0x385   :  { %803 = vadd.xlane.f32.xlu1 %v802_v20  ;;  %794 = vadd.xlane.f32.xlu0 %v793_v43  ;;  %v1910_v14 = vpop.permute.xlu0 %998  ;;  %v1912_v33 = vpop.permute.xlu1 %993 }
 0x386   :  { %v754_v45 = vmul.f32 %v1897_v39, %v1897_v39 }
 0x388   :  { %v796_v11 = vsel %vm87_vm0, %v754_v45, 0.0  ;;  %v1923_v45 = vld [vmem:[%s2060_s10] ss:$0 sm:$0xff] }
 0x389   :  { %797 = vadd.xlane.f32.xlu1 %v796_v11 }
 0x39a   :  { %1003 = vperm.xlu1 %1127, %v929_v10  }
 0x39b   :  { %1008 = vperm.xlu0 %1126, %v930_v15  }
 0x3f2   :  { %v765_v40 = vpop.xlane.xlu0 %764 }
 0x3f3   :  { %v807_v47 = vmul.f32 0.125, %v765_v40 }
 0x3f5   :  { %v823_v31 = vadd.f32 1e-05, %v807_v47 }
 0x3f6   :  { %v768_v32 = vpop.xlane.xlu1 %767  ;;  %v759_v19 = vpop.xlane.xlu0 %758 }
 0x3f7   :  { %1161 = vrsqrt.f32 %v823_v31  ;;  %v808_v13 = vmul.f32 0.125, %v768_v32  ;;  %v805_v7 = vmul.f32 0.125, %v759_v19 }
 0x3f9   :  { %v824_v21 = vadd.f32 1e-05, %v808_v13  ;;  %v821_v18 = vadd.f32 1e-05, %v805_v7 }
 0x3fa   :  { %v762_v42 = vpop.xlane.xlu1 %761  ;;  %v777_v5 = vpop.xlane.xlu0 %776 }
 0x3fb   :  { %1163 = vrsqrt.f32 %v824_v21  ;;  %v806_v44 = vmul.f32 0.125, %v762_v42  ;;  %v811_v17 = vmul.f32 0.125, %v777_v5 }
 0x3fc   :  { %1165 = vrsqrt.f32 %v821_v18 }
 0x3fd   :  { %v822_v16 = vadd.f32 1e-05, %v806_v44  ;;  %v827_v46 = vadd.f32 1e-05, %v811_v17 }
 0x3fe   :  { %v780_v27 = vpop.xlane.xlu1 %779  ;;  %v771_v57 = vpop.xlane.xlu0 %770 }
 0x3ff   :  { %1167 = vrsqrt.f32 %v822_v16  ;;  %v812_v50 = vmul.f32 0.125, %v780_v27  ;;  %v809_v52 = vmul.f32 0.125, %v771_v57 }
 0x400   :  { %1169 = vrsqrt.f32 %v827_v46 }
 0x401   :  { %v828_v54 = vadd.f32 1e-05, %v812_v50  ;;  %v825_v55 = vadd.f32 1e-05, %v809_v52 }
 0x402   :  { %v774_v53 = vpop.xlane.xlu1 %773  ;;  %v789_v35 = vpop.xlane.xlu0 %788 }
 0x403   :  { %1171 = vrsqrt.f32 %v828_v54  ;;  %v810_v4 = vmul.f32 0.125, %v774_v53  ;;  %v815_v36 = vmul.f32 0.125, %v789_v35 }
 0x404   :  { %v1162_v63 = vpop.eup %1161  ;;  %1173 = vrsqrt.f32 %v825_v55 }
 0x405   :  { %v855_v2 = vmul.f32 %v1162_v63, %v1809_v6  ;;  %v826_v20 = vadd.f32 1e-05, %v810_v4  ;;  %v831_v43 = vadd.f32 1e-05, %v815_v36 }
 0x406   :  { %v792_v11 = vpop.xlane.xlu1 %791  ;;  %v783_v10 = vpop.xlane.xlu0 %782 }
 0x407   :  { %v878_v15 = vmul.f32 %v1917_v0, %v855_v2  ;;  %1175 = vrsqrt.f32 %v826_v20  ;;  %v816_v40 = vmul.f32 0.125, %v792_v11  ;;  %v813_v47 = vmul.f32 0.125, %v783_v10 }
 0x408   :  { %v1164_v31 = vpop.eup %1163  ;;  %1177 = vrsqrt.f32 %v831_v43 }
 0x409   :  { %v1166_v32 = vpop.eup %1165  ;;  %v901_v19 = vadd.f32 %v1923_v45, %v878_v15  ;;  %v856_v6 = vmul.f32 %v1164_v31, %v1814_v41  ;;  %v832_v13 = vadd.f32 1e-05, %v816_v40  ;;  %v829_v7 = vadd.f32 1e-05, %v813_v47 }
 0x40a   :  { %v853_v21 = vmul.f32 %v1166_v32, %v1817_v1  ;;  %v786_v18 = vpop.xlane.xlu1 %785  ;;  %v801_v42 = vpop.xlane.xlu0 %800 }
 0x40b   :  { %v1013_v5 = vmul.f32 %v1786_v34, %v901_v19  ;;  %v879_v44 = vmul.f32 %v1917_v0, %v856_v6  ;;  %1179 = vrsqrt.f32 %v832_v13  ;;  %v814_v17 = vmul.f32 0.125, %v786_v18 }
 0x40c   :  { %v1168_v16 = vpop.eup %1167  ;;  %v876_v46 = vmul.f32 %v1917_v0, %v853_v21  ;;  %1181 = vrsqrt.f32 %v829_v7  ;;  %v819_v27 = vmul.f32 0.125, %v801_v42 }
 0x40d   :  { %v1170_v57 = vpop.eup %1169  ;;  %1029 = vst.msk [vmem:[%s2061_s11 + $0x10] sm:$0xff] %vm87_vm0, %v1013_v5  ;;  %v902_v41 = vadd.f32 %v1923_v45, %v879_v44  ;;  %v854_v1 = vmul.f32 %v1168_v16, %v1825_v8  ;;  %v830_v34 = vadd.f32 1e-05, %v814_v17 }
 0x40e   :  { %v899_v50 = vadd.f32 %v1923_v45, %v876_v46  ;;  %v859_v52 = vmul.f32 %v1170_v57, %v1828_v59  ;;  %v835_v54 = vadd.f32 1e-05, %v819_v27  ;;  %v804_v55 = vpop.xlane.xlu1 %803  ;;  %v795_v53 = vpop.xlane.xlu0 %794 }
 0x40f   :  { %v1014_v35 = vmul.f32 %v1788_v51, %v902_v41  ;;  %v877_v4 = vmul.f32 %v1917_v0, %v854_v1  ;;  %1183 = vrsqrt.f32 %v830_v34  ;;  %v820_v36 = vmul.f32 0.125, %v804_v55 }
 0x410   :  { %v1172_v63 = vpop.eup %1171  ;;  %v1011_v2 = vmul.f32 %v1796_v24, %v899_v50  ;;  %v882_v20 = vmul.f32 %v1917_v0, %v859_v52  ;;  %1185 = vrsqrt.f32 %v835_v54  ;;  %v817_v8 = vmul.f32 0.125, %v795_v53 }
 0x411   :  { %v1174_v43 = vpop.eup %1173  ;;  %1030 = vst.msk [vmem:[%s2061_s11 + $0x18] sm:$0xff] %vm87_vm0, %v1014_v35  ;;  %v900_v59 = vadd.f32 %v1923_v45, %v877_v4  ;;  %v860_v51 = vmul.f32 %v1172_v63, %v1837_v37  ;;  %v836_v11 = vadd.f32 1e-05, %v820_v36 }
 0x412   :  { %1027 = vst.msk [vmem:[%s2061_s11] sm:$0xff] %vm87_vm0, %v1011_v2  ;;  %v905_v24 = vadd.f32 %v1923_v45, %v882_v20  ;;  %v857_v10 = vmul.f32 %v1174_v43, %v1840_v49  ;;  %v833_v15 = vadd.f32 1e-05, %v817_v8  ;;  %v798_v40 = vpop.xlane.xlu1 %797 }
 0x413   :  { %v1012_v47 = vmul.f32 %v1784_v62, %v900_v59  ;;  %v883_v31 = vmul.f32 %v1917_v0, %v860_v51  ;;  %1187 = vrsqrt.f32 %v836_v11  ;;  %v818_v32 = vmul.f32 0.125, %v798_v40 }
 0x414   :  { %v1176_v19 = vpop.eup %1175  ;;  %v1017_v37 = vmul.f32 %v1794_v23, %v905_v24  ;;  %v880_v6 = vmul.f32 %v1917_v0, %v857_v10  ;;  %1189 = vrsqrt.f32 %v833_v15 }
 0x415   :  { %v1178_v13 = vpop.eup %1177  ;;  %1028 = vst.msk [vmem:[%s2061_s11 + $0x8] sm:$0xff] %vm87_vm0, %v1012_v47  ;;  %v906_v49 = vadd.f32 %v1923_v45, %v883_v31  ;;  %v858_v62 = vmul.f32 %v1176_v19, %v1849_v12  ;;  %v834_v7 = vadd.f32 1e-05, %v818_v32 }
 0x416   :  { %1033 = vst.msk [vmem:[%s2061_s11 + $0x30] sm:$0xff] %vm87_vm0, %v1017_v37  ;;  %v903_v23 = vadd.f32 %v1923_v45, %v880_v6  ;;  %v863_v21 = vmul.f32 %v1178_v13, %v1852_v30  ;;  %v1004_v36 = vpop.permute.xlu1 %1003 }
 0x417   :  { %v1018_v18 = vmul.f32 %v1798_v61, %v906_v49  ;;  %v881_v42 = vmul.f32 %v1917_v0, %v858_v62  ;;  %1191 = vrsqrt.f32 %v834_v7 }
 0x418   :  { %v1180_v5 = vpop.eup %1179  ;;  %v1015_v44 = vmul.f32 %v1790_v22, %v903_v23  ;;  %v886_v12 = vmul.f32 %v1917_v0, %v863_v21 }
 0x419   :  { %v1182_v17 = vpop.eup %1181  ;;  %1034 = vst.msk [vmem:[%s2061_s11 + $0x38] sm:$0xff] %vm87_vm0, %v1018_v18  ;;  %v904_v16 = vadd.f32 %v1923_v45, %v881_v42  ;;  %v864_v30 = vmul.f32 %v1180_v5, %v1861_v9 }
 0x41a   :  { %1031 = vst.msk [vmem:[%s2061_s11 + $0x20] sm:$0xff] %vm87_vm0, %v1015_v44  ;;  %v909_v61 = vadd.f32 %v1923_v45, %v886_v12  ;;  %v861_v22 = vmul.f32 %v1182_v17, %v1864_v38 }
 0x41b   :  { %v1016_v46 = vmul.f32 %v1792_v48, %v904_v16  ;;  %v887_v27 = vmul.f32 %v1917_v0, %v864_v30 }
 0x41c   :  { %v1184_v57 = vpop.eup %1183  ;;  %v1021_v41 = vmul.f32 %v1806_v25, %v909_v61  ;;  %v884_v1 = vmul.f32 %v1917_v0, %v861_v22 }
 0x41d   :  { %v1186_v34 = vpop.eup %1185  ;;  %1032 = vst.msk [vmem:[%s2061_s11 + $0x28] sm:$0xff] %vm87_vm0, %v1016_v46  ;;  %v910_v9 = vadd.f32 %v1923_v45, %v887_v27  ;;  %v862_v50 = vmul.f32 %v1184_v57, %v1873_v3 }
 0x41e   :  { %1037 = vst.msk [vmem:[%s2061_s11 + $0x50] sm:$0xff] %vm87_vm0, %v1021_v41  ;;  %v907_v48 = vadd.f32 %v1923_v45, %v884_v1  ;;  %v867_v25 = vmul.f32 %v1186_v34, %v1876_v60 }
 0x41f   :  { %v1022_v38 = vmul.f32 %v1804_v28, %v910_v9  ;;  %v885_v52 = vmul.f32 %v1917_v0, %v862_v50 }
 0x420   :  { %v1188_v54 = vpop.eup %1187  ;;  %v1019_v55 = vmul.f32 %v1802_v26, %v907_v48  ;;  %v890_v53 = vmul.f32 %v1917_v0, %v867_v25 }
 0x421   :  { %v1190_v35 = vpop.eup %1189  ;;  %1038 = vst.msk [vmem:[%s2061_s11 + $0x58] sm:$0xff] %vm87_vm0, %v1022_v38  ;;  %v908_v3 = vadd.f32 %v1923_v45, %v885_v52  ;;  %v868_v4 = vmul.f32 %v1188_v54, %v1885_v56 }
 0x422   :  { %1035 = vst.msk [vmem:[%s2061_s11 + $0x40] sm:$0xff] %vm87_vm0, %v1019_v55  ;;  %v865_v28 = vmul.f32 %v1190_v35, %v1888_v58  ;;  %v913_v26 = vadd.f32 %v1923_v45, %v890_v53 }
 0x423   :  { %v1020_v60 = vmul.f32 %v1800_v29, %v908_v3  ;;  %v891_v63 = vmul.f32 %v1917_v0, %v868_v4  ;;  %v1009_v29 = vpop.permute.xlu0 %1008 }
 0x424   :  { %v1192_v2 = vpop.eup %1191  ;;  %v888_v20 = vmul.f32 %v1917_v0, %v865_v28  ;;  %v1025_v8 = vmul.f32 %v1004_v36, %v913_v26 }
 0x425   :  { %1036 = vst.msk [vmem:[%s2061_s11 + $0x48] sm:$0xff] %vm87_vm0, %v1020_v60  ;;  %v866_v56 = vmul.f32 %v1192_v2, %v1897_v39  ;;  %v914_v58 = vadd.f32 %v1923_v45, %v891_v63 }
 0x426   :  { %v911_v43 = vadd.f32 %v1923_v45, %v888_v20  ;;  %1041 = vst.msk [vmem:[%s2061_s11 + $0x70] sm:$0xff] %vm87_vm0, %v1025_v8 }
 0x427   :  { %v889_v59 = vmul.f32 %v1917_v0, %v866_v56  ;;  %v1026_v51 = vmul.f32 %v1009_v29, %v914_v58 }
 0x428   :  { %v1023_v11 = vmul.f32 %v1912_v33, %v911_v43 }
 0x429   :  { %v912_v24 = vadd.f32 %v1923_v45, %v889_v59  ;;  %1042 = vst.msk [vmem:[%s2061_s11 + $0x78] sm:$0xff] %vm87_vm0, %v1026_v51 }
 0x42a   :  { %1039 = vst.msk [vmem:[%s2061_s11 + $0x60] sm:$0xff] %vm87_vm0, %v1023_v11 }
 0x42b   :  { %v1024_v39 = vmul.f32 %v1910_v14, %v912_v24 }
 0x42d   :  { %1040 = vst.msk [vmem:[%s2061_s11 + $0x68] sm:$0xff] %vm87_vm0, %v1024_v39 }

</bundles_post_ra>
